<compile_context>
chip_gen: v6e
topology: v6e:2x2x1
jax: 0.10.0
libtpu: 0.0.40
codegen_flags: <defaults>
</compile_context>

<pallas_src>
import functools

import jax
import jax.numpy as jnp
from jax.experimental import pallas as pl
from jax.experimental.pallas import tpu as pltpu  # noqa: F401  (kept for TPU-specific extensions)

jax.config.update("jax_default_matmul_precision", "highest")

_LANE = 128      # lane width: pad every feature dim to this
_SUBLANE = 8     # sublane width: pad the node dim to a multiple of this


def _round_up(n, m):
    return ((n + m - 1) // m) * m


def _pad2(a, rows, cols):
    """Zero-pad a 2D array to (rows, cols)."""
    out = jnp.zeros((rows, cols), a.dtype)
    return out.at[: a.shape[0], : a.shape[1]].set(a)


# ---------------------------------------------------------------------------
# Fused kernel: GCNConv -> ReLU -> GCNConv -> (concat via split matmul) -> MLP
# ---------------------------------------------------------------------------
def _gcn_mlp_kernel(n_extra, *refs):
    # refs = (adj, state, action,
    #         Wg1, bg1, Wg2, bg2,            # the two GCNConv layers (W pre-transposed)
    #         W1_g, W1_a, b1,                # first MLP Linear, weight split over the concat
    #         (W_i, b_i) * n_extra,          # remaining hidden Linear layers
    #         W_out, b_out,
    #         out_ref)
    out_ref = refs[-1]
    (adj_ref, x_ref, act_ref,
     wg1_ref, bg1_ref, wg2_ref, bg2_ref,
     w1g_ref, w1a_ref, b1_ref) = refs[:10]
    extra = refs[10:10 + 2 * n_extra]
    wout_ref, bout_ref = refs[10 + 2 * n_extra: 12 + 2 * n_extra]

    adj = adj_ref[...]  # (Np, Np) normalized adjacency with self-loops

    # --- GCNConv 1:  h = relu( Â (X W1) + b1 ) -------------------------------
    h = jnp.dot(x_ref[...], wg1_ref[...], preferred_element_type=jnp.float32)
    h = jnp.dot(adj, h, preferred_element_type=jnp.float32) + bg1_ref[...]
    h = jnp.maximum(h, 0.0)            # spec's `ReLU(x)` (intended activation)

    # --- GCNConv 2:  g = Â (h W2) + b2 ---------------------------------------
    h = jnp.dot(h, wg2_ref[...], preferred_element_type=jnp.float32)
    g = jnp.dot(adj, h, preferred_element_type=jnp.float32) + bg2_ref[...]

    # --- MLP layer 1 on concat([g, action], -1), as a split matmul -----------
    m = (jnp.dot(g, w1g_ref[...], preferred_element_type=jnp.float32)
         + jnp.dot(act_ref[...], w1a_ref[...], preferred_element_type=jnp.float32)
         + b1_ref[...])
    m = jnp.maximum(m, 0.0)

    # --- remaining hidden Linear+ReLU layers (static unroll) ------------------
    for i in range(n_extra):
        w_ref = extra[2 * i]
        b_ref = extra[2 * i + 1]
        m = jnp.dot(m, w_ref[...], preferred_element_type=jnp.float32) + b_ref[...]
        m = jnp.maximum(m, 0.0)

    # --- output Linear (lane-dense padded (Np, 128) store) --------------------
    out_ref[...] = (jnp.dot(m, wout_ref[...], preferred_element_type=jnp.float32)
                    + bout_ref[...]).astype(out_ref.dtype)


# ---------------------------------------------------------------------------
# Module wrapper with deterministic parameter init (mirrors the torch module).
# ---------------------------------------------------------------------------
class GCNMLPPallas:
    def __init__(self, state_dim, action_dim, gnn_hidden_dim, mlp_hidden_dims,
                 output_dim, edge_index, num_nodes, key):
        self.state_dim = state_dim
        self.action_dim = action_dim
        self.gnn_hidden_dim = gnn_hidden_dim
        self.mlp_hidden_dims = list(mlp_hidden_dims)
        self.output_dim = output_dim
        self.num_nodes = num_nodes
        gcn1_hidden = 16  # GCNConv(in_channels, 16) is hard-coded in the spec

        # ---- normalized adjacency Â = D^-1/2 (A + I) D^-1/2 (GCNConv gcn_norm) ----
        ei = jnp.asarray(edge_index, dtype=jnp.int32)               # (E, 2) (src, dst)
        src, dst = ei[:, 0], ei[:, 1]
        a = jnp.zeros((num_nodes, num_nodes), jnp.float32).at[dst, src].add(1.0)
        a = jnp.minimum(a, 1.0) + jnp.eye(num_nodes, dtype=jnp.float32)  # + self-loops
        deg = jnp.sum(a, axis=1)
        dinv = jnp.where(deg > 0, 1.0 / jnp.sqrt(deg), 0.0)
        self.adj = dinv[:, None] * a * dinv[None, :]

        # ---- parameters (uniform ±1/sqrt(fan_in), like torch Linear) --------------
        def linear_init(k, fan_in, fan_out):
            bound = 1.0 / (fan_in ** 0.5)
            kw, kb = jax.random.split(k)
            w = jax.random.uniform(kw, (fan_in, fan_out), jnp.float32, -bound, bound)
            b = jax.random.uniform(kb, (fan_out,), jnp.float32, -bound, bound)
            return w, b

        key, k1, k2 = jax.random.split(key, 3)
        self.wg1, self.bg1 = linear_init(k1, state_dim, gcn1_hidden)
        self.wg2, self.bg2 = linear_init(k2, gcn1_hidden, gnn_hidden_dim)

        self.mlp_params = []
        in_dim = gnn_hidden_dim + action_dim
        for h in self.mlp_hidden_dims:
            key, k = jax.random.split(key)
            self.mlp_params.append(linear_init(k, in_dim, h))
            in_dim = h
        key, k = jax.random.split(key)
        self.w_out, self.b_out = linear_init(k, in_dim, output_dim)

        # ---- padded, kernel-facing copies (lane-dense layouts) --------------------
        P = _LANE
        self.n_pad = _round_up(num_nodes, _SUBLANE)
        self.adj_pad = _pad2(self.adj, self.n_pad, self.n_pad)
        self.wg1_p = _pad2(self.wg1, P, P)
        self.bg1_p = _pad2(self.bg1[None, :], 1, P)
        self.wg2_p = _pad2(self.wg2, P, P)
        self.bg2_p = _pad2(self.bg2[None, :], 1, P)

        w1, b1 = self.mlp_params[0]
        self.w1g_p = _pad2(w1[:gnn_hidden_dim, :], P, P)   # rows that multiply gnn output
        self.w1a_p = _pad2(w1[gnn_hidden_dim:, :], P, P)   # rows that multiply the action
        self.b1_p = _pad2(b1[None, :], 1, P)
        self.extra_p = []
        for (w, b) in self.mlp_params[1:]:
            self.extra_p.append(_pad2(w, P, P))
            self.extra_p.append(_pad2(b[None, :], 1, P))
        self.wout_p = _pad2(self.w_out, P, P)
        self.bout_p = _pad2(self.b_out[None, :], 1, P)
        self.n_extra = len(self.mlp_params) - 1

    def __call__(self, state, action):
        # Mirror the torch forward's shape handling: a (1, N, F) state is the same
        # graph with a singleton batch dim -> squeeze it back to (N, F).
        if state.ndim == 3:
            state = state.reshape(state.shape[-2], state.shape[-1])
        n = state.shape[0]
        x_p = _pad2(state.astype(jnp.float32), self.n_pad, _LANE)
        a_p = _pad2(action.astype(jnp.float32), self.n_pad, _LANE)

        inputs = [self.adj_pad, x_p, a_p,
                  self.wg1_p, self.bg1_p, self.wg2_p, self.bg2_p,
                  self.w1g_p, self.w1a_p, self.b1_p,
                  *self.extra_p,
                  self.wout_p, self.bout_p]

        out_pad = pl.pallas_call(
            functools.partial(_gcn_mlp_kernel, self.n_extra),
            # no grid: single invocation, every operand is a whole-array VMEM block
            out_shape=jax.ShapeDtypeStruct((self.n_pad, _LANE), jnp.float32),
        )(*inputs)
        return out_pad[:n, : self.output_dim]

    # pure-JAX reference (unpadded math) for correctness checking
    def reference(self, state, action):
        if state.ndim == 3:
            state = state.reshape(state.shape[-2], state.shape[-1])
        h = self.adj @ (state @ self.wg1) + self.bg1
        h = jnp.maximum(h, 0.0)
        g = self.adj @ (h @ self.wg2) + self.bg2
        x = jnp.concatenate([g, action], axis=1)
        for (w, b) in self.mlp_params:
            x = jnp.maximum(x @ w + b, 0.0)
        return x @ self.w_out + self.b_out


if __name__ == "__main__":
    num_nodes = 16
    state_dim = 4
    action_dim = 4
    gnn_hidden_dim = 32
    mlp_hidden_dims = [32, 32]
    output_dim = 8

    # undirected ring graph, given as an (E, 2) list of (src, dst) pairs
    edge_index = [(i, (i + 1) % num_nodes) for i in range(num_nodes)]
    edge_index += [((i + 1) % num_nodes, i) for i in range(num_nodes)]

    key = jax.random.PRNGKey(0)
    key, kp, ks, ka = jax.random.split(key, 4)
    model = GCNMLPPallas(state_dim, action_dim, gnn_hidden_dim, mlp_hidden_dims,
                         output_dim, edge_index, num_nodes, kp)

    state = jax.random.normal(ks, (num_nodes, state_dim), jnp.float32)
    action = jax.random.normal(ka, (num_nodes, action_dim), jnp.float32)

    out = jax.block_until_ready(model(state, action))
    assert out.shape == (num_nodes, output_dim), out.shape

    ref = jax.block_until_ready(model.reference(state, action))
    max_err = float(jnp.max(jnp.abs(out - ref)))
    assert jnp.allclose(out, ref, rtol=1e-3, atol=1e-3), max_err

    print("KERNEL_OK")
</pallas_src>

<mosaic_0001>
module attributes {stable_mosaic.version = 11 : i64} {
  func.func @_gcn_mlp_kernel(%arg0: memref<16x16xf32, #tpu.memory_space<vmem>>, %arg1: memref<16x128xf32, #tpu.memory_space<vmem>>, %arg2: memref<16x128xf32, #tpu.memory_space<vmem>>, %arg3: memref<128x128xf32, #tpu.memory_space<vmem>>, %arg4: memref<1x128xf32, #tpu.memory_space<vmem>>, %arg5: memref<128x128xf32, #tpu.memory_space<vmem>>, %arg6: memref<1x128xf32, #tpu.memory_space<vmem>>, %arg7: memref<128x128xf32, #tpu.memory_space<vmem>>, %arg8: memref<128x128xf32, #tpu.memory_space<vmem>>, %arg9: memref<1x128xf32, #tpu.memory_space<vmem>>, %arg10: memref<128x128xf32, #tpu.memory_space<vmem>>, %arg11: memref<1x128xf32, #tpu.memory_space<vmem>>, %arg12: memref<128x128xf32, #tpu.memory_space<vmem>>, %arg13: memref<1x128xf32, #tpu.memory_space<vmem>>, %arg14: memref<16x128xf32, #tpu.memory_space<vmem>>) attributes {dimension_semantics = [], scalar_prefetch = 0 : i64, scratch_operands = 0 : i64, tpu.core_type = #tpu.core_type<tc>} {
    %c0 = arith.constant 0 : index
    %c0_0 = arith.constant 0 : index
    %0 = vector.load %arg0[%c0, %c0_0] : memref<16x16xf32, #tpu.memory_space<vmem>>, vector<16x16xf32>
    %c0_1 = arith.constant 0 : index
    %c0_2 = arith.constant 0 : index
    %1 = vector.load %arg1[%c0_1, %c0_2] : memref<16x128xf32, #tpu.memory_space<vmem>>, vector<16x128xf32>
    %c0_3 = arith.constant 0 : index
    %c0_4 = arith.constant 0 : index
    %2 = vector.load %arg3[%c0_3, %c0_4] : memref<128x128xf32, #tpu.memory_space<vmem>>, vector<128x128xf32>
    %cst = arith.constant dense<0.000000e+00> : vector<16x128xf32>
    %3 = tpu.matmul %1, %2, %cst {dimension_numbers = #tpu.dot_dimension_numbers<[1], [0], [0], [1], [0, 0, 1, 1], [], []>, precision = #tpu.contract_precision<fp32>} : vector<16x128xf32>, vector<128x128xf32>, vector<16x128xf32> -> vector<16x128xf32>
    %cst_5 = arith.constant dense<0.000000e+00> : vector<16x128xf32>
    %4 = tpu.matmul %0, %3, %cst_5 {dimension_numbers = #tpu.dot_dimension_numbers<[1], [0], [0], [1], [0, 0, 1, 1], [], []>, precision = #tpu.contract_precision<fp32>} : vector<16x16xf32>, vector<16x128xf32>, vector<16x128xf32> -> vector<16x128xf32>
    %c0_6 = arith.constant 0 : index
    %c0_7 = arith.constant 0 : index
    %5 = vector.load %arg4[%c0_6, %c0_7] : memref<1x128xf32, #tpu.memory_space<vmem>>, vector<1x128xf32>
    %6 = vector.broadcast %5 : vector<1x128xf32> to vector<16x128xf32>
    %7 = arith.addf %4, %6 : vector<16x128xf32>
    %cst_8 = arith.constant 0.000000e+00 : f32
    %8 = vector.broadcast %cst_8 : f32 to vector<16x128xf32>
    %9 = arith.maximumf %7, %8 : vector<16x128xf32>
    %c0_9 = arith.constant 0 : index
    %c0_10 = arith.constant 0 : index
    %10 = vector.load %arg5[%c0_9, %c0_10] : memref<128x128xf32, #tpu.memory_space<vmem>>, vector<128x128xf32>
    %cst_11 = arith.constant dense<0.000000e+00> : vector<16x128xf32>
    %11 = tpu.matmul %9, %10, %cst_11 {dimension_numbers = #tpu.dot_dimension_numbers<[1], [0], [0], [1], [0, 0, 1, 1], [], []>, precision = #tpu.contract_precision<fp32>} : vector<16x128xf32>, vector<128x128xf32>, vector<16x128xf32> -> vector<16x128xf32>
    %cst_12 = arith.constant dense<0.000000e+00> : vector<16x128xf32>
    %12 = tpu.matmul %0, %11, %cst_12 {dimension_numbers = #tpu.dot_dimension_numbers<[1], [0], [0], [1], [0, 0, 1, 1], [], []>, precision = #tpu.contract_precision<fp32>} : vector<16x16xf32>, vector<16x128xf32>, vector<16x128xf32> -> vector<16x128xf32>
    %c0_13 = arith.constant 0 : index
    %c0_14 = arith.constant 0 : index
    %13 = vector.load %arg6[%c0_13, %c0_14] : memref<1x128xf32, #tpu.memory_space<vmem>>, vector<1x128xf32>
    %14 = vector.broadcast %13 : vector<1x128xf32> to vector<16x128xf32>
    %15 = arith.addf %12, %14 : vector<16x128xf32>
    %c0_15 = arith.constant 0 : index
    %c0_16 = arith.constant 0 : index
    %16 = vector.load %arg7[%c0_15, %c0_16] : memref<128x128xf32, #tpu.memory_space<vmem>>, vector<128x128xf32>
    %cst_17 = arith.constant dense<0.000000e+00> : vector<16x128xf32>
    %17 = tpu.matmul %15, %16, %cst_17 {dimension_numbers = #tpu.dot_dimension_numbers<[1], [0], [0], [1], [0, 0, 1, 1], [], []>, precision = #tpu.contract_precision<fp32>} : vector<16x128xf32>, vector<128x128xf32>, vector<16x128xf32> -> vector<16x128xf32>
    %c0_18 = arith.constant 0 : index
    %c0_19 = arith.constant 0 : index
    %18 = vector.load %arg2[%c0_18, %c0_19] : memref<16x128xf32, #tpu.memory_space<vmem>>, vector<16x128xf32>
    %c0_20 = arith.constant 0 : index
    %c0_21 = arith.constant 0 : index
    %19 = vector.load %arg8[%c0_20, %c0_21] : memref<128x128xf32, #tpu.memory_space<vmem>>, vector<128x128xf32>
    %cst_22 = arith.constant dense<0.000000e+00> : vector<16x128xf32>
    %20 = tpu.matmul %18, %19, %cst_22 {dimension_numbers = #tpu.dot_dimension_numbers<[1], [0], [0], [1], [0, 0, 1, 1], [], []>, precision = #tpu.contract_precision<fp32>} : vector<16x128xf32>, vector<128x128xf32>, vector<16x128xf32> -> vector<16x128xf32>
    %21 = arith.addf %17, %20 : vector<16x128xf32>
    %c0_23 = arith.constant 0 : index
    %c0_24 = arith.constant 0 : index
    %22 = vector.load %arg9[%c0_23, %c0_24] : memref<1x128xf32, #tpu.memory_space<vmem>>, vector<1x128xf32>
    %23 = vector.broadcast %22 : vector<1x128xf32> to vector<16x128xf32>
    %24 = arith.addf %21, %23 : vector<16x128xf32>
    %cst_25 = arith.constant 0.000000e+00 : f32
    %25 = vector.broadcast %cst_25 : f32 to vector<16x128xf32>
    %26 = arith.maximumf %24, %25 : vector<16x128xf32>
    %c0_26 = arith.constant 0 : index
    %c0_27 = arith.constant 0 : index
    %27 = vector.load %arg10[%c0_26, %c0_27] : memref<128x128xf32, #tpu.memory_space<vmem>>, vector<128x128xf32>
    %cst_28 = arith.constant dense<0.000000e+00> : vector<16x128xf32>
    %28 = tpu.matmul %26, %27, %cst_28 {dimension_numbers = #tpu.dot_dimension_numbers<[1], [0], [0], [1], [0, 0, 1, 1], [], []>, precision = #tpu.contract_precision<fp32>} : vector<16x128xf32>, vector<128x128xf32>, vector<16x128xf32> -> vector<16x128xf32>
    %c0_29 = arith.constant 0 : index
    %c0_30 = arith.constant 0 : index
    %29 = vector.load %arg11[%c0_29, %c0_30] : memref<1x128xf32, #tpu.memory_space<vmem>>, vector<1x128xf32>
    %30 = vector.broadcast %29 : vector<1x128xf32> to vector<16x128xf32>
    %31 = arith.addf %28, %30 : vector<16x128xf32>
    %cst_31 = arith.constant 0.000000e+00 : f32
    %32 = vector.broadcast %cst_31 : f32 to vector<16x128xf32>
    %33 = arith.maximumf %31, %32 : vector<16x128xf32>
    %c0_32 = arith.constant 0 : index
    %c0_33 = arith.constant 0 : index
    %34 = vector.load %arg12[%c0_32, %c0_33] : memref<128x128xf32, #tpu.memory_space<vmem>>, vector<128x128xf32>
    %cst_34 = arith.constant dense<0.000000e+00> : vector<16x128xf32>
    %35 = tpu.matmul %33, %34, %cst_34 {dimension_numbers = #tpu.dot_dimension_numbers<[1], [0], [0], [1], [0, 0, 1, 1], [], []>, precision = #tpu.contract_precision<fp32>} : vector<16x128xf32>, vector<128x128xf32>, vector<16x128xf32> -> vector<16x128xf32>
    %c0_35 = arith.constant 0 : index
    %c0_36 = arith.constant 0 : index
    %36 = vector.load %arg13[%c0_35, %c0_36] : memref<1x128xf32, #tpu.memory_space<vmem>>, vector<1x128xf32>
    %37 = vector.broadcast %36 : vector<1x128xf32> to vector<16x128xf32>
    %38 = arith.addf %35, %37 : vector<16x128xf32>
    %c0_37 = arith.constant 0 : index
    %c0_38 = arith.constant 0 : index
    %39 = vector.load %arg14[%c0_37, %c0_38] : memref<16x128xf32, #tpu.memory_space<vmem>>, vector<16x128xf32>
    tpu.vector_store %arg14[%c0_37, %c0_38], %38 {strides = array<i32>} : memref<16x128xf32, #tpu.memory_space<vmem>>, vector<16x128xf32>,
    return
  }
}

</mosaic_0001>

<bundles_post_ra>
// kernel: tpu_custom_call.1
= control target key start
LH: loop header
LB: loop body
LE: loop exit
PB: predicated region body
PF: predicated region fallthrough
CT: control target
= control target key end

     0   :  { %19 = vsyncpa [#allocation3], 0  ;;  %s10032_s0 = inlined_call_operand.hbm [shape: f32[16,16], index: 0, kind: input, shape index: {}]   ;;  %s10033_s1 = inlined_call_operand.hbm [shape: f32[16,128], index: 1, kind: input, shape index: {}]   ;;  %s10034_s2 = inlined_call_operand.hbm [shape: f32[16,128], index: 2, kind: input, shape index: {}]   ;;  %s10035_s3 = inlined_call_operand.hbm [shape: f32[128,128], index: 3, kind: input, shape index: {}]   ;;  %s10036_s4 = inlined_call_operand.vmem [shape: f32[1,128], index: 4, kind: input, shape index: {}]   ;;  %s10037_s5 = inlined_call_operand.hbm [shape: f32[128,128], index: 5, kind: input, shape index: {}]   ;;  %s10038_s6 = inlined_call_operand.vmem [shape: f32[1,128], index: 6, kind: input, shape index: {}]   ;;  %s10039_s7 = inlined_call_operand.hbm [shape: f32[128,128], index: 7, kind: input, shape index: {}]   ;;  %s10040_s8 = inlined_call_operand.hbm [shape: f32[128,128], index: 8, kind: input, shape index: {}]   ;;  %s10041_s9 = inlined_call_operand.vmem [shape: f32[1,128], index: 9, kind: input, shape index: {}]   ;;  %s10042_s10 = inlined_call_operand.hbm [shape: f32[128,128], index: 10, kind: input, shape index: {}]   ;;  %s10043_s11 = inlined_call_operand.vmem [shape: f32[1,128], index: 11, kind: input, shape index: {}]   ;;  %s10044_s12 = inlined_call_operand.hbm [shape: f32[128,128], index: 12, kind: input, shape index: {}]   ;;  %s10045_s13 = inlined_call_operand.vmem [shape: f32[1,128], index: 13, kind: input, shape index: {}]   ;;  %s10046_s14 = inlined_call_operand.hbm [shape: f32[16,128], index: 14, kind: output, shape index: {}]  }
   0x1   :  { %20 = vsyncpa [#allocation6], 0 }
   0x2   :  { %21 = vsyncpa [#allocation9], 0 }
   0x3   :  { %22 = vsyncpa [#allocation12], 0 }
   0x4   :  { %23 = vsyncpa [#allocation15], 0 }
   0x5   :  { %24 = vsyncpa [#allocation4], 0  ;;  %s7722_s29 = smov [#allocation5]   ;;  %s7723_s15 = smov [#allocation8]  }
   0x6   :  { %s42_s30 = sshll.u32 %s7722_s29, 4  ;;  %s66_s16 = sshll.u32 %s7723_s15, 4  ;;  %s43_s30 = int_to_ptr.vmem [resolvable:$true] %s42_s30  ;;  %s67_s16 = int_to_ptr.vmem [resolvable:$true] %s66_s16 }
   0x7   :  { %s7518_s17 = scalar_lea.vmem %s43_s30, 256  ;;  %p7523_p1 = scmp.lt.s32.totalorder %s43_s30, %s43_s30 }
   0x8   :  { %p7519_p0 = scmp.ne.s32.totalorder %s43_s30, %s7518_s17  ;;  %p7524_p2 = scmp.lt.s32.totalorder %s7518_s17, %s7518_s17 }
   0xa   :  { %p7525_p3 = por %p7524_p2, %p7523_p1 }
   0xc   :  { %p7526_p4 = pnand %p7525_p3, %p7519_p0 }
   0xe   :  { %7529 = shalt.err (!%p7526_p4)
}
   0xf   :  { %s7724_s18 = smov 128   ;;  %s7725_s19 = smov 8  }
  0x10   :  { %48 = dma.hbm_to_vmem [thread:$0]  %s10033_s1, 256, %s43_s30, [#allocation6], %s7724_s18, %s7724_s18, %s7725_s19  }
  0x11   :  { %s7538_s22 = scalar_lea.vmem %s67_s16, 2048  ;;  %p7543_p6 = scmp.lt.s32.totalorder %s67_s16, %s67_s16 }
  0x12   :  { %p7539_p5 = scmp.ne.s32.totalorder %s67_s16, %s7538_s22  ;;  %p7544_p7 = scmp.lt.s32.totalorder %s7538_s22, %s7538_s22 }
  0x14   :  { %p7545_p8 = por %p7544_p7, %p7543_p6 }
  0x16   :  { %p7546_p9 = pnand %p7545_p8, %p7539_p5 }
  0x18   :  { %7549 = shalt.err (!%p7546_p9)
}
  0x19   :  { %72 = dma.hbm_to_vmem [thread:$0]  %s10035_s3, 2048, %s67_s16, [#allocation9], %s7724_s18, %s7724_s18, %s7725_s19  }
  0x1a   :  { %s7726_s25 = smov [#allocation11]   ;;  %s7727_s27 = smov [#allocation14]  }
  0x1b   :  { %s94_s26 = sshll.u32 %s7726_s25, 4  ;;  %s120_s28 = sshll.u32 %s7727_s27, 4  ;;  %s95_s26 = int_to_ptr.vmem [resolvable:$true] %s94_s26  ;;  %s121_s28 = int_to_ptr.vmem [resolvable:$true] %s120_s28 }
  0x1c   :  { %s7558_s1 = scalar_lea.vmem %s95_s26, 2048  ;;  %p7563_p11 = scmp.lt.s32.totalorder %s95_s26, %s95_s26 }
  0x1d   :  { %p7559_p10 = scmp.ne.s32.totalorder %s95_s26, %s7558_s1  ;;  %p7564_p12 = scmp.lt.s32.totalorder %s7558_s1, %s7558_s1 }
  0x1f   :  { %p7565_p13 = por %p7564_p12, %p7563_p11 }
  0x21   :  { %p7566_p0 = pnand %p7565_p13, %p7559_p10 }
  0x23   :  { %7569 = shalt.err (!%p7566_p0)
}
  0x24   :  { %100 = dma.hbm_to_vmem [thread:$0]  %s10039_s7, 2048, %s95_s26, [#allocation12], %s7724_s18, %s7724_s18, %s7725_s19  }
  0x25   :  { %s7578_s3 = scalar_lea.vmem %s121_s28, 2048  ;;  %p7583_p2 = scmp.lt.s32.totalorder %s121_s28, %s121_s28 }
  0x26   :  { %p7579_p1 = scmp.ne.s32.totalorder %s121_s28, %s7578_s3  ;;  %p7584_p3 = scmp.lt.s32.totalorder %s7578_s3, %s7578_s3 }
  0x28   :  { %p7585_p4 = por %p7584_p3, %p7583_p2 }
  0x2a   :  { %p7586_p5 = pnand %p7585_p4, %p7579_p1 }
  0x2c   :  { %7589 = shalt.err (!%p7586_p5)
}
  0x2d   :  { %126 = dma.hbm_to_vmem [thread:$0]  %s10042_s10, 2048, %s121_s28, [#allocation15], %s7724_s18, %s7724_s18, %s7725_s19  }
  0x2e   :  { %s7728_s17 = smov [#allocation2]   ;;  %s7729_s21 = smov [#allocation7]  }
  0x2f   :  { %s30_s20 = sshll.u32 %s7728_s17, 4  ;;  %s54_s22 = sshll.u32 %s7729_s21, 4  ;;  %s31_s20 = int_to_ptr.vmem [resolvable:$true] %s30_s20  ;;  %s55_s22 = int_to_ptr.vmem [resolvable:$true] %s54_s22 }
  0x30   :  { %s7598_s7 = scalar_lea.vmem %s31_s20, 256  ;;  %p7603_p7 = scmp.lt.s32.totalorder %s31_s20, %s31_s20 }
  0x31   :  { %p7599_p6 = scmp.ne.s32.totalorder %s31_s20, %s7598_s7  ;;  %p7604_p8 = scmp.lt.s32.totalorder %s7598_s7, %s7598_s7 }
  0x33   :  { %p7605_p9 = por %p7604_p8, %p7603_p7 }
  0x35   :  { %p7606_p10 = pnand %p7605_p9, %p7599_p6 }
  0x37   :  { %7609 = shalt.err (!%p7606_p10)
}
  0x38   :  { %36 = dma.hbm_to_vmem [thread:$0]  %s10032_s0, 256, %s31_s20, [#allocation3], %s7724_s18, %s7724_s18, %s7725_s19  }
  0x39   :  { %s7618_s10 = scalar_lea.vmem %s55_s22, 256  ;;  %p7623_p12 = scmp.lt.s32.totalorder %s55_s22, %s55_s22 }
  0x3a   :  { %p7619_p11 = scmp.ne.s32.totalorder %s55_s22, %s7618_s10  ;;  %p7624_p13 = scmp.lt.s32.totalorder %s7618_s10, %s7618_s10 }
  0x3c   :  { %p7625_p0 = por %p7624_p13, %p7623_p12 }
  0x3e   :  { %p7626_p1 = pnand %p7625_p0, %p7619_p11 }
  0x40   :  { %7629 = shalt.err (!%p7626_p1)
}
  0x41   :  { %60 = dma.hbm_to_vmem [thread:$0]  %s10034_s2, 256, %s55_s22, [#allocation6], %s7724_s18, %s7724_s18, %s7725_s19  }
  0x42   :  { %s7730_s27 = smov [#allocation10]   ;;  %s7731_s1 = smov [#allocation13]  }
  0x43   :  { %s80_s28 = sshll.u32 %s7730_s27, 4  ;;  %s106_s29 = sshll.u32 %s7731_s1, 4  ;;  %s81_s28 = int_to_ptr.vmem [resolvable:$true] %s80_s28  ;;  %s107_s29 = int_to_ptr.vmem [resolvable:$true] %s106_s29 }
  0x44   :  { %s7638_s0 = scalar_lea.vmem %s81_s28, 2048  ;;  %p7643_p3 = scmp.lt.s32.totalorder %s81_s28, %s81_s28 }
  0x45   :  { %p7639_p2 = scmp.ne.s32.totalorder %s81_s28, %s7638_s0  ;;  %p7644_p4 = scmp.lt.s32.totalorder %s7638_s0, %s7638_s0 }
  0x47   :  { %p7645_p5 = por %p7644_p4, %p7643_p3 }
  0x49   :  { %p7646_p6 = pnand %p7645_p5, %p7639_p2 }
  0x4b   :  { %7649 = shalt.err (!%p7646_p6)
}
  0x4c   :  { %86 = dma.hbm_to_vmem [thread:$0]  %s10037_s5, 2048, %s81_s28, [#allocation9], %s7724_s18, %s7724_s18, %s7725_s19  }
  0x4d   :  { %s7658_s2 = scalar_lea.vmem %s107_s29, 2048  ;;  %p7663_p8 = scmp.lt.s32.totalorder %s107_s29, %s107_s29 }
  0x4e   :  { %p7659_p7 = scmp.ne.s32.totalorder %s107_s29, %s7658_s2  ;;  %p7664_p9 = scmp.lt.s32.totalorder %s7658_s2, %s7658_s2 }
  0x50   :  { %p7665_p10 = por %p7664_p9, %p7663_p8 }
  0x52   :  { %p7666_p11 = pnand %p7665_p10, %p7659_p7 }
  0x54   :  { %7669 = shalt.err (!%p7666_p11)
}
  0x55   :  { %112 = dma.hbm_to_vmem [thread:$0]  %s10040_s8, 2048, %s107_s29, [#allocation12], %s7724_s18, %s7724_s18, %s7725_s19  }
  0x56   :  { %s7732_s17 = smov [#allocation16]  }
  0x57   :  { %s134_s20 = sshll.u32 %s7732_s17, 4  ;;  %s135_s20 = int_to_ptr.vmem [resolvable:$true] %s134_s20 }
  0x58   :  { %s7678_s21 = scalar_lea.vmem %s135_s20, 2048  ;;  %p7683_p13 = scmp.lt.s32.totalorder %s135_s20, %s135_s20 }
  0x59   :  { %p7679_p12 = scmp.ne.s32.totalorder %s135_s20, %s7678_s21  ;;  %p7684_p0 = scmp.lt.s32.totalorder %s7678_s21, %s7678_s21 }
  0x5b   :  { %p7685_p1 = por %p7684_p0, %p7683_p13 }
  0x5d   :  { %p7686_p2 = pnand %p7685_p1, %p7679_p12 }
  0x5f   :  { %7689 = shalt.err (!%p7686_p2)
}
  0x60   :  { %140 = dma.hbm_to_vmem [thread:$0]  %s10044_s12, 2048, %s135_s20, [#allocation15], %s7724_s18, %s7724_s18, %s7725_s19  }
  0x61   :  { %7710 = dma.done.wait [#allocation3], 256  }
  0x62   :  { %7711 = vsyncadd [#allocation3], 4294967040 }
  0x63   :  { %7712 = dma.done.wait [#allocation6], 512  }
  0x64   :  { %7713 = vsyncadd [#allocation6], 4294966784 }
  0x65   :  { %7714 = dma.done.wait [#allocation9], 4096  }
  0x66   :  { %7715 = vsyncadd [#allocation9], 4294963200 }
  0x67   :  { %7716 = dma.done.wait [#allocation12], 4096  }
  0x68   :  { %7717 = vsyncadd [#allocation12], 4294963200 }
  0x69   :  { %7718 = dma.done.wait [#allocation15], 4096  }
  0x6a   :  { %7719 = vsyncadd [#allocation15], 4294963200  ;;  %v189_v0 = vld [vmem:[#allocation8 + $0x78] sm:$0xff]  ;;  %v188_v1 = vld [vmem:[#allocation8 + $0x70] sm:$0xff]  ;;  %vm881_vm0 = vcmask 130048  }
  0x6b   :  { %v187_v2 = vld [vmem:[#allocation8 + $0x68] sm:$0xff]  ;;  %v7863_v3 = vand.u32 4294901760, %v189_v0  ;;  %v7865_v4 = vand.u32 4294901760, %v188_v1  ;;  %v186_v6 = vld [vmem:[#allocation8 + $0x60] sm:$0xff]  ;;  %v185_v7 = vld [vmem:[#allocation8 + $0x58] sm:$0xff] }
  0x6c   :  { %v7867_v5 = vand.u32 4294901760, %v187_v2  ;;  %v184_v8 = vld [vmem:[#allocation8 + $0x50] sm:$0xff]  ;;  %v7869_v9 = vand.u32 4294901760, %v186_v6  ;;  %v7871_v10 = vand.u32 4294901760, %v185_v7  ;;  %v183_v12 = vld [vmem:[#allocation8 + $0x48] sm:$0xff]  ;;  %v182_v13 = vld [vmem:[#allocation8 + $0x40] sm:$0xff] }
  0x6d   :  { %v7873_v11 = vand.u32 4294901760, %v184_v8  ;;  %6154 = vmatprep.subr.mxu0 %v7863_v3  ;;  %v7877_v14 = vsub.f32 %v189_v0, %v7863_v3  ;;  %v7880_v15 = vsub.f32 %v188_v1, %v7865_v4  ;;  %v7882_v16 = vand.u32 4294901760, %v183_v12  ;;  %v181_v18 = vld [vmem:[#allocation8 + $0x38] sm:$0xff]  ;;  %v180_v25 = vld [vmem:[#allocation8 + $0x30] sm:$0xff]  ;;  %v179_v35 = vld [vmem:[#allocation8 + $0x28] sm:$0xff] }
  0x6e   :  { %v7885_v17 = vsub.f32 %v187_v2, %v7867_v5  ;;  %6155 = vmatpush3.msra.mxu0 %v7863_v3  ;;  %v7889_v19 = vsub.f32 %v186_v6, %v7869_v9  ;;  %v7892_v20 = vsub.f32 %v185_v7, %v7871_v10  ;;  %v7904_v24 = vand.u32 4294901760, %v182_v13  ;;  %v178_v40 = vld [vmem:[#allocation8 + $0x20] sm:$0xff]  ;;  %v177_v48 = vld [vmem:[#allocation8 + $0x18] sm:$0xff]  ;;  %v173_v54 = vld [vmem:[#allocation5 + $0x8] sm:$0xff] }
  0x6f   :  { %6156 = vmatprep.subr.mxu0 %v7865_v4  ;;  %v7896_v21 = vand.u32 4294901760, %v7877_v14  ;;  %v7899_v22 = vand.u32 4294901760, %v7880_v15  ;;  %v7910_v27 = vand.u32 4294901760, %v181_v18  ;;  %v7916_v29 = vsub.f32 %v184_v8, %v7873_v11  ;;  %v172_v49 = vld [vmem:[#allocation5] sm:$0xff]  ;;  %v176_v59 = vld [vmem:[#allocation8 + $0x10] sm:$0xff]  ;;  %v175_v2 = vld [vmem:[#allocation8 + $0x8] sm:$0xff] }
  0x70   :  { %v7902_v23 = vand.u32 4294901760, %v7885_v17  ;;  %6157 = vmatpush3.msra.mxu0 %v7865_v4  ;;  %v7908_v26 = vand.u32 4294901760, %v7889_v19  ;;  %v7913_v28 = vand.u32 4294901760, %v7892_v20  ;;  %v7926_v33 = vsub.f32 %v183_v12, %v7882_v16 }
  0x71   :  { %6158 = vmatprep.subr.mxu0 %v7867_v5  ;;  %v295_v30 = vsub.f32 %v7877_v14, %v7896_v21  ;;  %v302_v31 = vsub.f32 %v7880_v15, %v7899_v22  ;;  %v7929_v34 = vand.u32 4294901760, %v180_v25  ;;  %v7935_v39 = vand.u32 4294901760, %v7916_v29 }
  0x72   :  { %v309_v32 = vsub.f32 %v7885_v17, %v7902_v23  ;;  %6159 = vmatpush3.msra.mxu0 %v7867_v5  ;;  %v316_v38 = vsub.f32 %v7889_v19, %v7908_v26  ;;  %v323_v41 = vsub.f32 %v7892_v20, %v7913_v28  ;;  %v7941_v42 = vand.u32 4294901760, %v7926_v33 }
  0x73   :  { %6160 = vmatprep.subr.mxu0 %v7869_v9  ;;  %v296_v36 = vand.u32 4294901760, %v295_v30  ;;  %v303_v37 = vand.u32 4294901760, %v302_v31  ;;  %v7944_v43 = vsub.f32 %v182_v13, %v7904_v24  ;;  %v7947_v45 = vand.u32 4294901760, %v179_v35 }
  0x74   :  { %6161 = vmatpush3.msra.mxu0 %v7869_v9  ;;  %v310_v44 = vand.u32 4294901760, %v309_v32  ;;  %v7950_v46 = vsub.f32 %v181_v18, %v7910_v27  ;;  %v7953_v47 = vand.u32 4294901760, %v178_v40  ;;  %v317_v50 = vand.u32 4294901760, %v316_v38  ;;  %v174_v18 = vld [vmem:[#allocation8] sm:$0xff] }
  0x75   :  { %6162 = vmatprep.subr.mxu0 %v7871_v10  ;;  %6189 = vmatprep.subr.mxu1 %v296_v36  ;;  %v330_v51 = vsub.f32 %v7916_v29, %v7935_v39  ;;  %v7959_v52 = vand.u32 4294901760, %v7944_v43  ;;  %v7962_v53 = vsub.f32 %v180_v25, %v7929_v34  ;;  %v324_v55 = vand.u32 4294901760, %v323_v41 }
  0x76   :  { %6163 = vmatpush3.msra.mxu0 %v7871_v10  ;;  %6190 = vmatpush3.msra.mxu1 %v296_v36  ;;  %v337_v56 = vsub.f32 %v7926_v33, %v7941_v42  ;;  %v7968_v57 = vand.u32 4294901760, %v177_v48  ;;  %v7971_v58 = vand.u32 4294901760, %v7950_v46  ;;  %v7974_v60 = vsub.f32 %v179_v35, %v7947_v45 }
  0x77   :  { %6164 = vmatprep.subr.mxu0 %v7873_v11  ;;  %6191 = vmatprep.subr.mxu1 %v303_v37  ;;  %v7976_v61 = vand.u32 4294901760, %v172_v49  ;;  %v7979_v62 = vand.u32 4294901760, %v173_v54  ;;  %v331_v63 = vand.u32 4294901760, %v330_v51  ;;  %v344_v0 = vsub.f32 %v7944_v43, %v7959_v52 }
  0x78   :  { %6165 = vmatpush3.msra.mxu0 %v7873_v11  ;;  %6192 = vmatpush3.msra.mxu1 %v303_v37  ;;  %v7985_v1 = vand.u32 4294901760, %v7962_v53  ;;  %v7988_v6 = vsub.f32 %v178_v40, %v7953_v47  ;;  %v338_v7 = vand.u32 4294901760, %v337_v56  ;;  %v7991_v8 = vand.u32 4294901760, %v176_v59 }
  0x79   :  { %6166 = vmatprep.subr.mxu0 %v7882_v16  ;;  %6193 = vmatprep.subr.mxu1 %v310_v44  ;;  %v351_v12 = vsub.f32 %v7950_v46, %v7971_v58  ;;  %v7997_v13 = vand.u32 4294901760, %v7974_v60  ;;  %v8000_v25 = vsub.f32 %v172_v49, %v7976_v61  ;;  %v8003_v30 = vsub.f32 %v177_v48, %v7968_v57 }
  0x7a   :  { %6167 = vmatpush3.msra.mxu0 %v7882_v16  ;;  %6194 = vmatpush3.msra.mxu1 %v310_v44  ;;  %v8006_v31 = vand.u32 4294901760, %v175_v2  ;;  %v8009_v32 = vsub.f32 %v173_v54, %v7979_v62  ;;  %v345_v35 = vand.u32 4294901760, %v344_v0  ;;  %v358_v36 = vsub.f32 %v7962_v53, %v7985_v1 }
  0x7b   :  { %6168 = vmatprep.subr.mxu0 %v7904_v24  ;;  %6195 = vmatprep.subr.mxu1 %v317_v50  ;;  %v8015_v37 = vand.u32 4294901760, %v7988_v6  ;;  %v8018_v38 = vand.u32 4294901760, %v174_v18  ;;  %v8021_v40 = vsub.f32 %v176_v59, %v7991_v8  ;;  %v352_v41 = vand.u32 4294901760, %v351_v12 }
  0x7c   :  { %6169 = vmatpush3.msra.mxu0 %v7904_v24  ;;  %6196 = vmatpush3.msra.mxu1 %v317_v50  ;;  %v365_v44 = vsub.f32 %v7974_v60, %v7997_v13  ;;  %v10048_v48 = vand.u32 4294901760, %v8000_v25  ;;  %v8028_v49 = vand.u32 4294901760, %v8003_v30  ;;  %v10047_v50 = vand.u32 4294901760, %v8009_v32 }
  0x7d   :  { %6170 = vmatprep.subr.mxu0 %v7910_v27  ;;  %6197 = vmatprep.subr.mxu1 %v324_v55  ;;  %v8033_v51 = vsub.f32 %v175_v2, %v8006_v31  ;;  %v359_v54 = vand.u32 4294901760, %v358_v36  ;;  %v8040_v56 = vand.u32 4294901760, %v8021_v40  ;;  %v8043_v59 = vsub.f32 %v174_v18, %v8018_v38 }
  0x7e   :  { %6171 = vmatpush3.msra.mxu0 %v7910_v27  ;;  %6198 = vmatpush3.msra.mxu1 %v324_v55  ;;  %v372_v55 = vsub.f32 %v7988_v6, %v8015_v37  ;;  %v274_v0 = vsub.f32 %v8000_v25, %v10048_v48  ;;  %v379_v2 = vsub.f32 %v8003_v30, %v8028_v49 }
  0x7f   :  { %6172 = vmatprep.subr.mxu0 %v7929_v34  ;;  %6199 = vmatprep.subr.mxu1 %v331_v63  ;;  %v8056_v12 = vand.u32 4294901760, %v8033_v51  ;;  %v8063_v36 = vand.u32 4294901760, %v8043_v59 }
  0x80   :  { %6173 = vmatpush3.msra.mxu0 %v7929_v34  ;;  %6200 = vmatpush3.msra.mxu1 %v331_v63  ;;  %v366_v63 = vand.u32 4294901760, %v365_v44  ;;  %v373_v18 = vand.u32 4294901760, %v372_v55  ;;  %v380_v44 = vand.u32 4294901760, %v379_v2 }
  0x81   :  { %6174 = vmatprep.subr.mxu0 %v7947_v45  ;;  %6201 = vmatprep.subr.mxu1 %v338_v7  ;;  %v393_v55 = vsub.f32 %v8033_v51, %v8056_v12  ;;  %v400_v48 = vsub.f32 %v8043_v59, %v8063_v36 }
  0x82   :  { %6175 = vmatpush3.msra.mxu0 %v7947_v45  ;;  %6202 = vmatpush3.msra.mxu1 %v338_v7  ;;  %v284_v7 = vsub.f32 %v8009_v32, %v10047_v50 }
  0x83   :  { %6176 = vmatprep.subr.mxu0 %v7953_v47  ;;  %6203 = vmatprep.subr.mxu1 %v345_v35 }
  0x84   :  { %6177 = vmatpush3.msra.mxu0 %v7953_v47  ;;  %6204 = vmatpush3.msra.mxu1 %v345_v35  ;;  %v386_v35 = vsub.f32 %v8021_v40, %v8040_v56  ;;  %v285_v50 = vand.u32 4294901760, %v284_v7 }
  0x85   :  { %6178 = vmatprep.subr.mxu0 %v7968_v57  ;;  %6205 = vmatprep.subr.mxu1 %v352_v41 }
  0x86   :  { %6179 = vmatpush3.msra.mxu0 %v7968_v57  ;;  %6206 = vmatpush3.msra.mxu1 %v352_v41  ;;  %v275_v41 = vand.u32 4294901760, %v274_v0  ;;  %v401_v0 = vand.u32 4294901760, %v400_v48  ;;  %v1405_v48 = vld [vmem:[#allocation10 + $0x68] sm:$0xff] }
  0x87   :  { %6180 = vmatprep.subr.mxu0 %v7991_v8  ;;  %6207 = vmatprep.subr.mxu1 %v359_v54  ;;  %v8258_v2 = vand.u32 4294901760, %v1405_v48 }
  0x88   :  { %6181 = vmatpush3.msra.mxu0 %v7991_v8  ;;  %6208 = vmatpush3.msra.mxu1 %v359_v54  ;;  %v387_v54 = vand.u32 4294901760, %v386_v35 }
  0x89   :  { %6182 = vmatprep.subr.mxu0 %v8006_v31  ;;  %6209 = vmatprep.subr.mxu1 %v366_v63 }
  0x8a   :  { %6183 = vmatpush3.msra.mxu0 %v8006_v31  ;;  %6210 = vmatpush3.msra.mxu1 %v366_v63  ;;  %v394_v63 = vand.u32 4294901760, %v393_v55 }
  0x8b   :  { %6184 = vmatprep.subr.mxu0 %v8018_v38  ;;  %6211 = vmatprep.subr.mxu1 %v373_v18 }
  0x8c   :  { %6185 = vmatpush3.msra.mxu0 %v8018_v38  ;;  %6212 = vmatpush3.msra.mxu1 %v373_v18  ;;  %v1403_v18 = vld [vmem:[#allocation10 + $0x58] sm:$0xff] }
  0x8d   :  { %6186 = vmatprep.mubr.f32.mxu0 %v275_v41  ;;  %6213 = vmatprep.subr.mxu1 %v380_v44 }
  0x8e   :  { %6224 = vmatprep.subr.mxu0 %v7877_v14  ;;  %6187 = vmatmul.mubr.f32.vlgmr.msra.gmra.mxu0 %v285_v50 }
  0x8f   :  { %6214 = vmatpush3.msra.mxu1 %v380_v44  ;;  %6225 = vmatpush3.msra.mxu0 %v7877_v14  ;;  %v10129_v14 = vand.u32 4294901760, %v8000_v25  ;;  %v1402_v44 = vld [vmem:[#allocation10 + $0x50] sm:$0xff] }
  0x90   :  { %6215 = vmatprep.subr.mxu1 %v387_v54  ;;  %6226 = vmatprep.subr.mxu0 %v7880_v15 }
  0x91   :  { %6216 = vmatpush3.msra.mxu1 %v387_v54  ;;  %6227 = vmatpush3.msra.mxu0 %v7880_v15  ;;  %v10130_v15 = vand.u32 4294901760, %v8009_v32  ;;  %v8270_v54 = vsub.f32 %v1405_v48, %v8258_v2 }
  0x92   :  { %6217 = vmatprep.subr.mxu1 %v394_v63  ;;  %6228 = vmatprep.subr.mxu0 %v7885_v17 }
  0x93   :  { %6218 = vmatpush3.msra.mxu1 %v394_v63  ;;  %6229 = vmatpush3.msra.mxu0 %v7885_v17  ;;  %v8272_v63 = vand.u32 4294901760, %v1403_v18 }
  0x94   :  { %6219 = vmatprep.subr.mxu1 %v401_v0  ;;  %6230 = vmatprep.subr.mxu0 %v7889_v19 }
  0x95   :  { %6220 = vmatpush3.msra.mxu1 %v401_v0  ;;  %6221 = vmatprep.mubr.f32.mxu1 %v7976_v61 }
  0x96   :  { %6231 = vmatpush3.msra.mxu0 %v7889_v19  ;;  %6222 = vmatmul.mubr.f32.vlgmr.msra.gmra.mxu1 %v7979_v62  ;;  %v171_v19 = vld [vmem:[#allocation2 + $0x8] sm:$0xff] }
  0x97   :  { %6232 = vmatprep.subr.mxu0 %v7892_v20  ;;  %6259 = vmatprep.subr.mxu1 %v7863_v3 }
  0x98   :  { %6233 = vmatpush3.msra.mxu0 %v7892_v20  ;;  %6260 = vmatpush3.msra.mxu1 %v7863_v3 }
  0x99   :  { %6234 = vmatprep.subr.mxu0 %v7916_v29  ;;  %6261 = vmatprep.subr.mxu1 %v7865_v4 }
  0x9a   :  { %6235 = vmatpush3.msra.mxu0 %v7916_v29  ;;  %6262 = vmatpush3.msra.mxu1 %v7865_v4 }
  0x9b   :  { %6236 = vmatprep.subr.mxu0 %v7926_v33  ;;  %6263 = vmatprep.subr.mxu1 %v7867_v5 }
  0x9c   :  { %6237 = vmatpush3.msra.mxu0 %v7926_v33  ;;  %6264 = vmatpush3.msra.mxu1 %v7867_v5 }
  0x9d   :  { %6238 = vmatprep.subr.mxu0 %v7944_v43  ;;  %6265 = vmatprep.subr.mxu1 %v7869_v9 }
  0x9e   :  { %6239 = vmatpush3.msra.mxu0 %v7944_v43  ;;  %6266 = vmatpush3.msra.mxu1 %v7869_v9 }
  0x9f   :  { %6240 = vmatprep.subr.mxu0 %v7950_v46  ;;  %6267 = vmatprep.subr.mxu1 %v7871_v10 }
  0xa0   :  { %6241 = vmatpush3.msra.mxu0 %v7950_v46  ;;  %6268 = vmatpush3.msra.mxu1 %v7871_v10 }
  0xa1   :  { %6242 = vmatprep.subr.mxu0 %v7962_v53  ;;  %6269 = vmatprep.subr.mxu1 %v7873_v11 }
  0xa2   :  { %6243 = vmatpush3.msra.mxu0 %v7962_v53  ;;  %6270 = vmatpush3.msra.mxu1 %v7873_v11 }
  0xa3   :  { %6244 = vmatprep.subr.mxu0 %v7974_v60  ;;  %6271 = vmatprep.subr.mxu1 %v7882_v16 }
  0xa4   :  { %6245 = vmatpush3.msra.mxu0 %v7974_v60  ;;  %6272 = vmatpush3.msra.mxu1 %v7882_v16 }
  0xa5   :  { %6246 = vmatprep.subr.mxu0 %v7988_v6  ;;  %6273 = vmatprep.subr.mxu1 %v7904_v24 }
  0xa6   :  { %6247 = vmatpush3.msra.mxu0 %v7988_v6  ;;  %6274 = vmatpush3.msra.mxu1 %v7904_v24 }
  0xa7   :  { %6248 = vmatprep.subr.mxu0 %v8003_v30  ;;  %6275 = vmatprep.subr.mxu1 %v7910_v27 }
  0xa8   :  { %6249 = vmatpush3.msra.mxu0 %v8003_v30  ;;  %6276 = vmatpush3.msra.mxu1 %v7910_v27 }
  0xa9   :  { %6250 = vmatprep.subr.mxu0 %v8021_v40  ;;  %6277 = vmatprep.subr.mxu1 %v7929_v34 }
  0xaa   :  { %6251 = vmatpush3.msra.mxu0 %v8021_v40  ;;  %6278 = vmatpush3.msra.mxu1 %v7929_v34 }
  0xab   :  { %6252 = vmatprep.subr.mxu0 %v8033_v51  ;;  %6279 = vmatprep.subr.mxu1 %v7947_v45 }
  0xac   :  { %6253 = vmatpush3.msra.mxu0 %v8033_v51  ;;  %6280 = vmatpush3.msra.mxu1 %v7947_v45 }
  0xad   :  { %6254 = vmatprep.subr.mxu0 %v8043_v59  ;;  %6281 = vmatprep.subr.mxu1 %v7953_v47 }
  0xae   :  { %6255 = vmatpush3.msra.mxu0 %v8043_v59  ;;  %6256 = vmatprep.mubr.f32.mxu0 %v8000_v25 }
  0xaf   :  { %6282 = vmatpush3.msra.mxu1 %v7953_v47  ;;  %6257 = vmatmul.mubr.f32.vlgmr.msra.gmra.mxu0 %v8009_v32  ;;  %v1406_v32 = vld [vmem:[#allocation10 + $0x70] sm:$0xff] }
  0xb0   :  { %6283 = vmatprep.subr.mxu1 %v7968_v57  ;;  %6294 = vmatprep.subr.mxu0 %v7896_v21 }
  0xb1   :  { %6284 = vmatpush3.msra.mxu1 %v7968_v57  ;;  %6295 = vmatpush3.msra.mxu0 %v7896_v21 }
  0xb2   :  { %6285 = vmatprep.subr.mxu1 %v7991_v8  ;;  %6296 = vmatprep.subr.mxu0 %v7899_v22 }
  0xb3   :  { %6286 = vmatpush3.msra.mxu1 %v7991_v8  ;;  %6297 = vmatpush3.msra.mxu0 %v7899_v22  ;;  %v886_v22 = vsel %vm881_vm0, %v171_v19, 0 }
  0xb4   :  { %6287 = vmatprep.subr.mxu1 %v8006_v31  ;;  %6298 = vmatprep.subr.mxu0 %v7902_v23 }
  0xb5   :  { %6288 = vmatpush3.msra.mxu1 %v8006_v31  ;;  %6299 = vmatpush3.msra.mxu0 %v7902_v23 }
  0xb6   :  { %6289 = vmatprep.subr.mxu1 %v8018_v38  ;;  %6300 = vmatprep.subr.mxu0 %v7908_v26 }
  0xb7   :  { %6290 = vmatpush3.msra.mxu1 %v8018_v38  ;;  %6291 = vmatprep.mubr.f32.mxu1 %v10129_v14 }
  0xb8   :  { %6301 = vmatpush3.msra.mxu0 %v7908_v26  ;;  %6292 = vmatmul.mubr.f32.vlgmr.msra.gmra.mxu1 %v10130_v15  ;;  %v8280_v15 = vand.u32 4294901760, %v1402_v44 }
  0xb9   :  { %6302 = vmatprep.subr.mxu0 %v7913_v28  ;;  %6329 = vmatprep.subr.mxu1 %v7863_v3 }
  0xba   :  { %6303 = vmatpush3.msra.mxu0 %v7913_v28  ;;  %6330 = vmatpush3.msra.mxu1 %v7863_v3  ;;  %v170_v3 = vld [vmem:[#allocation2] sm:$0xff] }
  0xbb   :  { %6304 = vmatprep.subr.mxu0 %v7935_v39  ;;  %6331 = vmatprep.subr.mxu1 %v7865_v4 }
  0xbc   :  { %6305 = vmatpush3.msra.mxu0 %v7935_v39  ;;  %6332 = vmatpush3.msra.mxu1 %v7865_v4  ;;  %v883_v4 = vsel %vm881_vm0, %v170_v3, 0 }
  0xbd   :  { %6306 = vmatprep.subr.mxu0 %v7941_v42  ;;  %6333 = vmatprep.subr.mxu1 %v7867_v5 }
  0xbe   :  { %6307 = vmatpush3.msra.mxu0 %v7941_v42  ;;  %6334 = vmatpush3.msra.mxu1 %v7867_v5  ;;  %v8213_v5 = vand.u32 4294901760, %v883_v4 }
  0xbf   :  { %6308 = vmatprep.subr.mxu0 %v7959_v52  ;;  %6335 = vmatprep.subr.mxu1 %v7869_v9 }
  0xc0   :  { %6309 = vmatpush3.msra.mxu0 %v7959_v52  ;;  %6336 = vmatpush3.msra.mxu1 %v7869_v9  ;;  %10131 = vst [vmem:[#allocation24_spill] sm:$0xff] %v8213_v5  ;;  %v8216_v9 = vsub.f32 %v883_v4, %v8213_v5  ;;  %v8288_v4 = vand.u32 4294901760, %v8270_v54 }
  0xc1   :  { %6310 = vmatprep.subr.mxu0 %v7971_v58  ;;  %6337 = vmatprep.subr.mxu1 %v7871_v10 }
  0xc2   :  { %6311 = vmatpush3.msra.mxu0 %v7971_v58  ;;  %6338 = vmatpush3.msra.mxu1 %v7871_v10  ;;  %10132 = vst [vmem:[#allocation25_spill] sm:$0xff] %v8216_v9  ;;  %v8220_v10 = vand.u32 4294901760, %v8216_v9 }
  0xc3   :  { %6312 = vmatprep.subr.mxu0 %v7985_v1  ;;  %6339 = vmatprep.subr.mxu1 %v7873_v11 }
  0xc4   :  { %6313 = vmatpush3.msra.mxu0 %v7985_v1  ;;  %6340 = vmatpush3.msra.mxu1 %v7873_v11  ;;  %10133 = vst [vmem:[#allocation26_spill] sm:$0xff] %v8220_v10  ;;  %v958_v11 = vsub.f32 %v8216_v9, %v8220_v10 }
  0xc5   :  { %6314 = vmatprep.subr.mxu0 %v7997_v13  ;;  %6341 = vmatprep.subr.mxu1 %v7882_v16 }
  0xc6   :  { %6315 = vmatpush3.msra.mxu0 %v7997_v13  ;;  %6342 = vmatpush3.msra.mxu1 %v7882_v16  ;;  %v8224_v16 = vand.u32 4294901760, %v958_v11  ;;  %v1407_v13 = vld [vmem:[#allocation10 + $0x78] sm:$0xff]  ;;  %v8291_v11 = vsub.f32 %v1403_v18, %v8272_v63 }
  0xc7   :  { %6316 = vmatprep.subr.mxu0 %v8015_v37  ;;  %6343 = vmatprep.subr.mxu1 %v7904_v24 }
  0xc8   :  { %6317 = vmatpush3.msra.mxu0 %v8015_v37  ;;  %6344 = vmatpush3.msra.mxu1 %v7904_v24  ;;  %10134 = vst [vmem:[#allocation27_spill] sm:$0xff] %v8224_v16  ;;  %v8227_v24 = vand.u32 4294901760, %v886_v22  ;;  %v8246_v37 = vand.u32 4294901760, %v1407_v13 }
  0xc9   :  { %6318 = vmatprep.subr.mxu0 %v8028_v49  ;;  %6345 = vmatprep.subr.mxu1 %v7910_v27 }
  0xca   :  { %6319 = vmatpush3.msra.mxu0 %v8028_v49  ;;  %6346 = vmatpush3.msra.mxu1 %v7910_v27  ;;  %10135 = vst [vmem:[#allocation28_spill] sm:$0xff] %v8227_v24  ;;  %v8230_v33 = vsub.f32 %v886_v22, %v8227_v24  ;;  %v8251_v49 = vand.u32 4294901760, %v1406_v32  ;;  %v8256_v59 = vsub.f32 %v1407_v13, %v8246_v37 }
  0xcb   :  { %6320 = vmatprep.subr.mxu0 %v8040_v56  ;;  %6347 = vmatprep.subr.mxu1 %v7929_v34  ;;  %v1527_v22 = vsub.f32 %v8270_v54, %v8288_v4 }
  0xcc   :  { %6321 = vmatpush3.msra.mxu0 %v8040_v56  ;;  %6348 = vmatpush3.msra.mxu1 %v7929_v34  ;;  %10136 = vst [vmem:[#allocation29_spill] sm:$0xff] %v8230_v33  ;;  %v1404_v56 = vld [vmem:[#allocation10 + $0x60] sm:$0xff]  ;;  %v8261_v35 = vsub.f32 %v1406_v32, %v8251_v49  ;;  %v8267_v55 = vand.u32 4294901760, %v8256_v59  ;;  %v1397_v32 = vld [vmem:[#allocation10 + $0x28] sm:$0xff] }
  0xcd   :  { %6322 = vmatprep.subr.mxu0 %v8056_v12  ;;  %6349 = vmatprep.subr.mxu1 %v7947_v45 }
  0xce   :  { %6323 = vmatpush3.msra.mxu0 %v8056_v12  ;;  %6350 = vmatpush3.msra.mxu1 %v7947_v45  ;;  %v8275_v0 = vand.u32 4294901760, %v8261_v35  ;;  %v1513_v3 = vsub.f32 %v8256_v59, %v8267_v55 }
  0xcf   :  { %6324 = vmatprep.subr.mxu0 %v8063_v36  ;;  %6351 = vmatprep.subr.mxu1 %v7953_v47 }
  0xd0   :  { %6325 = vmatpush3.msra.mxu0 %v8063_v36  ;;  %6326 = vmatprep.mubr.f32.mxu0 %v7976_v61  ;;  %v8263_v36 = vand.u32 4294901760, %v1404_v56 }
  0xd1   :  { %6352 = vmatpush3.msra.mxu1 %v7953_v47  ;;  %6327 = vmatmul.mubr.f32.vlgmr.msra.gmra.mxu0 %v7979_v62  ;;  %v8233_v47 = vand.u32 4294901760, %v8230_v33 }
  0xd2   :  { %6353 = vmatprep.subr.mxu1 %v7968_v57  ;;  %6361 = vmatprep.mubr.f32.mxu1 %v7976_v61  ;;  %v8278_v14 = vsub.f32 %v1404_v56, %v8263_v36  ;;  %v1396_v56 = vld [vmem:[#allocation10 + $0x20] sm:$0xff] }
  0xd3   :  { %6354 = vmatpush3.msra.mxu1 %v7968_v57  ;;  %6368 = vmatprep.mubr.f32.mxu0 %v8224_v16  ;;  %10137 = vst [vmem:[#allocation30_spill] sm:$0xff] %v8233_v47 }
  0xd4   :  { %6355 = vmatprep.subr.mxu1 %v7991_v8  ;;  %v8300_v19 = vand.u32 4294901760, %v8278_v14 }
  0xd5   :  { %6356 = vmatpush3.msra.mxu1 %v7991_v8 }
  0xd6   :  { %6357 = vmatprep.subr.mxu1 %v8006_v31 }
  0xd7   :  { %6358 = vmatpush3.msra.mxu1 %v8006_v31 }
  0xd8   :  { %6359 = vmatprep.subr.mxu1 %v8018_v38 }
  0xd9   :  { %6360 = vmatpush3.msra.mxu1 %v8018_v38 }
  0xda   :  { %6362 = vmatmul.mubr.f32.vlgmr.msra.gmra.mxu1 %v7979_v62  ;;  %v968_v62 = vsub.f32 %v8230_v33, %v8233_v47 }
  0xdb   :  { %6375 = vmatprep.mubr.f32.mxu1 %v8213_v5 }
  0xdc   :  { %v8243_v31 = vand.u32 4294901760, %v968_v62 }
  0xde   :  { %10138 = vst [vmem:[#allocation31_spill] sm:$0xff] %v8243_v31 }
 0x14e   :  { %v6188_v17 = vpop.f32.mrf.mxu0 }
 0x150   :  { %v277_v20 = vpop.f32.mrf.mxu0 }
 0x156   :  { %v6223_v21 = vpop.f32.mrf.mxu1 }
 0x157   :  { %v445_v29 = vadd.f32 %v6223_v21, %v6188_v17  ;;  %v1520_v17 = vsub.f32 %v8261_v35, %v8275_v0  ;;  %v1514_v21 = vand.u32 4294901760, %v1513_v3  ;;  %v1395_v3 = vld [vmem:[#allocation10 + $0x18] sm:$0xff] }
 0x158   :  { %v438_v26 = vpop.f32.mrf.mxu1 }
 0x159   :  { %v439_v39 = vadd.f32 %v438_v26, %v277_v20  ;;  %v8303_v20 = vsub.f32 %v1402_v44, %v8280_v15  ;;  %v1521_v26 = vand.u32 4294901760, %v1520_v17 }
 0x16f   :  { %v6258_v23 = vpop.f32.mrf.mxu0 }
 0x170   :  { %v556_v42 = vadd.f32 %v6258_v23, %v445_v29  ;;  %v8312_v23 = vand.u32 4294901760, %v8291_v11  ;;  %v1528_v29 = vand.u32 4294901760, %v1527_v22 }
 0x171   :  { %v548_v27 = vpop.f32.mrf.mxu0 }
 0x172   :  { %v549_v45 = vadd.f32 %v548_v27, %v439_v39  ;;  %v1534_v27 = vsub.f32 %v8278_v14, %v8300_v19 }
 0x174   :  { %v1535_v39 = vand.u32 4294901760, %v1534_v27 }
 0x178   :  { %v6293_v28 = vpop.f32.mrf.mxu1 }
 0x179   :  { %v653_v46 = vadd.f32 %v6293_v28, %v556_v42  ;;  %v8321_v28 = vand.u32 4294901760, %v8303_v20 }
 0x17a   :  { %v644_v43 = vpop.f32.mrf.mxu1 }
 0x17b   :  { %v645_v53 = vadd.f32 %v644_v43, %v549_v45  ;;  %v1548_v42 = vsub.f32 %v8303_v20, %v8321_v28 }
 0x17d   :  { %v1549_v45 = vand.u32 4294901760, %v1548_v42 }
 0x191   :  { %v6328_v34 = vpop.f32.mrf.mxu0 }
 0x192   :  { %v778_v57 = vadd.f32 %v6328_v34, %v653_v46  ;;  %v1541_v34 = vsub.f32 %v8291_v11, %v8312_v23  ;;  %v1401_v46 = vld [vmem:[#allocation10 + $0x48] sm:$0xff] }
 0x193   :  { %v771_v52 = vpop.f32.mrf.mxu0 }
 0x194   :  { %v772_v60 = vadd.f32 %v771_v52, %v645_v53  ;;  %v1542_v43 = vand.u32 4294901760, %v1541_v34  ;;  %v8339_v52 = vand.u32 4294901760, %v1401_v46  ;;  %v1400_v53 = vld [vmem:[#allocation10 + $0x40] sm:$0xff] }
 0x19a   :  { %v6363_v58 = vpop.f32.mrf.mxu1 }
 0x19b   :  { %v871_v61 = vadd.f32 %v6363_v58, %v778_v57  ;;  %v8342_v57 = vsub.f32 %v1401_v46, %v8339_v52  ;;  %v8344_v58 = vand.u32 4294901760, %v1400_v53  ;;  %v1393_v46 = vld [vmem:[#allocation10 + $0x8] sm:$0xff] }
 0x19c   :  { %v864_v1 = vpop.f32.mrf.mxu1 }
 0x19d   :  { %v8237_v6 = vand.u32 4294901760, %v871_v61  ;;  %v865_v8 = vadd.f32 %v864_v1, %v772_v60  ;;  %v1399_v60 = vld [vmem:[#allocation10 + $0x38] sm:$0xff]  ;;  %v8352_v62 = vsub.f32 %v1400_v53, %v8344_v58 }
 0x19e   :  { %v8354_v1 = vand.u32 4294901760, %v1399_v60 }
 0x19f   :  { %v1005_v25 = vsub.f32 %v871_v61, %v8237_v6  ;;  %v8240_v30 = vand.u32 4294901760, %v865_v8  ;;  %6364 = vmatprep.subr.mxu0 %v8237_v6  ;;  %v8349_v61 = vand.u32 4294901760, %v8342_v57  ;;  %v8361_v13 = vand.u32 4294901760, %v8352_v62 }
 0x1a0   :  { %6365 = vmatpush3.msra.mxu0 %v8237_v6 }
 0x1a1   :  { %v1012_v38 = vsub.f32 %v865_v8, %v8240_v30  ;;  %6366 = vmatprep.subr.mxu0 %v8240_v30  ;;  %v1006_v40 = vand.u32 4294901760, %v1005_v25  ;;  %v1555_v8 = vsub.f32 %v8342_v57, %v8349_v61  ;;  %10139 = vst [vmem:[#allocation32_spill] sm:$0xff] %v8361_v13 }
 0x1a2   :  { %6367 = vmatpush3.msra.mxu0 %v8240_v30 }
 0x1a3   :  { %6378 = vmatprep.subr.mxu0 %v1005_v25  ;;  %6369 = vmatmul.mubr.f32.vlgmr.msra.gmra.mxu0 %v8243_v31  ;;  %v1007_v50 = vsub.f32 %v1005_v25, %v1006_v40  ;;  %v1013_v51 = vand.u32 4294901760, %v1012_v38 }
 0x1a4   :  { %6379 = vmatpush3.msra.mxu0 %v1005_v25  ;;  %6382 = vmatprep.mubr.f32.mxu0 %v8216_v9  ;;  %v8364_v25 = vsub.f32 %v1399_v60, %v8354_v1 }
 0x1a5   :  { %6380 = vmatprep.subr.mxu0 %v1012_v38  ;;  %v1008_v7 = vand.u32 4294901760, %v1007_v50  ;;  %v1014_v12 = vsub.f32 %v1012_v38, %v1013_v51 }
 0x1a6   :  { %6381 = vmatpush3.msra.mxu0 %v1012_v38  ;;  %v1556_v38 = vand.u32 4294901760, %v1555_v8  ;;  %v8373_v48 = vand.u32 4294901760, %v8364_v25  ;;  %v8425_v8 = vand.u32 4294901760, %v1393_v46 }
 0x1a7   :  { %6371 = vmatprep.subr.mxu1 %v1008_v7  ;;  %6392 = vmatprep.subr.mxu0 %v1006_v40  ;;  %v1015_v41 = vand.u32 4294901760, %v1014_v12 }
 0x1a8   :  { %6372 = vmatpush3.msra.mxu1 %v1008_v7  ;;  %6383 = vmatmul.mubr.f32.vlgmr.msra.gmra.mxu0 %v8230_v33  ;;  %10140 = vst [vmem:[#allocation33_spill] sm:$0xff] %v8373_v48  ;;  %v1569_v12 = vsub.f32 %v8364_v25, %v8373_v48 }
 0x1a9   :  { %6393 = vmatpush3.msra.mxu0 %v1006_v40  ;;  %6373 = vmatprep.subr.mxu1 %v1015_v41  ;;  %v1562_v40 = vsub.f32 %v8352_v62, %v8361_v13 }
 0x1aa   :  { %6394 = vmatprep.subr.mxu0 %v1013_v51  ;;  %6374 = vmatpush3.msra.mxu1 %v1015_v41  ;;  %v8387_v41 = vand.u32 4294901760, %v1396_v56  ;;  %v1570_v17 = vand.u32 4294901760, %v1569_v12  ;;  %v8435_v12 = vsub.f32 %v1393_v46, %v8425_v8 }
 0x1ab   :  { %6395 = vmatpush3.msra.mxu0 %v1013_v51  ;;  %6376 = vmatmul.mubr.f32.vlgmr.msra.gmra.mxu1 %v8227_v24  ;;  %v8379_v51 = vand.u32 4294901760, %v1397_v32  ;;  %v1563_v7 = vand.u32 4294901760, %v1562_v40 }
 0x1ac   :  { %6385 = vmatprep.subr.mxu1 %v8237_v6  ;;  %6389 = vmatprep.mubr.f32.mxu1 %v8220_v10  ;;  %v8396_v22 = vsub.f32 %v1396_v56, %v8387_v41 }
 0x1ad   :  { %6386 = vmatpush3.msra.mxu1 %v8237_v6  ;;  %6396 = vmatprep.mubr.f32.mxu0 %v8213_v5  ;;  %v8390_v44 = vsub.f32 %v1397_v32, %v8379_v51 }
 0x1ae   :  { %6387 = vmatprep.subr.mxu1 %v8240_v30  ;;  %6397 = vmatmul.mubr.f32.vlgmr.msra.gmra.mxu0 %v8227_v24 }
 0x1af   :  { %6388 = vmatpush3.msra.mxu1 %v8240_v30  ;;  %6406 = vmatprep.subr.mxu0 %v8246_v37  ;;  %v8402_v27 = vand.u32 4294901760, %v8390_v44 }
 0x1b0   :  { %6390 = vmatmul.mubr.f32.vlgmr.msra.gmra.mxu1 %v8233_v47  ;;  %6399 = vmatprep.subr.mxu1 %v8237_v6 }
 0x1b1   :  { %6400 = vmatpush3.msra.mxu1 %v8237_v6  ;;  %6403 = vmatprep.mubr.f32.mxu1 %v8213_v5  ;;  %v1398_v6 = vld [vmem:[#allocation10 + $0x30] sm:$0xff]  ;;  %10142 = vst [vmem:[#allocation35_spill] sm:$0xff] %v8402_v27 }
 0x1b2   :  { %6401 = vmatprep.subr.mxu1 %v8240_v30  ;;  %6407 = vmatpush3.msra.mxu0 %v8246_v37 }
 0x1b3   :  { %6402 = vmatpush3.msra.mxu1 %v8240_v30  ;;  %6408 = vmatprep.subr.mxu0 %v8251_v49  ;;  %v8366_v30 = vand.u32 4294901760, %v1398_v6 }
 0x1b4   :  { %6404 = vmatmul.mubr.f32.vlgmr.msra.gmra.mxu1 %v8227_v24  ;;  %6441 = vmatprep.subr.mxu1 %v1514_v21 }
 0x1b5   :  { %6442 = vmatpush3.msra.mxu1 %v1514_v21  ;;  %6409 = vmatpush3.msra.mxu0 %v8251_v49  ;;  %v8376_v50 = vsub.f32 %v1398_v6, %v8366_v30 }
 0x1b6   :  { %6443 = vmatprep.subr.mxu1 %v1521_v26  ;;  %6410 = vmatprep.subr.mxu0 %v8258_v2 }
 0x1b7   :  { %6444 = vmatpush3.msra.mxu1 %v1521_v26  ;;  %6411 = vmatpush3.msra.mxu0 %v8258_v2  ;;  %v8385_v18 = vand.u32 4294901760, %v8376_v50  ;;  %v8398_v26 = vand.u32 4294901760, %v1395_v3 }
 0x1b8   :  { %6445 = vmatprep.subr.mxu1 %v1528_v29  ;;  %6412 = vmatprep.subr.mxu0 %v8263_v36 }
 0x1b9   :  { %6446 = vmatpush3.msra.mxu1 %v1528_v29  ;;  %6413 = vmatpush3.msra.mxu0 %v8263_v36  ;;  %10141 = vst [vmem:[#allocation34_spill] sm:$0xff] %v8385_v18  ;;  %v1576_v21 = vsub.f32 %v8376_v50, %v8385_v18  ;;  %v1394_v29 = vld [vmem:[#allocation10 + $0x10] sm:$0xff]  ;;  %v8409_v42 = vsub.f32 %v1395_v3, %v8398_v26 }
 0x1ba   :  { %6447 = vmatprep.subr.mxu1 %v1535_v39  ;;  %6414 = vmatprep.subr.mxu0 %v8272_v63 }
 0x1bb   :  { %6448 = vmatpush3.msra.mxu1 %v1535_v39  ;;  %6415 = vmatpush3.msra.mxu0 %v8272_v63  ;;  %v1577_v34 = vand.u32 4294901760, %v1576_v21  ;;  %v8406_v39 = vand.u32 4294901760, %v8396_v22  ;;  %v8420_v60 = vand.u32 4294901760, %v8409_v42 }
 0x1bc   :  { %6449 = vmatprep.subr.mxu1 %v1542_v43  ;;  %6416 = vmatprep.subr.mxu0 %v8280_v15 }
 0x1bd   :  { %6450 = vmatpush3.msra.mxu1 %v1542_v43  ;;  %6417 = vmatpush3.msra.mxu0 %v8280_v15  ;;  %10143 = vst [vmem:[#allocation36_spill] sm:$0xff] %v8406_v39  ;;  %v8411_v43 = vand.u32 4294901760, %v1394_v29  ;;  %v1590_v53 = vsub.f32 %v8396_v22, %v8406_v39  ;;  %10144 = vst [vmem:[#allocation37_spill] sm:$0xff] %v8420_v60  ;;  %v1597_v56 = vsub.f32 %v8409_v42, %v8420_v60 }
 0x1be   :  { %6451 = vmatprep.subr.mxu1 %v1549_v45  ;;  %6418 = vmatprep.subr.mxu0 %v8339_v52 }
 0x1bf   :  { %6452 = vmatpush3.msra.mxu1 %v1549_v45  ;;  %6419 = vmatpush3.msra.mxu0 %v8339_v52  ;;  %v1583_v45 = vsub.f32 %v8390_v44, %v8402_v27  ;;  %v8423_v6 = vsub.f32 %v1394_v29, %v8411_v43  ;;  %v1591_v40 = vand.u32 4294901760, %v1590_v53  ;;  %v8444_v29 = vand.u32 4294901760, %v8435_v12 }
 0x1c0   :  { %6420 = vmatprep.subr.mxu0 %v8344_v58  ;;  %6453 = vmatprep.subr.mxu1 %v1556_v38 }
 0x1c1   :  { %6421 = vmatpush3.msra.mxu0 %v8344_v58  ;;  %6454 = vmatpush3.msra.mxu1 %v1556_v38  ;;  %v1584_v32 = vand.u32 4294901760, %v1583_v45  ;;  %v1392_v38 = vld [vmem:[#allocation10] sm:$0xff]  ;;  %10146 = vst [vmem:[#allocation39_spill] sm:$0xff] %v8444_v29  ;;  %v1611_v46 = vsub.f32 %v8435_v12, %v8444_v29 }
 0x1c2   :  { %6422 = vmatprep.subr.mxu0 %v8354_v1  ;;  %6455 = vmatprep.subr.mxu1 %v1563_v7  ;;  %v8438_v3 = vand.u32 4294901760, %v1392_v38 }
 0x1c3   :  { %6423 = vmatpush3.msra.mxu0 %v8354_v1  ;;  %6456 = vmatpush3.msra.mxu1 %v1563_v7  ;;  %v8432_v7 = vand.u32 4294901760, %v8423_v6 }
 0x1c4   :  { %6424 = vmatprep.subr.mxu0 %v8366_v30  ;;  %6457 = vmatprep.subr.mxu1 %v1570_v17 }
 0x1c5   :  { %6425 = vmatpush3.msra.mxu0 %v8366_v30  ;;  %6458 = vmatpush3.msra.mxu1 %v1570_v17  ;;  %10145 = vst [vmem:[#allocation38_spill] sm:$0xff] %v8432_v7  ;;  %v1598_v17 = vand.u32 4294901760, %v1597_v56  ;;  %v1604_v21 = vsub.f32 %v8423_v6, %v8432_v7 }
 0x1c6   :  { %6426 = vmatprep.subr.mxu0 %v8379_v51  ;;  %6459 = vmatprep.subr.mxu1 %v1577_v34 }
 0x1c7   :  { %6427 = vmatpush3.msra.mxu0 %v8379_v51  ;;  %6460 = vmatpush3.msra.mxu1 %v1577_v34  ;;  %v8448_v34 = vsub.f32 %v1392_v38, %v8438_v3  ;;  %v1605_v45 = vand.u32 4294901760, %v1604_v21  ;;  %v5453_v21 = vld [vmem:[%s10036_s4] ss:$0 sm:$0xff] }
 0x1c8   :  { %6428 = vmatprep.subr.mxu0 %v8387_v41  ;;  %6461 = vmatprep.subr.mxu1 %v1584_v32 }
 0x1c9   :  { %6429 = vmatpush3.msra.mxu0 %v8387_v41  ;;  %6462 = vmatpush3.msra.mxu1 %v1584_v32  ;;  %v8455_v53 = vand.u32 4294901760, %v8448_v34  ;;  %v1612_v32 = vand.u32 4294901760, %v1611_v46 }
 0x1ca   :  { %6430 = vmatprep.subr.mxu0 %v8398_v26  ;;  %6463 = vmatprep.subr.mxu1 %v1591_v40 }
 0x1cb   :  { %6431 = vmatpush3.msra.mxu0 %v8398_v26  ;;  %6464 = vmatpush3.msra.mxu1 %v1591_v40  ;;  %10147 = vst [vmem:[#allocation40_spill] sm:$0xff] %v8455_v53  ;;  %v1618_v38 = vsub.f32 %v8448_v34, %v8455_v53 }
 0x1cc   :  { %6432 = vmatprep.subr.mxu0 %v8411_v43  ;;  %6465 = vmatprep.subr.mxu1 %v1598_v17 }
 0x1cd   :  { %6433 = vmatpush3.msra.mxu0 %v8411_v43  ;;  %6466 = vmatpush3.msra.mxu1 %v1598_v17  ;;  %v1619_v40 = vand.u32 4294901760, %v1618_v38 }
 0x1ce   :  { %6434 = vmatprep.subr.mxu0 %v8425_v8  ;;  %6467 = vmatprep.subr.mxu1 %v1605_v45 }
 0x1cf   :  { %6435 = vmatpush3.msra.mxu0 %v8425_v8  ;;  %6468 = vmatpush3.msra.mxu1 %v1605_v45 }
 0x1d0   :  { %6436 = vmatprep.subr.mxu0 %v8438_v3  ;;  %6469 = vmatprep.subr.mxu1 %v1612_v32 }
 0x1d1   :  { %6437 = vmatpush3.msra.mxu0 %v8438_v3  ;;  %6470 = vmatpush3.msra.mxu1 %v1612_v32 }
 0x1d2   :  { %6476 = vmatprep.subr.mxu0 %v8256_v59  ;;  %6471 = vmatprep.subr.mxu1 %v1619_v40 }
 0x1d3   :  { %6472 = vmatpush3.msra.mxu1 %v1619_v40 }
 0x1d4   :  { %6511 = vmatprep.subr.mxu1 %v8246_v37 }
 0x263   :  { %v6370_v56 = vpop.f32.mrf.mxu0 }
 0x264   :  { %v972_v17 = vadd.f32 %v6370_v56, %v5453_v21 }
 0x265   :  { %v961_v47 = vpop.f32.mrf.mxu0 }
 0x266   :  { %v962_v24 = vadd.f32 %v5453_v21, %v961_v47 }
 0x268   :  { %v6384_v46 = vpop.f32.mrf.mxu0 }
 0x26a   :  { %v1134_v9 = vpop.f32.mrf.mxu0 }
 0x26b   :  { %v6377_v10 = vpop.f32.mrf.mxu1 }
 0x26c   :  { %v1059_v33 = vadd.f32 %v6377_v10, %v972_v17  ;;  %v2631_v17 = vld [vmem:[#allocation13 + $0x60] sm:$0xff] }
 0x26d   :  { %v1052_v45 = vpop.f32.mrf.mxu1 }
 0x26e   :  { %v1142_v31 = vadd.f32 %v6384_v46, %v1059_v33  ;;  %v1053_v38 = vadd.f32 %v1052_v45, %v962_v24  ;;  %v6398_v40 = vpop.f32.mrf.mxu0  ;;  %v10160_v46 = vld [vmem:[#allocation25_spill] sm:$0xff] }
 0x270   :  { %v1135_v32 = vadd.f32 %v1134_v9, %v1053_v38  ;;  %v6391_v16 = vpop.f32.mrf.mxu1  ;;  %v1301_v60 = vpop.f32.mrf.mxu0 }
 0x271   :  { %v1225_v53 = vadd.f32 %v6391_v16, %v1142_v31 }
 0x272   :  { %v1216_v29 = vpop.f32.mrf.mxu1 }
 0x273   :  { %v1308_v5 = vadd.f32 %v6398_v40, %v1225_v53  ;;  %v1217_v7 = vadd.f32 %v1216_v29, %v1135_v32 }
 0x274   :  { %v6405_v39 = vpop.f32.mrf.mxu1 }
 0x275   :  { %v1302_v27 = vadd.f32 %v1301_v60, %v1217_v7  ;;  %v1387_v18 = vadd.f32 %v6405_v39, %v1308_v5 }
 0x276   :  { %v1380_v56 = vpop.f32.mrf.mxu1 }
 0x277   :  { %v1391_v48 = vmax.f32 %v1387_v18, 0.0  ;;  %v1381_v13 = vadd.f32 %v1380_v56, %v1302_v27  ;;  %v2630_v56 = vld [vmem:[#allocation13 + $0x58] sm:$0xff] }
 0x279   :  { %v8464_v47 = vand.u32 4294901760, %v1391_v48  ;;  %v1390_v10 = vmax.f32 %v1381_v13, 0.0 }
 0x27b   :  { %v8467_v33 = vsub.f32 %v1391_v48, %v8464_v47  ;;  %v8469_v9 = vand.u32 4294901760, %v1390_v10 }
 0x27d   :  { %v1501_v16 = vand.u32 4294901760, %v8467_v33  ;;  %v1490_v24 = vsub.f32 %v1390_v10, %v8469_v9  ;;  %6473 = vmatprep.mubr.f32.mxu1 %v8469_v9  ;;  %v8637_v10 = vand.u32 4294901760, %v2631_v17 }
 0x27e   :  { %6474 = vmatmul.mubr.f32.vlgmr.msra.gmra.mxu1 %v8464_v47 }
 0x27f   :  { %6512 = vmatpush3.msra.mxu1 %v8246_v37  ;;  %v1491_v5 = vand.u32 4294901760, %v1490_v24  ;;  %v1502_v31 = vsub.f32 %v8467_v33, %v1501_v16 }
 0x280   :  { %6513 = vmatprep.subr.mxu1 %v8251_v49 }
 0x281   :  { %6514 = vmatpush3.msra.mxu1 %v8251_v49  ;;  %6543 = vmatprep.mubr.f32.mxu1 %v1491_v5  ;;  %v1492_v13 = vsub.f32 %v1490_v24, %v1491_v5  ;;  %v1503_v18 = vand.u32 4294901760, %v1502_v31  ;;  %v8646_v31 = vand.u32 4294901760, %v2630_v56 }
 0x282   :  { %6515 = vmatprep.subr.mxu1 %v8258_v2 }
 0x283   :  { %6516 = vmatpush3.msra.mxu1 %v8258_v2  ;;  %v1493_v48 = vand.u32 4294901760, %v1492_v13  ;;  %v2628_v13 = vld [vmem:[#allocation13 + $0x48] sm:$0xff] }
 0x284   :  { %6517 = vmatprep.subr.mxu1 %v8263_v36 }
 0x285   :  { %6518 = vmatpush3.msra.mxu1 %v8263_v36  ;;  %6438 = vmatprep.mubr.f32.mxu0 %v1493_v48 }
 0x286   :  { %6519 = vmatprep.subr.mxu1 %v8272_v63  ;;  %6439 = vmatmul.mubr.f32.vlgmr.msra.gmra.mxu0 %v1503_v18  ;;  %v8652_v18 = vsub.f32 %v2631_v17, %v8637_v10 }
 0x287   :  { %6477 = vmatpush3.msra.mxu0 %v8256_v59  ;;  %6520 = vmatpush3.msra.mxu1 %v8272_v63  ;;  %v10150_v59 = vld [vmem:[#allocation34_spill] sm:$0xff] }
 0x288   :  { %6478 = vmatprep.subr.mxu0 %v8261_v35  ;;  %6508 = vmatprep.mubr.f32.mxu0 %v1490_v24 }
 0x289   :  { %6521 = vmatprep.subr.mxu1 %v8280_v15  ;;  %6479 = vmatpush3.msra.mxu0 %v8261_v35  ;;  %v10152_v35 = vld [vmem:[#allocation36_spill] sm:$0xff] }
 0x28a   :  { %6522 = vmatpush3.msra.mxu1 %v8280_v15  ;;  %6480 = vmatprep.subr.mxu0 %v8270_v54 }
 0x28b   :  { %6523 = vmatprep.subr.mxu1 %v8339_v52  ;;  %6481 = vmatpush3.msra.mxu0 %v8270_v54  ;;  %v10155_v54 = vld [vmem:[#allocation24_spill] sm:$0xff] }
 0x28c   :  { %6524 = vmatpush3.msra.mxu1 %v8339_v52  ;;  %6482 = vmatprep.subr.mxu0 %v8278_v14 }
 0x28d   :  { %6525 = vmatprep.subr.mxu1 %v8344_v58  ;;  %6483 = vmatpush3.msra.mxu0 %v8278_v14  ;;  %v10158_v14 = vld [vmem:[#allocation27_spill] sm:$0xff] }
 0x28e   :  { %6526 = vmatpush3.msra.mxu1 %v8344_v58  ;;  %6484 = vmatprep.subr.mxu0 %v8291_v11 }
 0x28f   :  { %6527 = vmatprep.subr.mxu1 %v8354_v1  ;;  %6485 = vmatpush3.msra.mxu0 %v8291_v11 }
 0x290   :  { %6528 = vmatpush3.msra.mxu1 %v8354_v1  ;;  %6486 = vmatprep.subr.mxu0 %v8303_v20 }
 0x291   :  { %6529 = vmatprep.subr.mxu1 %v8366_v30  ;;  %6487 = vmatpush3.msra.mxu0 %v8303_v20 }
 0x292   :  { %6530 = vmatpush3.msra.mxu1 %v8366_v30  ;;  %6488 = vmatprep.subr.mxu0 %v8342_v57 }
 0x293   :  { %6531 = vmatprep.subr.mxu1 %v8379_v51  ;;  %6489 = vmatpush3.msra.mxu0 %v8342_v57 }
 0x294   :  { %6532 = vmatpush3.msra.mxu1 %v8379_v51  ;;  %6490 = vmatprep.subr.mxu0 %v8352_v62 }
 0x295   :  { %6533 = vmatprep.subr.mxu1 %v8387_v41  ;;  %6491 = vmatpush3.msra.mxu0 %v8352_v62 }
 0x296   :  { %6534 = vmatpush3.msra.mxu1 %v8387_v41  ;;  %6492 = vmatprep.subr.mxu0 %v8364_v25 }
 0x297   :  { %6535 = vmatprep.subr.mxu1 %v8398_v26  ;;  %6493 = vmatpush3.msra.mxu0 %v8364_v25 }
 0x298   :  { %6536 = vmatpush3.msra.mxu1 %v8398_v26  ;;  %6494 = vmatprep.subr.mxu0 %v8376_v50 }
 0x299   :  { %6537 = vmatprep.subr.mxu1 %v8411_v43  ;;  %6495 = vmatpush3.msra.mxu0 %v8376_v50 }
 0x29a   :  { %6538 = vmatpush3.msra.mxu1 %v8411_v43  ;;  %6496 = vmatprep.subr.mxu0 %v8390_v44 }
 0x29b   :  { %6539 = vmatprep.subr.mxu1 %v8425_v8  ;;  %6497 = vmatpush3.msra.mxu0 %v8390_v44 }
 0x29c   :  { %6540 = vmatpush3.msra.mxu1 %v8425_v8  ;;  %6498 = vmatprep.subr.mxu0 %v8396_v22 }
 0x29d   :  { %6541 = vmatprep.subr.mxu1 %v8438_v3  ;;  %6499 = vmatpush3.msra.mxu0 %v8396_v22 }
 0x29e   :  { %6542 = vmatpush3.msra.mxu1 %v8438_v3  ;;  %6500 = vmatprep.subr.mxu0 %v8409_v42 }
 0x29f   :  { %6544 = vmatmul.mubr.f32.vlgmr.msra.gmra.mxu1 %v1501_v16  ;;  %6581 = vmatprep.subr.mxu1 %v8246_v37  ;;  %v10161_v16 = vld [vmem:[#allocation29_spill] sm:$0xff] }
 0x2a0   :  { %6501 = vmatpush3.msra.mxu0 %v8409_v42  ;;  %6582 = vmatpush3.msra.mxu1 %v8246_v37  ;;  %v10148_v37 = vld [vmem:[#allocation32_spill] sm:$0xff]  ;;  %v2634_v42 = vld [vmem:[#allocation13 + $0x78] sm:$0xff] }
 0x2a1   :  { %6613 = vmatprep.mubr.f32.mxu1 %v8469_v9  ;;  %6502 = vmatprep.subr.mxu0 %v8423_v6 }
 0x2a2   :  { %6583 = vmatprep.subr.mxu1 %v8251_v49  ;;  %6503 = vmatpush3.msra.mxu0 %v8423_v6  ;;  %v2633_v6 = vld [vmem:[#allocation13 + $0x70] sm:$0xff] }
 0x2a3   :  { %6584 = vmatpush3.msra.mxu1 %v8251_v49  ;;  %6504 = vmatprep.subr.mxu0 %v8435_v12  ;;  %v10149_v49 = vld [vmem:[#allocation33_spill] sm:$0xff]  ;;  %v8625_v29 = vand.u32 4294901760, %v2633_v6 }
 0x2a4   :  { %6585 = vmatprep.subr.mxu1 %v8258_v2  ;;  %6505 = vmatpush3.msra.mxu0 %v8435_v12 }
 0x2a5   :  { %6586 = vmatpush3.msra.mxu1 %v8258_v2  ;;  %6506 = vmatprep.subr.mxu0 %v8448_v34  ;;  %v10151_v2 = vld [vmem:[#allocation35_spill] sm:$0xff] }
 0x2a6   :  { %6587 = vmatprep.subr.mxu1 %v8263_v36  ;;  %6507 = vmatpush3.msra.mxu0 %v8448_v34  ;;  %v10159_v34 = vld [vmem:[#allocation31_spill] sm:$0xff] }
 0x2a7   :  { %6588 = vmatpush3.msra.mxu1 %v8263_v36  ;;  %6509 = vmatmul.mubr.f32.vlgmr.msra.gmra.mxu0 %v8467_v33  ;;  %v10153_v36 = vld [vmem:[#allocation37_spill] sm:$0xff] }
 0x2a8   :  { %6546 = vmatprep.subr.mxu0 %v8267_v55  ;;  %6589 = vmatprep.subr.mxu1 %v8272_v63 }
 0x2a9   :  { %6547 = vmatpush3.msra.mxu0 %v8267_v55  ;;  %6578 = vmatprep.mubr.f32.mxu0 %v8469_v9  ;;  %v10154_v55 = vld [vmem:[#allocation38_spill] sm:$0xff]  ;;  %v2629_v9 = vld [vmem:[#allocation13 + $0x50] sm:$0xff] }
 0x2aa   :  { %6590 = vmatpush3.msra.mxu1 %v8272_v63  ;;  %6548 = vmatprep.subr.mxu0 %v8275_v0  ;;  %v10156_v63 = vld [vmem:[#allocation39_spill] sm:$0xff] }
 0x2ab   :  { %6591 = vmatprep.subr.mxu1 %v8280_v15  ;;  %6549 = vmatpush3.msra.mxu0 %v8275_v0  ;;  %v10157_v0 = vld [vmem:[#allocation40_spill] sm:$0xff] }
 0x2ac   :  { %6592 = vmatpush3.msra.mxu1 %v8280_v15  ;;  %6550 = vmatprep.subr.mxu0 %v8288_v4 }
 0x2ad   :  { %6593 = vmatprep.subr.mxu1 %v8339_v52  ;;  %6551 = vmatpush3.msra.mxu0 %v8288_v4 }
 0x2ae   :  { %6594 = vmatpush3.msra.mxu1 %v8339_v52  ;;  %6552 = vmatprep.subr.mxu0 %v8300_v19 }
 0x2af   :  { %6595 = vmatprep.subr.mxu1 %v8344_v58  ;;  %6553 = vmatpush3.msra.mxu0 %v8300_v19 }
 0x2b0   :  { %6596 = vmatpush3.msra.mxu1 %v8344_v58  ;;  %6554 = vmatprep.subr.mxu0 %v8312_v23 }
 0x2b1   :  { %6597 = vmatprep.subr.mxu1 %v8354_v1  ;;  %6555 = vmatpush3.msra.mxu0 %v8312_v23 }
 0x2b2   :  { %6598 = vmatpush3.msra.mxu1 %v8354_v1  ;;  %6556 = vmatprep.subr.mxu0 %v8321_v28 }
 0x2b3   :  { %6599 = vmatprep.subr.mxu1 %v8366_v30  ;;  %6557 = vmatpush3.msra.mxu0 %v8321_v28 }
 0x2b4   :  { %6600 = vmatpush3.msra.mxu1 %v8366_v30  ;;  %6558 = vmatprep.subr.mxu0 %v8349_v61 }
 0x2b5   :  { %6601 = vmatprep.subr.mxu1 %v8379_v51  ;;  %6559 = vmatpush3.msra.mxu0 %v8349_v61 }
 0x2b6   :  { %6602 = vmatpush3.msra.mxu1 %v8379_v51  ;;  %6560 = vmatprep.subr.mxu0 %v10148_v37 }
 0x2b7   :  { %6603 = vmatprep.subr.mxu1 %v8387_v41  ;;  %6561 = vmatpush3.msra.mxu0 %v10148_v37  ;;  %v8654_v37 = vand.u32 4294901760, %v2629_v9 }
 0x2b8   :  { %6604 = vmatpush3.msra.mxu1 %v8387_v41  ;;  %6562 = vmatprep.subr.mxu0 %v10149_v49 }
 0x2b9   :  { %6605 = vmatprep.subr.mxu1 %v8398_v26  ;;  %6563 = vmatpush3.msra.mxu0 %v10149_v49  ;;  %v2627_v49 = vld [vmem:[#allocation13 + $0x40] sm:$0xff] }
 0x2ba   :  { %6606 = vmatpush3.msra.mxu1 %v8398_v26  ;;  %6564 = vmatprep.subr.mxu0 %v10150_v59 }
 0x2bb   :  { %6607 = vmatprep.subr.mxu1 %v8411_v43  ;;  %6565 = vmatpush3.msra.mxu0 %v10150_v59  ;;  %v10162_v59 = vld [vmem:[#allocation28_spill] sm:$0xff] }
 0x2bc   :  { %6608 = vmatpush3.msra.mxu1 %v8411_v43  ;;  %6566 = vmatprep.subr.mxu0 %v10151_v2 }
 0x2bd   :  { %6609 = vmatprep.subr.mxu1 %v8425_v8  ;;  %6567 = vmatpush3.msra.mxu0 %v10151_v2  ;;  %v8657_v2 = vand.u32 4294901760, %v2628_v13 }
 0x2be   :  { %6610 = vmatpush3.msra.mxu1 %v8425_v8  ;;  %6568 = vmatprep.subr.mxu0 %v10152_v35  ;;  %v8620_v8 = vand.u32 4294901760, %v2634_v42 }
 0x2bf   :  { %6611 = vmatprep.subr.mxu1 %v8438_v3  ;;  %6569 = vmatpush3.msra.mxu0 %v10152_v35  ;;  %v10163_v35 = vld [vmem:[#allocation26_spill] sm:$0xff] }
 0x2c0   :  { %6612 = vmatpush3.msra.mxu1 %v8438_v3  ;;  %6570 = vmatprep.subr.mxu0 %v10153_v36  ;;  %v2632_v3 = vld [vmem:[#allocation13 + $0x68] sm:$0xff]  ;;  %v8630_v45 = vsub.f32 %v2634_v42, %v8620_v8  ;;  %v2622_v42 = vld [vmem:[#allocation13 + $0x18] sm:$0xff] }
 0x2c1   :  { %6614 = vmatmul.mubr.f32.vlgmr.msra.gmra.mxu1 %v8464_v47  ;;  %6571 = vmatpush3.msra.mxu0 %v10153_v36  ;;  %v8632_v38 = vand.u32 4294901760, %v2632_v3 }
 0x2c2   :  { %6572 = vmatprep.subr.mxu0 %v10154_v55  ;;  %6627 = vmatprep.mubr.f32.mxu1 %v10155_v54  ;;  %v8641_v24 = vand.u32 4294901760, %v8630_v45 }
 0x2c3   :  { %6573 = vmatpush3.msra.mxu0 %v10154_v55  ;;  %v8644_v5 = vsub.f32 %v2632_v3, %v8632_v38 }
 0x2c4   :  { %6574 = vmatprep.subr.mxu0 %v10156_v63  ;;  %v2740_v36 = vsub.f32 %v8630_v45, %v8641_v24 }
 0x2c5   :  { %6575 = vmatpush3.msra.mxu0 %v10156_v63  ;;  %v8664_v55 = vand.u32 4294901760, %v8644_v5  ;;  %v8667_v63 = vsub.f32 %v2630_v56, %v8646_v31 }
 0x2c6   :  { %6576 = vmatprep.subr.mxu0 %v10157_v0 }
 0x2c7   :  { %6577 = vmatpush3.msra.mxu0 %v10157_v0  ;;  %v8671_v0 = vand.u32 4294901760, %v2627_v49 }
 0x2c8   :  { %6579 = vmatmul.mubr.f32.vlgmr.msra.gmra.mxu0 %v8464_v47  ;;  %v8635_v47 = vsub.f32 %v2633_v6, %v8625_v29 }
 0x2c9   :  { %6620 = vmatprep.mubr.f32.mxu0 %v10158_v14  ;;  %v2626_v14 = vld [vmem:[#allocation13 + $0x38] sm:$0xff] }
 0x2ca   :  { %v8649_v48 = vand.u32 4294901760, %v8635_v47 }
 0x33e   :  { %v6475_v4 = vpop.f32.mrf.mxu1 }
 0x340   :  { %v1656_v20 = vpop.f32.mrf.mxu1 }
 0x346   :  { %v6440_v15 = vpop.f32.mrf.mxu0 }
 0x347   :  { %v1663_v23 = vadd.f32 %v6475_v4, %v6440_v15  ;;  %v2747_v15 = vsub.f32 %v8635_v47, %v8649_v48  ;;  %v8678_v4 = vand.u32 4294901760, %v8652_v18 }
 0x348   :  { %v1495_v11 = vpop.f32.mrf.mxu0 }
 0x349   :  { %v1657_v57 = vadd.f32 %v1656_v20, %v1495_v11  ;;  %v8681_v11 = vsub.f32 %v2629_v9, %v8654_v37  ;;  %v8686_v20 = vsub.f32 %v2628_v13, %v8657_v2  ;;  %v2617_v13 = vld [vmem:[#allocation7] sm:$0xff] }
 0x35f   :  { %v6545_v28 = vpop.f32.mrf.mxu1 }
 0x361   :  { %v1862_v62 = vpop.f32.mrf.mxu1 }
 0x367   :  { %v6510_v19 = vpop.f32.mrf.mxu0 }
 0x368   :  { %v1774_v58 = vadd.f32 %v6510_v19, %v1663_v23  ;;  %v2625_v19 = vld [vmem:[#allocation13 + $0x30] sm:$0xff]  ;;  %v10164_v23 = vld [vmem:[#allocation30_spill] sm:$0xff] }
 0x369   :  { %v1766_v52 = vpop.f32.mrf.mxu0 }
 0x36a   :  { %v1767_v61 = vadd.f32 %v1766_v52, %v1657_v57  ;;  %v1871_v1 = vadd.f32 %v6545_v28, %v1774_v58  ;;  %v2741_v28 = vand.u32 4294901760, %v2740_v36  ;;  %v2754_v52 = vsub.f32 %v8644_v5, %v8664_v55 }
 0x36b   :  { %v8693_v57 = vand.u32 4294901760, %v8667_v63  ;;  %v8695_v58 = vand.u32 4294901760, %v2626_v14 }
 0x36c   :  { %v1863_v51 = vadd.f32 %v1862_v62, %v1767_v61  ;;  %v8700_v61 = vsub.f32 %v2627_v49, %v8671_v0  ;;  %v8702_v62 = vand.u32 4294901760, %v2625_v19 }
 0x381   :  { %v6615_v25 = vpop.f32.mrf.mxu1 }
 0x383   :  { %v2082_v26 = vpop.f32.mrf.mxu1 }
 0x388   :  { %v6580_v30 = vpop.f32.mrf.mxu0 }
 0x389   :  { %v1996_v50 = vadd.f32 %v6580_v30, %v1871_v1  ;;  %v2624_v1 = vld [vmem:[#allocation13 + $0x28] sm:$0xff]  ;;  %v2761_v30 = vsub.f32 %v8652_v18, %v8678_v4 }
 0x38a   :  { %v1989_v41 = vpop.f32.mrf.mxu0 }
 0x38b   :  { %v2089_v44 = vadd.f32 %v6615_v25, %v1996_v50  ;;  %v1990_v22 = vadd.f32 %v1989_v41, %v1863_v51  ;;  %v2748_v25 = vand.u32 4294901760, %v2747_v15  ;;  %v8709_v50 = vand.u32 4294901760, %v8681_v11  ;;  %v2623_v51 = vld [vmem:[#allocation13 + $0x20] sm:$0xff] }
 0x38c   :  { %v2755_v41 = vand.u32 4294901760, %v2754_v52  ;;  %v8734_v6 = vand.u32 4294901760, %v2623_v51 }
 0x38d   :  { %v8613_v27 = vand.u32 4294901760, %v2089_v44  ;;  %v2083_v39 = vadd.f32 %v2082_v26, %v1990_v22  ;;  %v8720_v22 = vsub.f32 %v2626_v14, %v8695_v58  ;;  %v8722_v26 = vand.u32 4294901760, %v2624_v1  ;;  %v2618_v14 = vld [vmem:[#allocation7 + $0x8] sm:$0xff] }
 0x38e   :  { %v8756_v56 = vsub.f32 %v2623_v51, %v8734_v6 }
 0x38f   :  { %v2216_v43 = vsub.f32 %v2089_v44, %v8613_v27  ;;  %v8616_v60 = vand.u32 4294901760, %v2083_v39  ;;  %6616 = vmatprep.subr.mxu0 %v8613_v27  ;;  %v2768_v44 = vsub.f32 %v8667_v63, %v8693_v57 }
 0x390   :  { %6617 = vmatpush3.msra.mxu0 %v8613_v27 }
 0x391   :  { %v2223_v7 = vsub.f32 %v2083_v39, %v8616_v60  ;;  %6618 = vmatprep.subr.mxu0 %v8616_v60  ;;  %v2217_v12 = vand.u32 4294901760, %v2216_v43  ;;  %v8729_v39 = vsub.f32 %v2625_v19, %v8702_v62  ;;  %v2769_v3 = vand.u32 4294901760, %v2768_v44 }
 0x392   :  { %6619 = vmatpush3.msra.mxu0 %v8616_v60 }
 0x393   :  { %6630 = vmatprep.subr.mxu0 %v2216_v43  ;;  %6621 = vmatmul.mubr.f32.vlgmr.msra.gmra.mxu0 %v10159_v34  ;;  %v2218_v53 = vsub.f32 %v2216_v43, %v2217_v12  ;;  %v2224_v21 = vand.u32 4294901760, %v2223_v7  ;;  %v8741_v34 = vand.u32 4294901760, %v8720_v22 }
 0x394   :  { %6631 = vmatpush3.msra.mxu0 %v2216_v43  ;;  %6634 = vmatprep.mubr.f32.mxu0 %v10160_v46  ;;  %v2762_v43 = vand.u32 4294901760, %v2761_v30  ;;  %v8752_v46 = vand.u32 4294901760, %v8729_v39 }
 0x395   :  { %6632 = vmatprep.subr.mxu0 %v2223_v7  ;;  %v2219_v32 = vand.u32 4294901760, %v2218_v53  ;;  %v2225_v40 = vsub.f32 %v2223_v7, %v2224_v21  ;;  %v8744_v53 = vsub.f32 %v2624_v1, %v8722_v26  ;;  %v2796_v49 = vsub.f32 %v8720_v22, %v8741_v34 }
 0x396   :  { %6633 = vmatpush3.msra.mxu0 %v2223_v7  ;;  %v2803_v19 = vsub.f32 %v8729_v39, %v8752_v46  ;;  %v8784_v1 = vand.u32 4294901760, %v2617_v13 }
 0x397   :  { %6623 = vmatprep.subr.mxu1 %v2219_v32  ;;  %6644 = vmatprep.subr.mxu0 %v2217_v12  ;;  %v2226_v33 = vand.u32 4294901760, %v2225_v40  ;;  %v2797_v30 = vand.u32 4294901760, %v2796_v49 }
 0x398   :  { %6624 = vmatpush3.msra.mxu1 %v2219_v32  ;;  %6635 = vmatmul.mubr.f32.vlgmr.msra.gmra.mxu0 %v10161_v16  ;;  %v2620_v32 = vld [vmem:[#allocation13 + $0x8] sm:$0xff]  ;;  %v2619_v16 = vld [vmem:[#allocation13] sm:$0xff] }
 0x399   :  { %6645 = vmatpush3.msra.mxu0 %v2217_v12  ;;  %6625 = vmatprep.subr.mxu1 %v2226_v33  ;;  %v2621_v12 = vld [vmem:[#allocation13 + $0x10] sm:$0xff]  ;;  %v8770_v36 = vand.u32 4294901760, %v2620_v32  ;;  %v8782_v52 = vand.u32 4294901760, %v2619_v16 }
 0x39a   :  { %6646 = vmatprep.subr.mxu0 %v2224_v21  ;;  %6626 = vmatpush3.msra.mxu1 %v2226_v33  ;;  %v8758_v33 = vand.u32 4294901760, %v2621_v12 }
 0x39b   :  { %6647 = vmatpush3.msra.mxu0 %v2224_v21  ;;  %6628 = vmatmul.mubr.f32.vlgmr.msra.gmra.mxu1 %v10162_v59  ;;  %v8746_v21 = vand.u32 4294901760, %v2622_v42  ;;  %v8796_v44 = vsub.f32 %v2620_v32, %v8770_v36 }
 0x39c   :  { %6637 = vmatprep.subr.mxu1 %v8613_v27  ;;  %6641 = vmatprep.mubr.f32.mxu1 %v10163_v35 }
 0x39d   :  { %6638 = vmatpush3.msra.mxu1 %v8613_v27  ;;  %6648 = vmatprep.mubr.f32.mxu0 %v10155_v54  ;;  %v8768_v35 = vsub.f32 %v2622_v42, %v8746_v21  ;;  %v2804_v42 = vand.u32 4294901760, %v2803_v19 }
 0x39e   :  { %6639 = vmatprep.subr.mxu1 %v8616_v60  ;;  %6649 = vmatmul.mubr.f32.vlgmr.msra.gmra.mxu0 %v10162_v59 }
 0x39f   :  { %6640 = vmatpush3.msra.mxu1 %v8616_v60  ;;  %6658 = vmatprep.subr.mxu0 %v8620_v8 }
 0x3a0   :  { %6642 = vmatmul.mubr.f32.vlgmr.msra.gmra.mxu1 %v10164_v23  ;;  %6651 = vmatprep.subr.mxu1 %v8613_v27  ;;  %v8777_v23 = vand.u32 4294901760, %v8756_v56 }
 0x3a1   :  { %6652 = vmatpush3.msra.mxu1 %v8613_v27  ;;  %6655 = vmatprep.mubr.f32.mxu1 %v10155_v54  ;;  %v8714_v54 = vand.u32 4294901760, %v8686_v20  ;;  %v8726_v27 = vand.u32 4294901760, %v8700_v61 }
 0x3a2   :  { %6653 = vmatprep.subr.mxu1 %v8616_v60  ;;  %6659 = vmatpush3.msra.mxu0 %v8620_v8 }
 0x3a3   :  { %6654 = vmatpush3.msra.mxu1 %v8616_v60  ;;  %6660 = vmatprep.subr.mxu0 %v8625_v29  ;;  %v2775_v60 = vsub.f32 %v8681_v11, %v8709_v50  ;;  %v2782_v7 = vsub.f32 %v8686_v20, %v8714_v54  ;;  %v2789_v17 = vsub.f32 %v8700_v61, %v8726_v27 }
 0x3a4   :  { %6656 = vmatmul.mubr.f32.vlgmr.msra.gmra.mxu1 %v10162_v59  ;;  %6693 = vmatprep.subr.mxu1 %v2741_v28  ;;  %v8765_v59 = vand.u32 4294901760, %v8744_v53 }
 0x3a5   :  { %6661 = vmatpush3.msra.mxu0 %v8625_v29  ;;  %6694 = vmatpush3.msra.mxu1 %v2741_v28  ;;  %v2776_v40 = vand.u32 4294901760, %v2775_v60  ;;  %v2783_v9 = vand.u32 4294901760, %v2782_v7  ;;  %v2790_v15 = vand.u32 4294901760, %v2789_v17  ;;  %v8780_v28 = vsub.f32 %v2621_v12, %v8758_v33 }
 0x3a6   :  { %6662 = vmatprep.subr.mxu0 %v8632_v38  ;;  %6695 = vmatprep.subr.mxu1 %v2748_v25  ;;  %v2810_v51 = vsub.f32 %v8744_v53, %v8765_v59  ;;  %v8806_v7 = vsub.f32 %v2617_v13, %v8784_v1  ;;  %v8809_v12 = vsub.f32 %v2619_v16, %v8782_v52 }
 0x3a7   :  { %6663 = vmatpush3.msra.mxu0 %v8632_v38  ;;  %6696 = vmatpush3.msra.mxu1 %v2748_v25  ;;  %v8787_v25 = vand.u32 4294901760, %v2618_v14  ;;  %v8803_v60 = vand.u32 4294901760, %v8780_v28 }
 0x3a8   :  { %6664 = vmatprep.subr.mxu0 %v8637_v10  ;;  %6697 = vmatprep.subr.mxu1 %v2755_v41  ;;  %v2811_v17 = vand.u32 4294901760, %v2810_v51  ;;  %v2718_v13 = vand.u32 4294901760, %v8806_v7  ;;  %v8827_v49 = vand.u32 4294901760, %v8809_v12 }
 0x3a9   :  { %6665 = vmatpush3.msra.mxu0 %v8637_v10  ;;  %6698 = vmatpush3.msra.mxu1 %v2755_v41  ;;  %v8793_v41 = vand.u32 4294901760, %v8768_v35  ;;  %v2831_v16 = vsub.f32 %v8780_v28, %v8803_v60 }
 0x3aa   :  { %6666 = vmatprep.subr.mxu0 %v8646_v31  ;;  %6699 = vmatprep.subr.mxu1 %v2762_v43  ;;  %v2719_v51 = vsub.f32 %v8806_v7, %v2718_v13 }
 0x3ab   :  { %6667 = vmatpush3.msra.mxu0 %v8646_v31  ;;  %6700 = vmatpush3.msra.mxu1 %v2762_v43  ;;  %v2817_v43 = vsub.f32 %v8756_v56, %v8777_v23  ;;  %v2824_v32 = vsub.f32 %v8768_v35, %v8793_v41 }
 0x3ac   :  { %6668 = vmatprep.subr.mxu0 %v8654_v37  ;;  %6701 = vmatprep.subr.mxu1 %v2769_v3 }
 0x3ad   :  { %6669 = vmatpush3.msra.mxu0 %v8654_v37  ;;  %6702 = vmatpush3.msra.mxu1 %v2769_v3  ;;  %v8813_v3 = vsub.f32 %v2618_v14, %v8787_v25 }
 0x3ae   :  { %6670 = vmatprep.subr.mxu0 %v8657_v2  ;;  %6703 = vmatprep.subr.mxu1 %v2776_v40 }
 0x3af   :  { %6671 = vmatpush3.msra.mxu0 %v8657_v2  ;;  %6704 = vmatpush3.msra.mxu1 %v2776_v40  ;;  %v8819_v40 = vand.u32 4294901760, %v8796_v44  ;;  %v2728_v14 = vand.u32 4294901760, %v8813_v3 }
 0x3b0   :  { %6672 = vmatprep.subr.mxu0 %v8671_v0  ;;  %6705 = vmatprep.subr.mxu1 %v2783_v9 }
 0x3b1   :  { %6673 = vmatpush3.msra.mxu0 %v8671_v0  ;;  %6706 = vmatpush3.msra.mxu1 %v2783_v9  ;;  %v2818_v9 = vand.u32 4294901760, %v2817_v43  ;;  %v2838_v19 = vsub.f32 %v8796_v44, %v8819_v40  ;;  %v2729_v43 = vsub.f32 %v8813_v3, %v2728_v14 }
 0x3b2   :  { %6674 = vmatprep.subr.mxu0 %v8695_v58  ;;  %6707 = vmatprep.subr.mxu1 %v2790_v15 }
 0x3b3   :  { %6675 = vmatpush3.msra.mxu0 %v8695_v58  ;;  %6708 = vmatpush3.msra.mxu1 %v2790_v15  ;;  %v2825_v15 = vand.u32 4294901760, %v2824_v32  ;;  %v2720_v32 = vand.u32 4294901760, %v2719_v51 }
 0x3b4   :  { %6676 = vmatprep.subr.mxu0 %v8702_v62  ;;  %6709 = vmatprep.subr.mxu1 %v2797_v30 }
 0x3b5   :  { %6677 = vmatpush3.msra.mxu0 %v8702_v62  ;;  %6710 = vmatpush3.msra.mxu1 %v2797_v30  ;;  %v2832_v30 = vand.u32 4294901760, %v2831_v16 }
 0x3b6   :  { %6678 = vmatprep.subr.mxu0 %v8722_v26  ;;  %6711 = vmatprep.subr.mxu1 %v2804_v42 }
 0x3b7   :  { %6679 = vmatpush3.msra.mxu0 %v8722_v26  ;;  %6712 = vmatpush3.msra.mxu1 %v2804_v42  ;;  %v2845_v42 = vsub.f32 %v8809_v12, %v8827_v49 }
 0x3b8   :  { %6680 = vmatprep.subr.mxu0 %v8734_v6  ;;  %6713 = vmatprep.subr.mxu1 %v2811_v17 }
 0x3b9   :  { %6681 = vmatpush3.msra.mxu0 %v8734_v6  ;;  %6714 = vmatpush3.msra.mxu1 %v2811_v17  ;;  %v2839_v17 = vand.u32 4294901760, %v2838_v19  ;;  %v2846_v16 = vand.u32 4294901760, %v2845_v42 }
 0x3ba   :  { %6682 = vmatprep.subr.mxu0 %v8746_v21  ;;  %6715 = vmatprep.subr.mxu1 %v2818_v9 }
 0x3bb   :  { %6683 = vmatpush3.msra.mxu0 %v8746_v21  ;;  %6716 = vmatpush3.msra.mxu1 %v2818_v9  ;;  %v2730_v9 = vand.u32 4294901760, %v2729_v43 }
 0x3bc   :  { %6684 = vmatprep.subr.mxu0 %v8758_v33  ;;  %6717 = vmatprep.subr.mxu1 %v2825_v15 }
 0x3bd   :  { %6685 = vmatpush3.msra.mxu0 %v8758_v33  ;;  %6718 = vmatpush3.msra.mxu1 %v2825_v15  ;;  %v2603_v15 = vld [vmem:[#allocation11 + $0x10] sm:$0xff] }
 0x3be   :  { %6686 = vmatprep.subr.mxu0 %v8770_v36  ;;  %6719 = vmatprep.subr.mxu1 %v2832_v30 }
 0x3bf   :  { %6687 = vmatpush3.msra.mxu0 %v8770_v36  ;;  %6720 = vmatpush3.msra.mxu1 %v2832_v30 }
 0x3c0   :  { %6688 = vmatprep.subr.mxu0 %v8782_v52  ;;  %6721 = vmatprep.subr.mxu1 %v2839_v17 }
 0x3c1   :  { %6689 = vmatpush3.msra.mxu0 %v8782_v52  ;;  %6722 = vmatpush3.msra.mxu1 %v2839_v17  ;;  %v2602_v17 = vld [vmem:[#allocation11 + $0x8] sm:$0xff] }
 0x3c2   :  { %6690 = vmatprep.mubr.f32.mxu0 %v2720_v32  ;;  %6723 = vmatprep.subr.mxu1 %v2846_v16 }
 0x3c3   :  { %6728 = vmatprep.subr.mxu0 %v8630_v45  ;;  %6691 = vmatmul.mubr.f32.vlgmr.msra.gmra.mxu0 %v2730_v9 }
 0x3c4   :  { %6724 = vmatpush3.msra.mxu1 %v2846_v16  ;;  %6729 = vmatpush3.msra.mxu0 %v8630_v45 }
 0x3c5   :  { %6725 = vmatprep.mubr.f32.mxu1 %v8784_v1  ;;  %6730 = vmatprep.subr.mxu0 %v8635_v47 }
 0x3c6   :  { %6763 = vmatprep.subr.mxu1 %v8620_v8  ;;  %6726 = vmatmul.mubr.f32.vlgmr.msra.gmra.mxu1 %v8787_v25 }
 0x3c7   :  { %6731 = vmatpush3.msra.mxu0 %v8635_v47  ;;  %6764 = vmatpush3.msra.mxu1 %v8620_v8 }
 0x3c8   :  { %6732 = vmatprep.subr.mxu0 %v8644_v5  ;;  %6765 = vmatprep.subr.mxu1 %v8625_v29 }
 0x3c9   :  { %6733 = vmatpush3.msra.mxu0 %v8644_v5  ;;  %6766 = vmatpush3.msra.mxu1 %v8625_v29 }
 0x3ca   :  { %6734 = vmatprep.subr.mxu0 %v8652_v18  ;;  %6767 = vmatprep.subr.mxu1 %v8632_v38 }
 0x3cb   :  { %6735 = vmatpush3.msra.mxu0 %v8652_v18  ;;  %6768 = vmatpush3.msra.mxu1 %v8632_v38 }
 0x3cc   :  { %6736 = vmatprep.subr.mxu0 %v8667_v63  ;;  %6769 = vmatprep.subr.mxu1 %v8637_v10 }
 0x3cd   :  { %6737 = vmatpush3.msra.mxu0 %v8667_v63  ;;  %6770 = vmatpush3.msra.mxu1 %v8637_v10 }
 0x3ce   :  { %6738 = vmatprep.subr.mxu0 %v8681_v11  ;;  %6771 = vmatprep.subr.mxu1 %v8646_v31 }
 0x3cf   :  { %6739 = vmatpush3.msra.mxu0 %v8681_v11  ;;  %6772 = vmatpush3.msra.mxu1 %v8646_v31 }
 0x3d0   :  { %6740 = vmatprep.subr.mxu0 %v8686_v20  ;;  %6773 = vmatprep.subr.mxu1 %v8654_v37 }
 0x3d1   :  { %6741 = vmatpush3.msra.mxu0 %v8686_v20  ;;  %6774 = vmatpush3.msra.mxu1 %v8654_v37 }
 0x3d2   :  { %6742 = vmatprep.subr.mxu0 %v8700_v61  ;;  %6775 = vmatprep.subr.mxu1 %v8657_v2 }
 0x3d3   :  { %6743 = vmatpush3.msra.mxu0 %v8700_v61  ;;  %6776 = vmatpush3.msra.mxu1 %v8657_v2 }
 0x3d4   :  { %6744 = vmatprep.subr.mxu0 %v8720_v22  ;;  %6777 = vmatprep.subr.mxu1 %v8671_v0 }
 0x3d5   :  { %6745 = vmatpush3.msra.mxu0 %v8720_v22  ;;  %6778 = vmatpush3.msra.mxu1 %v8671_v0  ;;  %v2608_v22 = vld [vmem:[#allocation11 + $0x38] sm:$0xff] }
 0x3d6   :  { %6746 = vmatprep.subr.mxu0 %v8729_v39  ;;  %6779 = vmatprep.subr.mxu1 %v8695_v58 }
 0x3d7   :  { %6747 = vmatpush3.msra.mxu0 %v8729_v39  ;;  %6780 = vmatpush3.msra.mxu1 %v8695_v58 }
 0x3d8   :  { %6748 = vmatprep.subr.mxu0 %v8744_v53  ;;  %6781 = vmatprep.subr.mxu1 %v8702_v62 }
 0x3d9   :  { %6749 = vmatpush3.msra.mxu0 %v8744_v53  ;;  %6782 = vmatpush3.msra.mxu1 %v8702_v62 }
 0x3da   :  { %6750 = vmatprep.subr.mxu0 %v8756_v56  ;;  %6783 = vmatprep.subr.mxu1 %v8722_v26 }
 0x3db   :  { %6751 = vmatpush3.msra.mxu0 %v8756_v56  ;;  %6784 = vmatpush3.msra.mxu1 %v8722_v26  ;;  %v9043_v56 = vand.u32 4294901760, %v2608_v22 }
 0x3dc   :  { %6752 = vmatprep.subr.mxu0 %v8768_v35  ;;  %6785 = vmatprep.subr.mxu1 %v8734_v6 }
 0x3dd   :  { %6753 = vmatpush3.msra.mxu0 %v8768_v35  ;;  %6786 = vmatpush3.msra.mxu1 %v8734_v6 }
 0x3de   :  { %6754 = vmatprep.subr.mxu0 %v8780_v28  ;;  %6787 = vmatprep.subr.mxu1 %v8746_v21 }
 0x3df   :  { %6755 = vmatpush3.msra.mxu0 %v8780_v28  ;;  %6788 = vmatpush3.msra.mxu1 %v8746_v21 }
 0x3e0   :  { %6756 = vmatprep.subr.mxu0 %v8796_v44  ;;  %6789 = vmatprep.subr.mxu1 %v8758_v33 }
 0x3e1   :  { %6757 = vmatpush3.msra.mxu0 %v8796_v44  ;;  %6790 = vmatpush3.msra.mxu1 %v8758_v33  ;;  %v2605_v44 = vld [vmem:[#allocation11 + $0x20] sm:$0xff] }
 0x3e2   :  { %6758 = vmatprep.subr.mxu0 %v8809_v12  ;;  %6791 = vmatprep.subr.mxu1 %v8770_v36 }
 0x3e3   :  { %6759 = vmatpush3.msra.mxu0 %v8809_v12  ;;  %6792 = vmatpush3.msra.mxu1 %v8770_v36 }
 0x3e4   :  { %6760 = vmatprep.mubr.f32.mxu0 %v8806_v7  ;;  %6793 = vmatprep.subr.mxu1 %v8782_v52  ;;  %v9068_v7 = vsub.f32 %v2608_v22, %v9043_v56 }
 0x3e5   :  { %6798 = vmatprep.subr.mxu0 %v8641_v24  ;;  %6761 = vmatmul.mubr.f32.vlgmr.msra.gmra.mxu0 %v8813_v3  ;;  %v2604_v3 = vld [vmem:[#allocation11 + $0x18] sm:$0xff] }
 0x3e6   :  { %6794 = vmatpush3.msra.mxu1 %v8782_v52  ;;  %6799 = vmatpush3.msra.mxu0 %v8641_v24  ;;  %v9089_v30 = vand.u32 4294901760, %v9068_v7  ;;  %v9094_v42 = vand.u32 4294901760, %v2604_v3 }
 0x3e7   :  { %6795 = vmatprep.mubr.f32.mxu1 %v2718_v13  ;;  %6800 = vmatprep.subr.mxu0 %v8649_v48 }
 0x3e8   :  { %6833 = vmatprep.subr.mxu1 %v8620_v8  ;;  %6796 = vmatmul.mubr.f32.vlgmr.msra.gmra.mxu1 %v2728_v14  ;;  %10165 = vst [vmem:[#allocation32_spill] sm:$0xff] %v9089_v30 }
 0x3e9   :  { %6801 = vmatpush3.msra.mxu0 %v8649_v48  ;;  %6834 = vmatpush3.msra.mxu1 %v8620_v8  ;;  %v2616_v8 = vld [vmem:[#allocation11 + $0x78] sm:$0xff] }
 0x3ea   :  { %6802 = vmatprep.subr.mxu0 %v8664_v55  ;;  %6835 = vmatprep.subr.mxu1 %v8625_v29  ;;  %v8953_v45 = vand.u32 4294901760, %v2616_v8 }
 0x3eb   :  { %6803 = vmatpush3.msra.mxu0 %v8664_v55  ;;  %6836 = vmatpush3.msra.mxu1 %v8625_v29  ;;  %v2615_v29 = vld [vmem:[#allocation11 + $0x70] sm:$0xff] }
 0x3ec   :  { %6804 = vmatprep.subr.mxu0 %v8678_v4  ;;  %6837 = vmatprep.subr.mxu1 %v8632_v38  ;;  %v8959_v47 = vand.u32 4294901760, %v2615_v29  ;;  %v8966_v24 = vsub.f32 %v2616_v8, %v8953_v45  ;;  %v9106_v8 = vand.u32 4294901760, %v2603_v15 }
 0x3ed   :  { %6805 = vmatpush3.msra.mxu0 %v8678_v4  ;;  %6838 = vmatpush3.msra.mxu1 %v8632_v38  ;;  %v2614_v38 = vld [vmem:[#allocation11 + $0x68] sm:$0xff] }
 0x3ee   :  { %6806 = vmatprep.subr.mxu0 %v8693_v57  ;;  %6839 = vmatprep.subr.mxu1 %v8637_v10  ;;  %v8968_v5 = vand.u32 4294901760, %v2614_v38  ;;  %v8975_v48 = vsub.f32 %v2615_v29, %v8959_v47 }
 0x3ef   :  { %6807 = vmatpush3.msra.mxu0 %v8693_v57  ;;  %6840 = vmatpush3.msra.mxu1 %v8637_v10  ;;  %v2613_v10 = vld [vmem:[#allocation11 + $0x60] sm:$0xff] }
 0x3f0   :  { %6808 = vmatprep.subr.mxu0 %v8709_v50  ;;  %6841 = vmatprep.subr.mxu1 %v8646_v31  ;;  %v8977_v18 = vand.u32 4294901760, %v2613_v10  ;;  %v8987_v55 = vsub.f32 %v2614_v38, %v8968_v5  ;;  %v8996_v4 = vand.u32 4294901760, %v8975_v48  ;;  %v2609_v57 = vld [vmem:[#allocation11 + $0x40] sm:$0xff] }
 0x3f1   :  { %6809 = vmatpush3.msra.mxu0 %v8709_v50  ;;  %6842 = vmatpush3.msra.mxu1 %v8646_v31  ;;  %v2612_v31 = vld [vmem:[#allocation11 + $0x58] sm:$0xff]  ;;  %v2601_v38 = vld [vmem:[#allocation11] sm:$0xff] }
 0x3f2   :  { %6810 = vmatprep.subr.mxu0 %v8714_v54  ;;  %6843 = vmatprep.subr.mxu1 %v8654_v37  ;;  %v8989_v63 = vand.u32 4294901760, %v2612_v31  ;;  %v8999_v11 = vsub.f32 %v2613_v10, %v8977_v18  ;;  %v3480_v10 = vsub.f32 %v9068_v7, %v9089_v30 }
 0x3f3   :  { %6811 = vmatpush3.msra.mxu0 %v8714_v54  ;;  %6844 = vmatpush3.msra.mxu1 %v8654_v37  ;;  %v2611_v37 = vld [vmem:[#allocation11 + $0x50] sm:$0xff]  ;;  %v9019_v54 = vand.u32 4294901760, %v2609_v57 }
 0x3f4   :  { %6812 = vmatprep.subr.mxu0 %v8726_v27  ;;  %6845 = vmatprep.subr.mxu1 %v8657_v2  ;;  %v9001_v20 = vand.u32 4294901760, %v2611_v37  ;;  %v9015_v50 = vsub.f32 %v2612_v31, %v8989_v63 }
 0x3f5   :  { %6813 = vmatpush3.msra.mxu0 %v8726_v27  ;;  %6846 = vmatpush3.msra.mxu1 %v8657_v2  ;;  %v8984_v2 = vand.u32 4294901760, %v8966_v24  ;;  %v9026_v27 = vand.u32 4294901760, %v8999_v11 }
 0x3f6   :  { %6814 = vmatprep.subr.mxu0 %v8741_v34  ;;  %6847 = vmatprep.subr.mxu1 %v8671_v0  ;;  %v9029_v39 = vsub.f32 %v2611_v37, %v9001_v20  ;;  %v9116_v37 = vsub.f32 %v2604_v3, %v9094_v42 }
 0x3f7   :  { %6815 = vmatpush3.msra.mxu0 %v8741_v34  ;;  %6848 = vmatpush3.msra.mxu1 %v8671_v0  ;;  %v2610_v0 = vld [vmem:[#allocation11 + $0x48] sm:$0xff]  ;;  %v3424_v61 = vsub.f32 %v8966_v24, %v8984_v2  ;;  %v2607_v34 = vld [vmem:[#allocation11 + $0x30] sm:$0xff] }
 0x3f8   :  { %6816 = vmatprep.subr.mxu0 %v8752_v46  ;;  %6849 = vmatprep.subr.mxu1 %v8695_v58  ;;  %v9055_v28 = vand.u32 4294901760, %v9029_v39 }
 0x3f9   :  { %6817 = vmatpush3.msra.mxu0 %v8752_v46  ;;  %6850 = vmatpush3.msra.mxu1 %v8695_v58  ;;  %v9005_v58 = vand.u32 4294901760, %v2610_v0  ;;  %v3425_v53 = vand.u32 4294901760, %v3424_v61  ;;  %v9041_v46 = vand.u32 4294901760, %v9015_v50 }
 0x3fa   :  { %6818 = vmatprep.subr.mxu0 %v8765_v59  ;;  %6851 = vmatprep.subr.mxu1 %v8702_v62 }
 0x3fb   :  { %6819 = vmatpush3.msra.mxu0 %v8765_v59  ;;  %6852 = vmatpush3.msra.mxu1 %v8702_v62  ;;  %v9012_v62 = vand.u32 4294901760, %v8987_v55  ;;  %v2606_v59 = vld [vmem:[#allocation11 + $0x28] sm:$0xff] }
 0x3fc   :  { %6820 = vmatprep.subr.mxu0 %v8777_v23  ;;  %6853 = vmatprep.subr.mxu1 %v8722_v26  ;;  %v9070_v12 = vand.u32 4294901760, %v2606_v59 }
 0x3fd   :  { %6821 = vmatpush3.msra.mxu0 %v8777_v23  ;;  %6854 = vmatpush3.msra.mxu1 %v8722_v26  ;;  %v3431_v26 = vsub.f32 %v8975_v48, %v8996_v4  ;;  %v3445_v23 = vsub.f32 %v8999_v11, %v9026_v27 }
 0x3fe   :  { %6822 = vmatprep.subr.mxu0 %v8793_v41  ;;  %6855 = vmatprep.subr.mxu1 %v8734_v6  ;;  %v9092_v51 = vsub.f32 %v2606_v59, %v9070_v12  ;;  %v9137_v59 = vand.u32 4294901760, %v9116_v37 }
 0x3ff   :  { %6823 = vmatpush3.msra.mxu0 %v8793_v41  ;;  %6856 = vmatpush3.msra.mxu1 %v8734_v6  ;;  %v9034_v6 = vsub.f32 %v2610_v0, %v9005_v58  ;;  %v3432_v35 = vand.u32 4294901760, %v3431_v26  ;;  %v9057_v41 = vand.u32 4294901760, %v2607_v34  ;;  %v9118_v0 = vand.u32 4294901760, %v2602_v17 }
 0x400   :  { %6824 = vmatprep.subr.mxu0 %v8803_v60  ;;  %6857 = vmatprep.subr.mxu1 %v8746_v21  ;;  %v9113_v31 = vand.u32 4294901760, %v9092_v51  ;;  %v9128_v26 = vsub.f32 %v2603_v15, %v9106_v8  ;;  %10169 = vst [vmem:[#allocation36_spill] sm:$0xff] %v9137_v59 }
 0x401   :  { %6825 = vmatpush3.msra.mxu0 %v8803_v60  ;;  %6858 = vmatpush3.msra.mxu1 %v8746_v21  ;;  %v3438_v21 = vsub.f32 %v8987_v55, %v9012_v62  ;;  %v3452_v60 = vsub.f32 %v9015_v50, %v9041_v46  ;;  %v9080_v13 = vsub.f32 %v2607_v34, %v9057_v41  ;;  %v9130_v34 = vand.u32 4294901760, %v2601_v38 }
 0x402   :  { %6826 = vmatprep.subr.mxu0 %v8819_v40  ;;  %6859 = vmatprep.subr.mxu1 %v8758_v33  ;;  %10167 = vst [vmem:[#allocation34_spill] sm:$0xff] %v9113_v31 }
 0x403   :  { %6827 = vmatpush3.msra.mxu0 %v8819_v40  ;;  %6860 = vmatpush3.msra.mxu1 %v8758_v33  ;;  %v9048_v33 = vsub.f32 %v2609_v57, %v9019_v54  ;;  %v3446_v40 = vand.u32 4294901760, %v3445_v23  ;;  %v3453_v19 = vand.u32 4294901760, %v3452_v60  ;;  %v9101_v16 = vand.u32 4294901760, %v9080_v13 }
 0x404   :  { %6828 = vmatprep.subr.mxu0 %v8827_v49  ;;  %6861 = vmatprep.subr.mxu1 %v8770_v36  ;;  %v9150_v60 = vsub.f32 %v2601_v38, %v9130_v34 }
 0x405   :  { %6829 = vmatpush3.msra.mxu0 %v8827_v49  ;;  %6830 = vmatprep.mubr.f32.mxu0 %v8784_v1  ;;  %v9082_v49 = vand.u32 4294901760, %v2605_v44  ;;  %10166 = vst [vmem:[#allocation33_spill] sm:$0xff] %v9101_v16  ;;  %v3487_v61 = vsub.f32 %v9080_v13, %v9101_v16 }
 0x406   :  { %6862 = vmatpush3.msra.mxu1 %v8770_v36  ;;  %6831 = vmatmul.mubr.f32.vlgmr.msra.gmra.mxu0 %v8787_v25  ;;  %v9062_v36 = vand.u32 4294901760, %v9034_v6 }
 0x407   :  { %6863 = vmatprep.subr.mxu1 %v8782_v52  ;;  %6865 = vmatprep.mubr.f32.mxu1 %v8784_v1  ;;  %v3439_v1 = vand.u32 4294901760, %v3438_v21  ;;  %v9104_v9 = vsub.f32 %v2605_v44, %v9082_v49  ;;  %v3494_v21 = vsub.f32 %v9092_v51, %v9113_v31  ;;  %v3488_v23 = vand.u32 4294901760, %v3487_v61  ;;  %v5454_v61 = vld [vmem:[%s10038_s6] ss:$0 sm:$0xff] }
 0x408   :  { %6864 = vmatpush3.msra.mxu1 %v8782_v52  ;;  %6868 = vmatprep.subr.mxu0 %v8953_v45  ;;  %v9074_v52 = vand.u32 4294901760, %v9048_v33  ;;  %v3466_v14 = vsub.f32 %v9034_v6, %v9062_v36 }
 0x409   :  { %6866 = vmatmul.mubr.f32.vlgmr.msra.gmra.mxu1 %v8787_v25  ;;  %6903 = vmatprep.subr.mxu1 %v3425_v53  ;;  %v3459_v25 = vsub.f32 %v9029_v39, %v9055_v28  ;;  %v9125_v22 = vand.u32 4294901760, %v9104_v9  ;;  %v3495_v3 = vand.u32 4294901760, %v3494_v21 }
 0x40a   :  { %6904 = vmatpush3.msra.mxu1 %v3425_v53  ;;  %6869 = vmatpush3.msra.mxu0 %v8953_v45  ;;  %v3473_v43 = vsub.f32 %v9048_v33, %v9074_v52  ;;  %v3467_v29 = vand.u32 4294901760, %v3466_v14  ;;  %v3481_v53 = vand.u32 4294901760, %v3480_v10 }
 0x40b   :  { %6905 = vmatprep.subr.mxu1 %v3432_v35  ;;  %6870 = vmatprep.subr.mxu0 %v8959_v47  ;;  %v3460_v32 = vand.u32 4294901760, %v3459_v25  ;;  %10168 = vst [vmem:[#allocation35_spill] sm:$0xff] %v9125_v22  ;;  %v3501_v44 = vsub.f32 %v9104_v9, %v9125_v22 }
 0x40c   :  { %6906 = vmatpush3.msra.mxu1 %v3432_v35  ;;  %6871 = vmatpush3.msra.mxu0 %v8959_v47  ;;  %v3474_v57 = vand.u32 4294901760, %v3473_v43  ;;  %v9140_v35 = vsub.f32 %v2602_v17, %v9118_v0 }
 0x40d   :  { %6907 = vmatprep.subr.mxu1 %v3439_v1  ;;  %6872 = vmatprep.subr.mxu0 %v8968_v5  ;;  %v3502_v14 = vand.u32 4294901760, %v3501_v44 }
 0x40e   :  { %6908 = vmatpush3.msra.mxu1 %v3439_v1  ;;  %6873 = vmatpush3.msra.mxu0 %v8968_v5  ;;  %v9147_v1 = vand.u32 4294901760, %v9128_v26  ;;  %v9157_v25 = vand.u32 4294901760, %v9140_v35 }
 0x40f   :  { %6909 = vmatprep.subr.mxu1 %v3446_v40  ;;  %6874 = vmatprep.subr.mxu0 %v8977_v18 }
 0x410   :  { %6910 = vmatpush3.msra.mxu1 %v3446_v40  ;;  %6875 = vmatpush3.msra.mxu0 %v8977_v18  ;;  %10170 = vst [vmem:[#allocation37_spill] sm:$0xff] %v9147_v1  ;;  %v3508_v40 = vsub.f32 %v9116_v37, %v9137_v59  ;;  %10171 = vst [vmem:[#allocation38_spill] sm:$0xff] %v9157_v25  ;;  %v3515_v15 = vsub.f32 %v9128_v26, %v9147_v1 }
 0x411   :  { %6911 = vmatprep.subr.mxu1 %v3453_v19  ;;  %6876 = vmatprep.subr.mxu0 %v8989_v63  ;;  %v3522_v17 = vsub.f32 %v9140_v35, %v9157_v25 }
 0x412   :  { %6912 = vmatpush3.msra.mxu1 %v3453_v19  ;;  %6877 = vmatpush3.msra.mxu0 %v8989_v63  ;;  %v9164_v19 = vand.u32 4294901760, %v9150_v60  ;;  %v3509_v43 = vand.u32 4294901760, %v3508_v40 }
 0x413   :  { %6913 = vmatprep.subr.mxu1 %v3460_v32  ;;  %6878 = vmatprep.subr.mxu0 %v9001_v20  ;;  %v3523_v38 = vand.u32 4294901760, %v3522_v17 }
 0x414   :  { %6914 = vmatpush3.msra.mxu1 %v3460_v32  ;;  %6879 = vmatpush3.msra.mxu0 %v9001_v20  ;;  %10172 = vst [vmem:[#allocation24_spill] sm:$0xff] %v9164_v19  ;;  %v3516_v32 = vand.u32 4294901760, %v3515_v15 }
 0x415   :  { %6915 = vmatprep.subr.mxu1 %v3467_v29  ;;  %6880 = vmatprep.subr.mxu0 %v9005_v58 }
 0x416   :  { %6916 = vmatpush3.msra.mxu1 %v3467_v29  ;;  %6881 = vmatpush3.msra.mxu0 %v9005_v58  ;;  %v3529_v29 = vsub.f32 %v9150_v60, %v9164_v19 }
 0x417   :  { %6917 = vmatprep.subr.mxu1 %v3474_v57  ;;  %6882 = vmatprep.subr.mxu0 %v9019_v54 }
 0x418   :  { %6918 = vmatpush3.msra.mxu1 %v3474_v57  ;;  %6883 = vmatpush3.msra.mxu0 %v9019_v54  ;;  %v3530_v10 = vand.u32 4294901760, %v3529_v29 }
 0x419   :  { %6919 = vmatprep.subr.mxu1 %v3481_v53  ;;  %6884 = vmatprep.subr.mxu0 %v9043_v56 }
 0x41a   :  { %6920 = vmatpush3.msra.mxu1 %v3481_v53  ;;  %6885 = vmatpush3.msra.mxu0 %v9043_v56 }
 0x41b   :  { %6921 = vmatprep.subr.mxu1 %v3488_v23  ;;  %6886 = vmatprep.subr.mxu0 %v9057_v41 }
 0x41c   :  { %6922 = vmatpush3.msra.mxu1 %v3488_v23  ;;  %6887 = vmatpush3.msra.mxu0 %v9057_v41 }
 0x41d   :  { %6923 = vmatprep.subr.mxu1 %v3495_v3  ;;  %6888 = vmatprep.subr.mxu0 %v9070_v12 }
 0x41e   :  { %6924 = vmatpush3.msra.mxu1 %v3495_v3  ;;  %6889 = vmatpush3.msra.mxu0 %v9070_v12 }
 0x41f   :  { %6925 = vmatprep.subr.mxu1 %v3502_v14  ;;  %6890 = vmatprep.subr.mxu0 %v9082_v49 }
 0x420   :  { %6926 = vmatpush3.msra.mxu1 %v3502_v14  ;;  %6891 = vmatpush3.msra.mxu0 %v9082_v49 }
 0x421   :  { %6927 = vmatprep.subr.mxu1 %v3509_v43  ;;  %6892 = vmatprep.subr.mxu0 %v9094_v42 }
 0x422   :  { %6928 = vmatpush3.msra.mxu1 %v3509_v43  ;;  %6893 = vmatpush3.msra.mxu0 %v9094_v42 }
 0x423   :  { %6929 = vmatprep.subr.mxu1 %v3516_v32  ;;  %6894 = vmatprep.subr.mxu0 %v9106_v8 }
 0x424   :  { %6930 = vmatpush3.msra.mxu1 %v3516_v32  ;;  %6895 = vmatpush3.msra.mxu0 %v9106_v8 }
 0x425   :  { %6931 = vmatprep.subr.mxu1 %v3523_v38  ;;  %6896 = vmatprep.subr.mxu0 %v9118_v0 }
 0x426   :  { %6932 = vmatpush3.msra.mxu1 %v3523_v38  ;;  %6897 = vmatpush3.msra.mxu0 %v9118_v0 }
 0x427   :  { %6933 = vmatprep.subr.mxu1 %v3530_v10  ;;  %6898 = vmatprep.subr.mxu0 %v9130_v34 }
 0x428   :  { %6934 = vmatpush3.msra.mxu1 %v3530_v10  ;;  %6899 = vmatpush3.msra.mxu0 %v9130_v34 }
 0x429   :  { %6973 = vmatprep.subr.mxu1 %v8953_v45  ;;  %6938 = vmatprep.subr.mxu0 %v8966_v24 }
 0x453   :  { %v6622_v57 = vpop.f32.mrf.mxu0 }
 0x454   :  { %v2183_v21 = vadd.f32 %v6622_v57, %v5454_v61 }
 0x455   :  { %v2172_v53 = vpop.f32.mrf.mxu0 }
 0x456   :  { %v2173_v3 = vadd.f32 %v5454_v61, %v2172_v53 }
 0x458   :  { %v6636_v23 = vpop.f32.mrf.mxu0 }
 0x45a   :  { %v2345_v14 = vpop.f32.mrf.mxu0 }
 0x45b   :  { %v6629_v44 = vpop.f32.mrf.mxu1 }
 0x45c   :  { %v2270_v40 = vadd.f32 %v6629_v44, %v2183_v21 }
 0x45d   :  { %v2263_v15 = vpop.f32.mrf.mxu1 }
 0x45e   :  { %v2353_v43 = vadd.f32 %v6636_v23, %v2270_v40  ;;  %v2264_v17 = vadd.f32 %v2263_v15, %v2173_v3  ;;  %v6650_v38 = vpop.f32.mrf.mxu0 }
 0x460   :  { %v2346_v32 = vadd.f32 %v2345_v14, %v2264_v17  ;;  %v6643_v29 = vpop.f32.mrf.mxu1  ;;  %v2512_v59 = vpop.f32.mrf.mxu0  ;;  %v4022_v14 = vld [vmem:[#allocation14 + $0x40] sm:$0xff] }
 0x461   :  { %v2436_v10 = vadd.f32 %v6643_v29, %v2353_v43  ;;  %v9412_v43 = vand.u32 4294901760, %v4022_v14 }
 0x462   :  { %v2427_v19 = vpop.f32.mrf.mxu1 }
 0x463   :  { %v2519_v25 = vadd.f32 %v6650_v38, %v2436_v10  ;;  %v2428_v1 = vadd.f32 %v2427_v19, %v2346_v32  ;;  %v4023_v19 = vld [vmem:[#allocation14 + $0x48] sm:$0xff]  ;;  %v4021_v32 = vld [vmem:[#allocation14 + $0x38] sm:$0xff]  ;;  %v9420_v38 = vsub.f32 %v4022_v14, %v9412_v43 }
 0x464   :  { %v6657_v22 = vpop.f32.mrf.mxu1  ;;  %v9406_v3 = vand.u32 4294901760, %v4023_v19  ;;  %v9422_v10 = vand.u32 4294901760, %v4021_v32 }
 0x465   :  { %v2513_v31 = vadd.f32 %v2512_v59, %v2428_v1  ;;  %v2598_v16 = vadd.f32 %v6657_v22, %v2519_v25 }
 0x466   :  { %v2591_v57 = vpop.f32.mrf.mxu1  ;;  %v9410_v15 = vsub.f32 %v4023_v19, %v9406_v3  ;;  %v4014_v19 = vld [vmem:[#allocation14] sm:$0xff] }
 0x467   :  { %v9188_v30 = vand.u32 4294901760, %v2598_v16  ;;  %v2592_v61 = vadd.f32 %v2591_v57, %v2513_v31  ;;  %v4020_v57 = vld [vmem:[#allocation14 + $0x30] sm:$0xff] }
 0x468   :  { %v9417_v29 = vand.u32 4294901760, %v9410_v15 }
 0x469   :  { %v9191_v53 = vsub.f32 %v2598_v16, %v9188_v30  ;;  %v9193_v21 = vand.u32 4294901760, %v2592_v61 }
 0x46b   :  { %v3412_v23 = vand.u32 4294901760, %v9191_v53  ;;  %v3401_v44 = vsub.f32 %v2592_v61, %v9193_v21  ;;  %6935 = vmatprep.mubr.f32.mxu1 %v9193_v21  ;;  %v4184_v61 = vsub.f32 %v9410_v15, %v9417_v29 }
 0x46c   :  { %6936 = vmatmul.mubr.f32.vlgmr.msra.gmra.mxu1 %v9188_v30 }
 0x46d   :  { %6974 = vmatpush3.msra.mxu1 %v8953_v45  ;;  %v3402_v22 = vand.u32 4294901760, %v3401_v44  ;;  %v3413_v31 = vsub.f32 %v9191_v53, %v3412_v23 }
 0x46e   :  { %6975 = vmatprep.subr.mxu1 %v8959_v47 }
 0x46f   :  { %6976 = vmatpush3.msra.mxu1 %v8959_v47  ;;  %7005 = vmatprep.mubr.f32.mxu1 %v3402_v22  ;;  %v3403_v16 = vsub.f32 %v3401_v44, %v3402_v22  ;;  %v3414_v1 = vand.u32 4294901760, %v3413_v31  ;;  %v4185_v22 = vand.u32 4294901760, %v4184_v61 }
 0x470   :  { %6977 = vmatprep.subr.mxu1 %v8968_v5 }
 0x471   :  { %6978 = vmatpush3.msra.mxu1 %v8968_v5  ;;  %v3404_v59 = vand.u32 4294901760, %v3403_v16 }
 0x472   :  { %6979 = vmatprep.subr.mxu1 %v8977_v18 }
 0x473   :  { %6980 = vmatpush3.msra.mxu1 %v8977_v18  ;;  %6900 = vmatprep.mubr.f32.mxu0 %v3404_v59 }
 0x474   :  { %6981 = vmatprep.subr.mxu1 %v8989_v63  ;;  %6901 = vmatmul.mubr.f32.vlgmr.msra.gmra.mxu0 %v3414_v1 }
 0x475   :  { %6939 = vmatpush3.msra.mxu0 %v8966_v24  ;;  %6982 = vmatpush3.msra.mxu1 %v8989_v63  ;;  %v10175_v24 = vld [vmem:[#allocation34_spill] sm:$0xff] }
 0x476   :  { %6940 = vmatprep.subr.mxu0 %v8975_v48  ;;  %6970 = vmatprep.mubr.f32.mxu0 %v3401_v44  ;;  %v4019_v44 = vld [vmem:[#allocation14 + $0x28] sm:$0xff] }
 0x477   :  { %6983 = vmatprep.subr.mxu1 %v9001_v20  ;;  %6941 = vmatpush3.msra.mxu0 %v8975_v48  ;;  %v10177_v48 = vld [vmem:[#allocation36_spill] sm:$0xff]  ;;  %v9447_v1 = vand.u32 4294901760, %v4019_v44 }
 0x478   :  { %6984 = vmatpush3.msra.mxu1 %v9001_v20  ;;  %6942 = vmatprep.subr.mxu0 %v8987_v55 }
 0x479   :  { %6985 = vmatprep.subr.mxu1 %v9005_v58  ;;  %6943 = vmatpush3.msra.mxu0 %v8987_v55  ;;  %v10180_v55 = vld [vmem:[#allocation24_spill] sm:$0xff] }
 0x47a   :  { %6986 = vmatpush3.msra.mxu1 %v9005_v58  ;;  %6944 = vmatprep.subr.mxu0 %v8999_v11 }
 0x47b   :  { %6987 = vmatprep.subr.mxu1 %v9019_v54  ;;  %6945 = vmatpush3.msra.mxu0 %v8999_v11  ;;  %v4027_v11 = vld [vmem:[#allocation14 + $0x68] sm:$0xff] }
 0x47c   :  { %6988 = vmatpush3.msra.mxu1 %v9019_v54  ;;  %6946 = vmatprep.subr.mxu0 %v9015_v50 }
 0x47d   :  { %6989 = vmatprep.subr.mxu1 %v9043_v56  ;;  %6947 = vmatpush3.msra.mxu0 %v9015_v50  ;;  %v4026_v50 = vld [vmem:[#allocation14 + $0x60] sm:$0xff] }
 0x47e   :  { %6990 = vmatpush3.msra.mxu1 %v9043_v56  ;;  %6948 = vmatprep.subr.mxu0 %v9029_v39 }
 0x47f   :  { %6991 = vmatprep.subr.mxu1 %v9057_v41  ;;  %6949 = vmatpush3.msra.mxu0 %v9029_v39  ;;  %v9341_v39 = vand.u32 4294901760, %v4026_v50 }
 0x480   :  { %6992 = vmatpush3.msra.mxu1 %v9057_v41  ;;  %6950 = vmatprep.subr.mxu0 %v9034_v6 }
 0x481   :  { %6993 = vmatprep.subr.mxu1 %v9070_v12  ;;  %6951 = vmatpush3.msra.mxu0 %v9034_v6 }
 0x482   :  { %6994 = vmatpush3.msra.mxu1 %v9070_v12  ;;  %6952 = vmatprep.subr.mxu0 %v9048_v33 }
 0x483   :  { %6995 = vmatprep.subr.mxu1 %v9082_v49  ;;  %6953 = vmatpush3.msra.mxu0 %v9048_v33 }
 0x484   :  { %6996 = vmatpush3.msra.mxu1 %v9082_v49  ;;  %6954 = vmatprep.subr.mxu0 %v9068_v7 }
 0x485   :  { %6997 = vmatprep.subr.mxu1 %v9094_v42  ;;  %6955 = vmatpush3.msra.mxu0 %v9068_v7 }
 0x486   :  { %6998 = vmatpush3.msra.mxu1 %v9094_v42  ;;  %6956 = vmatprep.subr.mxu0 %v9080_v13 }
 0x487   :  { %6999 = vmatprep.subr.mxu1 %v9106_v8  ;;  %6957 = vmatpush3.msra.mxu0 %v9080_v13 }
 0x488   :  { %7000 = vmatpush3.msra.mxu1 %v9106_v8  ;;  %6958 = vmatprep.subr.mxu0 %v9092_v51 }
 0x489   :  { %7001 = vmatprep.subr.mxu1 %v9118_v0  ;;  %6959 = vmatpush3.msra.mxu0 %v9092_v51 }
 0x48a   :  { %7002 = vmatpush3.msra.mxu1 %v9118_v0  ;;  %6960 = vmatprep.subr.mxu0 %v9104_v9 }
 0x48b   :  { %7003 = vmatprep.subr.mxu1 %v9130_v34  ;;  %6961 = vmatpush3.msra.mxu0 %v9104_v9 }
 0x48c   :  { %7004 = vmatpush3.msra.mxu1 %v9130_v34  ;;  %6962 = vmatprep.subr.mxu0 %v9116_v37 }
 0x48d   :  { %7006 = vmatmul.mubr.f32.vlgmr.msra.gmra.mxu1 %v3412_v23  ;;  %7043 = vmatprep.subr.mxu1 %v8953_v45  ;;  %v9434_v23 = vand.u32 4294901760, %v4020_v57 }
 0x48e   :  { %6963 = vmatpush3.msra.mxu0 %v9116_v37  ;;  %7044 = vmatpush3.msra.mxu1 %v8953_v45  ;;  %v10173_v45 = vld [vmem:[#allocation32_spill] sm:$0xff] }
 0x48f   :  { %7075 = vmatprep.mubr.f32.mxu1 %v9193_v21  ;;  %6964 = vmatprep.subr.mxu0 %v9128_v26  ;;  %v9444_v59 = vsub.f32 %v4020_v57, %v9434_v23  ;;  %v9506_v57 = vand.u32 4294901760, %v4014_v19 }
 0x490   :  { %7045 = vmatprep.subr.mxu1 %v8959_v47  ;;  %6965 = vmatpush3.msra.mxu0 %v9128_v26 }
 0x491   :  { %7046 = vmatpush3.msra.mxu1 %v8959_v47  ;;  %6966 = vmatprep.subr.mxu0 %v9140_v35  ;;  %v10174_v47 = vld [vmem:[#allocation33_spill] sm:$0xff] }
 0x492   :  { %7047 = vmatprep.subr.mxu1 %v8968_v5  ;;  %6967 = vmatpush3.msra.mxu0 %v9140_v35 }
 0x493   :  { %7048 = vmatpush3.msra.mxu1 %v8968_v5  ;;  %6968 = vmatprep.subr.mxu0 %v9150_v60  ;;  %v10176_v5 = vld [vmem:[#allocation35_spill] sm:$0xff] }
 0x494   :  { %7049 = vmatprep.subr.mxu1 %v8977_v18  ;;  %6969 = vmatpush3.msra.mxu0 %v9150_v60 }
 0x495   :  { %7050 = vmatpush3.msra.mxu1 %v8977_v18  ;;  %6971 = vmatmul.mubr.f32.vlgmr.msra.gmra.mxu0 %v9191_v53  ;;  %v10178_v18 = vld [vmem:[#allocation37_spill] sm:$0xff]  ;;  %v9429_v53 = vand.u32 4294901760, %v9420_v38 }
 0x496   :  { %7008 = vmatprep.subr.mxu0 %v8984_v2  ;;  %7051 = vmatprep.subr.mxu1 %v8989_v63 }
 0x497   :  { %7009 = vmatpush3.msra.mxu0 %v8984_v2  ;;  %7040 = vmatprep.mubr.f32.mxu0 %v9193_v21  ;;  %v10179_v2 = vld [vmem:[#allocation38_spill] sm:$0xff]  ;;  %10181 = vst [vmem:[#allocation39_spill] sm:$0xff] %v9429_v53  ;;  %v9432_v21 = vsub.f32 %v4021_v32, %v9422_v10  ;;  %v4191_v31 = vsub.f32 %v9420_v38, %v9429_v53 }
 0x498   :  { %7052 = vmatpush3.msra.mxu1 %v8989_v63  ;;  %7010 = vmatprep.subr.mxu0 %v8996_v4  ;;  %v4029_v63 = vld [vmem:[#allocation14 + $0x78] sm:$0xff] }
 0x499   :  { %7053 = vmatprep.subr.mxu1 %v9001_v20  ;;  %7011 = vmatpush3.msra.mxu0 %v8996_v4  ;;  %v4028_v4 = vld [vmem:[#allocation14 + $0x70] sm:$0xff]  ;;  %v9441_v16 = vand.u32 4294901760, %v9432_v21 }
 0x49a   :  { %7054 = vmatpush3.msra.mxu1 %v9001_v20  ;;  %7012 = vmatprep.subr.mxu0 %v9012_v62  ;;  %v9335_v20 = vand.u32 4294901760, %v4029_v63 }
 0x49b   :  { %7055 = vmatprep.subr.mxu1 %v9005_v58  ;;  %7013 = vmatpush3.msra.mxu0 %v9012_v62  ;;  %v9339_v62 = vand.u32 4294901760, %v4027_v11  ;;  %10182 = vst [vmem:[#allocation40_spill] sm:$0xff] %v9441_v16 }
 0x49c   :  { %7056 = vmatpush3.msra.mxu1 %v9005_v58  ;;  %7014 = vmatprep.subr.mxu0 %v9026_v27  ;;  %v9337_v58 = vand.u32 4294901760, %v4028_v4 }
 0x49d   :  { %7057 = vmatprep.subr.mxu1 %v9019_v54  ;;  %7015 = vmatpush3.msra.mxu0 %v9026_v27  ;;  %v4024_v27 = vld [vmem:[#allocation14 + $0x50] sm:$0xff] }
 0x49e   :  { %7058 = vmatpush3.msra.mxu1 %v9019_v54  ;;  %7016 = vmatprep.subr.mxu0 %v9041_v46  ;;  %v4025_v54 = vld [vmem:[#allocation14 + $0x58] sm:$0xff]  ;;  %v9351_v33 = vsub.f32 %v4028_v4, %v9337_v58 }
 0x49f   :  { %7059 = vmatprep.subr.mxu1 %v9043_v56  ;;  %7017 = vmatpush3.msra.mxu0 %v9041_v46  ;;  %v9343_v6 = vand.u32 4294901760, %v4025_v54  ;;  %v9345_v46 = vand.u32 4294901760, %v4024_v27 }
 0x4a0   :  { %7060 = vmatpush3.msra.mxu1 %v9043_v56  ;;  %7018 = vmatprep.subr.mxu0 %v9055_v28  ;;  %v9348_v56 = vsub.f32 %v4029_v63, %v9335_v20 }
 0x4a1   :  { %7061 = vmatprep.subr.mxu1 %v9057_v41  ;;  %7019 = vmatpush3.msra.mxu0 %v9055_v28  ;;  %v9354_v28 = vsub.f32 %v4027_v11, %v9339_v62  ;;  %v9375_v13 = vsub.f32 %v4024_v27, %v9345_v46 }
 0x4a2   :  { %7062 = vmatpush3.msra.mxu1 %v9057_v41  ;;  %7020 = vmatprep.subr.mxu0 %v9062_v36  ;;  %v9358_v41 = vsub.f32 %v4026_v50, %v9341_v39  ;;  %v9365_v7 = vand.u32 4294901760, %v9348_v56 }
 0x4a3   :  { %7063 = vmatprep.subr.mxu1 %v9070_v12  ;;  %7021 = vmatpush3.msra.mxu0 %v9062_v36  ;;  %v9361_v36 = vsub.f32 %v4025_v54, %v9343_v6  ;;  %v9395_v26 = vand.u32 4294901760, %v9375_v13  ;;  %v4016_v54 = vld [vmem:[#allocation14 + $0x10] sm:$0xff] }
 0x4a4   :  { %7064 = vmatpush3.msra.mxu1 %v9070_v12  ;;  %7022 = vmatprep.subr.mxu0 %v9074_v52  ;;  %v9368_v12 = vand.u32 4294901760, %v9351_v33 }
 0x4a5   :  { %7065 = vmatprep.subr.mxu1 %v9082_v49  ;;  %7023 = vmatpush3.msra.mxu0 %v9074_v52  ;;  %v9371_v52 = vand.u32 4294901760, %v9354_v28  ;;  %v9388_v9 = vand.u32 4294901760, %v9361_v36  ;;  %v4177_v25 = vsub.f32 %v9375_v13, %v9395_v26 }
 0x4a6   :  { %7066 = vmatpush3.msra.mxu1 %v9082_v49  ;;  %7024 = vmatprep.subr.mxu0 %v10173_v45  ;;  %v9378_v49 = vand.u32 4294901760, %v9358_v41  ;;  %v4149_v51 = vsub.f32 %v9351_v33, %v9368_v12 }
 0x4a7   :  { %7067 = vmatprep.subr.mxu1 %v9094_v42  ;;  %7025 = vmatpush3.msra.mxu0 %v10173_v45  ;;  %v4170_v35 = vsub.f32 %v9361_v36, %v9388_v9  ;;  %v4178_v17 = vand.u32 4294901760, %v4177_v25  ;;  %v4018_v45 = vld [vmem:[#allocation14 + $0x20] sm:$0xff] }
 0x4a8   :  { %7068 = vmatpush3.msra.mxu1 %v9094_v42  ;;  %7026 = vmatprep.subr.mxu0 %v10174_v47  ;;  %v4156_v42 = vsub.f32 %v9354_v28, %v9371_v52  ;;  %v4150_v37 = vand.u32 4294901760, %v4149_v51 }
 0x4a9   :  { %7069 = vmatprep.subr.mxu1 %v9106_v8  ;;  %7027 = vmatpush3.msra.mxu0 %v10174_v47  ;;  %v4171_v40 = vand.u32 4294901760, %v4170_v35  ;;  %v4192_v47 = vand.u32 4294901760, %v4191_v31  ;;  %v9516_v31 = vsub.f32 %v4014_v19, %v9506_v57 }
 0x4aa   :  { %7070 = vmatpush3.msra.mxu1 %v9106_v8  ;;  %7028 = vmatprep.subr.mxu0 %v10175_v24 }
 0x4ab   :  { %7071 = vmatprep.subr.mxu1 %v9118_v0  ;;  %7029 = vmatpush3.msra.mxu0 %v10175_v24  ;;  %v4198_v24 = vsub.f32 %v9432_v21, %v9441_v16 }
 0x4ac   :  { %7072 = vmatpush3.msra.mxu1 %v9118_v0  ;;  %7030 = vmatprep.subr.mxu0 %v10176_v5  ;;  %v4163_v0 = vsub.f32 %v9358_v41, %v9378_v49 }
 0x4ad   :  { %7073 = vmatprep.subr.mxu1 %v9130_v34  ;;  %7031 = vmatpush3.msra.mxu0 %v10176_v5  ;;  %v9453_v5 = vand.u32 4294901760, %v9444_v59 }
 0x4ae   :  { %7074 = vmatpush3.msra.mxu1 %v9130_v34  ;;  %7032 = vmatprep.subr.mxu0 %v10177_v48  ;;  %v4157_v34 = vand.u32 4294901760, %v4156_v42  ;;  %v4164_v60 = vand.u32 4294901760, %v4163_v0  ;;  %v9479_v42 = vand.u32 4294901760, %v4016_v54 }
 0x4af   :  { %7076 = vmatmul.mubr.f32.vlgmr.msra.gmra.mxu1 %v9188_v30  ;;  %7033 = vmatpush3.msra.mxu0 %v10177_v48  ;;  %10183 = vst [vmem:[#allocation27_spill] sm:$0xff] %v9453_v5  ;;  %v9455_v48 = vand.u32 4294901760, %v4018_v45  ;;  %v4205_v63 = vsub.f32 %v9444_v59, %v9453_v5 }
 0x4b0   :  { %7034 = vmatprep.subr.mxu0 %v10178_v18  ;;  %v9491_v35 = vsub.f32 %v4016_v54, %v9479_v42  ;;  %v6692_v54 = vpop.f32.mrf.mxu0 }
 0x4b1   :  { %7035 = vmatpush3.msra.mxu0 %v10178_v18  ;;  %v9458_v18 = vsub.f32 %v4019_v44, %v9447_v1  ;;  %v9464_v4 = vsub.f32 %v4018_v45, %v9455_v48  ;;  %v4206_v27 = vand.u32 4294901760, %v4205_v63 }
 0x4b2   :  { %7036 = vmatprep.subr.mxu0 %v10179_v2 }
 0x4b3   :  { %7037 = vmatpush3.msra.mxu0 %v10179_v2  ;;  %v4017_v2 = vld [vmem:[#allocation14 + $0x18] sm:$0xff]  ;;  %v9470_v50 = vand.u32 4294901760, %v9458_v18 }
 0x4b4   :  { %7038 = vmatprep.subr.mxu0 %v10180_v55  ;;  %v9466_v11 = vand.u32 4294901760, %v4017_v2 }
 0x4b5   :  { %7039 = vmatpush3.msra.mxu0 %v10180_v55  ;;  %v4199_v55 = vand.u32 4294901760, %v4198_v24  ;;  %10184 = vst [vmem:[#allocation31_spill] sm:$0xff] %v9470_v50  ;;  %v9523_v24 = vand.u32 4294901760, %v9516_v31 }
 0x4b6   :  { %7041 = vmatmul.mubr.f32.vlgmr.msra.gmra.mxu0 %v9188_v30  ;;  %7078 = vmatprep.subr.mxu0 %v9335_v20  ;;  %v4142_v30 = vsub.f32 %v9348_v56, %v9365_v7  ;;  %v9477_v51 = vsub.f32 %v4017_v2, %v9466_v11 }
 0x4b7   :  { %7079 = vmatpush3.msra.mxu0 %v9335_v20  ;;  %10189 = vst [vmem:[#allocation30_spill] sm:$0xff] %v9523_v24 }
 0x4b8   :  { %7080 = vmatprep.subr.mxu0 %v9337_v58  ;;  %v4143_v8 = vand.u32 4294901760, %v4142_v30  ;;  %v9474_v30 = vand.u32 4294901760, %v9464_v4 }
 0x4b9   :  { %7081 = vmatpush3.msra.mxu0 %v9337_v58 }
 0x4ba   :  { %7082 = vmatprep.subr.mxu0 %v9339_v62  ;;  %7113 = vmatprep.subr.mxu1 %v4143_v8  ;;  %10185 = vst [vmem:[#allocation25_spill] sm:$0xff] %v9474_v30  ;;  %v4219_v0 = vsub.f32 %v9464_v4, %v9474_v30 }
 0x4bb   :  { %7083 = vmatpush3.msra.mxu0 %v9339_v62  ;;  %7114 = vmatpush3.msra.mxu1 %v4143_v8  ;;  %v4212_v8 = vsub.f32 %v9458_v18, %v9470_v50 }
 0x4bc   :  { %7084 = vmatprep.subr.mxu0 %v9341_v39  ;;  %7115 = vmatprep.subr.mxu1 %v4150_v37 }
 0x4bd   :  { %7085 = vmatpush3.msra.mxu0 %v9341_v39  ;;  %7116 = vmatpush3.msra.mxu1 %v4150_v37  ;;  %v4015_v37 = vld [vmem:[#allocation14 + $0x8] sm:$0xff]  ;;  %v4213_v25 = vand.u32 4294901760, %v4212_v8  ;;  %v6727_v8 = vpop.f32.mrf.mxu1 }
 0x4be   :  { %7086 = vmatprep.subr.mxu0 %v9343_v6  ;;  %7117 = vmatprep.subr.mxu1 %v4157_v34 }
 0x4bf   :  { %7087 = vmatpush3.msra.mxu0 %v9343_v6  ;;  %7118 = vmatpush3.msra.mxu1 %v4157_v34  ;;  %v9488_v34 = vand.u32 4294901760, %v9477_v51 }
 0x4c0   :  { %7088 = vmatprep.subr.mxu0 %v9345_v46  ;;  %7119 = vmatprep.subr.mxu1 %v4164_v60 }
 0x4c1   :  { %7089 = vmatpush3.msra.mxu0 %v9345_v46  ;;  %7120 = vmatpush3.msra.mxu1 %v4164_v60  ;;  %10186 = vst [vmem:[#allocation29_spill] sm:$0xff] %v9488_v34  ;;  %v9493_v60 = vand.u32 4294901760, %v4015_v37  ;;  %v4226_v14 = vsub.f32 %v9477_v51, %v9488_v34 }
 0x4c2   :  { %7090 = vmatprep.subr.mxu0 %v9406_v3  ;;  %7121 = vmatprep.subr.mxu1 %v4171_v40 }
 0x4c3   :  { %7091 = vmatpush3.msra.mxu0 %v9406_v3  ;;  %7122 = vmatpush3.msra.mxu1 %v4171_v40  ;;  %v4220_v40 = vand.u32 4294901760, %v4219_v0  ;;  %v9503_v32 = vsub.f32 %v4015_v37, %v9493_v60  ;;  %v4227_v61 = vand.u32 4294901760, %v4226_v14  ;;  %v2883_v37 = vpop.f32.mrf.mxu1 }
 0x4c4   :  { %7092 = vmatprep.subr.mxu0 %v9412_v43  ;;  %7123 = vmatprep.subr.mxu1 %v4178_v17 }
 0x4c5   :  { %7093 = vmatpush3.msra.mxu0 %v9412_v43  ;;  %7124 = vmatpush3.msra.mxu1 %v4178_v17  ;;  %v9500_v17 = vand.u32 4294901760, %v9491_v35  ;;  %v6797_v14 = vpop.f32.mrf.mxu1 }
 0x4c6   :  { %7094 = vmatprep.subr.mxu0 %v9422_v10  ;;  %7125 = vmatprep.subr.mxu1 %v4185_v22 }
 0x4c7   :  { %7095 = vmatpush3.msra.mxu0 %v9422_v10  ;;  %7126 = vmatpush3.msra.mxu1 %v4185_v22  ;;  %10187 = vst [vmem:[#allocation28_spill] sm:$0xff] %v9500_v17  ;;  %v4233_v44 = vsub.f32 %v9491_v35, %v9500_v17  ;;  %v9512_v22 = vand.u32 4294901760, %v9503_v32 }
 0x4c8   :  { %7096 = vmatprep.subr.mxu0 %v9434_v23  ;;  %7127 = vmatprep.subr.mxu1 %v4192_v47 }
 0x4c9   :  { %7097 = vmatpush3.msra.mxu0 %v9434_v23  ;;  %7128 = vmatpush3.msra.mxu1 %v4192_v47  ;;  %10188 = vst [vmem:[#allocation26_spill] sm:$0xff] %v9512_v22  ;;  %v4234_v45 = vand.u32 4294901760, %v4233_v44  ;;  %v4240_v47 = vsub.f32 %v9503_v32, %v9512_v22 }
 0x4ca   :  { %7098 = vmatprep.subr.mxu0 %v9447_v1  ;;  %7129 = vmatprep.subr.mxu1 %v4199_v55 }
 0x4cb   :  { %7099 = vmatpush3.msra.mxu0 %v9447_v1  ;;  %7130 = vmatpush3.msra.mxu1 %v4199_v55  ;;  %v4241_v2 = vand.u32 4294901760, %v4240_v47  ;;  %v4247_v55 = vsub.f32 %v9516_v31, %v9523_v24  ;;  %v3089_v47 = vpop.f32.mrf.mxu1 }
 0x4cc   :  { %7100 = vmatprep.subr.mxu0 %v9455_v48  ;;  %7131 = vmatprep.subr.mxu1 %v4206_v27 }
 0x4cd   :  { %7101 = vmatpush3.msra.mxu0 %v9455_v48  ;;  %7132 = vmatpush3.msra.mxu1 %v4206_v27  ;;  %v4248_v63 = vand.u32 4294901760, %v4247_v55  ;;  %v2722_v27 = vpop.f32.mrf.mxu0  ;;  %v6867_v22 = vpop.f32.mrf.mxu1 }
 0x4ce   :  { %7102 = vmatprep.subr.mxu0 %v9466_v11  ;;  %7133 = vmatprep.subr.mxu1 %v4213_v25  ;;  %v2884_v19 = vadd.f32 %v2883_v37, %v2722_v27 }
 0x4cf   :  { %7103 = vmatpush3.msra.mxu0 %v9466_v11  ;;  %7134 = vmatpush3.msra.mxu1 %v4213_v25  ;;  %v6762_v0 = vpop.f32.mrf.mxu0  ;;  %v2890_v25 = vadd.f32 %v6727_v8, %v6692_v54  ;;  %v3309_v30 = vpop.f32.mrf.mxu1 }
 0x4d0   :  { %7104 = vmatprep.subr.mxu0 %v9479_v42  ;;  %7135 = vmatprep.subr.mxu1 %v4220_v40 }
 0x4d1   :  { %7105 = vmatpush3.msra.mxu0 %v9479_v42  ;;  %7136 = vmatpush3.msra.mxu1 %v4220_v40  ;;  %v2993_v40 = vpop.f32.mrf.mxu0 }
 0x4d2   :  { %7106 = vmatprep.subr.mxu0 %v9493_v60  ;;  %7137 = vmatprep.subr.mxu1 %v4227_v61  ;;  %v2994_v44 = vadd.f32 %v2993_v40, %v2884_v19 }
 0x4d3   :  { %7107 = vmatpush3.msra.mxu0 %v9493_v60  ;;  %7138 = vmatpush3.msra.mxu1 %v4227_v61  ;;  %v3001_v61 = vadd.f32 %v6762_v0, %v2890_v25 }
 0x4d4   :  { %7108 = vmatprep.subr.mxu0 %v9506_v57  ;;  %7139 = vmatprep.subr.mxu1 %v4234_v45  ;;  %v3090_v55 = vadd.f32 %v3089_v47, %v2994_v44 }
 0x4d5   :  { %7109 = vmatpush3.msra.mxu0 %v9506_v57  ;;  %7140 = vmatpush3.msra.mxu1 %v4234_v45  ;;  %v6832_v45 = vpop.f32.mrf.mxu0  ;;  %v3098_v24 = vadd.f32 %v6797_v14, %v3001_v61 }
 0x4d6   :  { %7148 = vmatprep.subr.mxu0 %v9348_v56  ;;  %7141 = vmatprep.subr.mxu1 %v4241_v2 }
 0x4d7   :  { %7142 = vmatpush3.msra.mxu1 %v4241_v2  ;;  %v3216_v2 = vpop.f32.mrf.mxu0 }
 0x4d8   :  { %7143 = vmatprep.subr.mxu1 %v4248_v63  ;;  %v3217_v34 = vadd.f32 %v3216_v2, %v3090_v55 }
 0x4d9   :  { %7144 = vmatpush3.msra.mxu1 %v4248_v63  ;;  %v3223_v63 = vadd.f32 %v6832_v45, %v3098_v24 }
 0x4da   :  { %7183 = vmatprep.subr.mxu1 %v9335_v20  ;;  %v3310_v53 = vadd.f32 %v3309_v30, %v3217_v34  ;;  %v5455_v30 = vld [vmem:[%s10041_s9] ss:$0 sm:$0xff] }
 0x4db   :  { %v3316_v50 = vadd.f32 %v6867_v22, %v3223_v63 }
 0x52c   :  { %v6937_v5 = vpop.f32.mrf.mxu1 }
 0x52e   :  { %v3567_v37 = vpop.f32.mrf.mxu1 }
 0x534   :  { %v6902_v17 = vpop.f32.mrf.mxu0 }
 0x535   :  { %v3417_v54 = vadd.f32 %v6902_v17, %v3316_v50 }
 0x536   :  { %v3406_v16 = vpop.f32.mrf.mxu0 }
 0x537   :  { %v3407_v8 = vadd.f32 %v3406_v16, %v3310_v53  ;;  %v3574_v0 = vadd.f32 %v6937_v5, %v3417_v54 }
 0x539   :  { %v3568_v14 = vadd.f32 %v3567_v37, %v3407_v8 }
 0x54d   :  { %v7007_v25 = vpop.f32.mrf.mxu1 }
 0x54f   :  { %v3773_v44 = vpop.f32.mrf.mxu1 }
 0x555   :  { %v6972_v27 = vpop.f32.mrf.mxu0 }
 0x556   :  { %v3685_v40 = vadd.f32 %v6972_v27, %v3574_v0 }
 0x557   :  { %v3677_v19 = vpop.f32.mrf.mxu0 }
 0x558   :  { %v3678_v61 = vadd.f32 %v3677_v19, %v3568_v14  ;;  %v3782_v47 = vadd.f32 %v7007_v25, %v3685_v40 }
 0x55a   :  { %v3774_v2 = vadd.f32 %v3773_v44, %v3678_v61 }
 0x56f   :  { %v7077_v24 = vpop.f32.mrf.mxu1 }
 0x571   :  { %v3993_v16 = vpop.f32.mrf.mxu1 }
 0x576   :  { %v7042_v45 = vpop.f32.mrf.mxu0 }
 0x577   :  { %v3907_v55 = vadd.f32 %v7042_v45, %v3782_v47 }
 0x578   :  { %v3900_v50 = vpop.f32.mrf.mxu0 }
 0x579   :  { %v4000_v34 = vadd.f32 %v7077_v24, %v3907_v55  ;;  %v3901_v53 = vadd.f32 %v3900_v50, %v3774_v2 }
 0x57b   :  { %v4011_v5 = vadd.f32 %v5455_v30, %v4000_v34  ;;  %v3994_v17 = vadd.f32 %v3993_v16, %v3901_v53  ;;  %v4731_v53 = vld [vmem:[#allocation16 + $0x40] sm:$0xff] }
 0x57d   :  { %v4013_v22 = vmax.f32 %v4011_v5, 0.0  ;;  %v4010_v63 = vadd.f32 %v5455_v30, %v3994_v17  ;;  %v9761_v17 = vand.u32 4294901760, %v4731_v53 }
 0x57f   :  { %v9532_v54 = vand.u32 4294901760, %v4013_v22  ;;  %v4012_v27 = vmax.f32 %v4010_v63, 0.0 }
 0x581   :  { %v9535_v8 = vsub.f32 %v4013_v22, %v9532_v54  ;;  %v9537_v37 = vand.u32 4294901760, %v4012_v27  ;;  %v4730_v22 = vld [vmem:[#allocation16 + $0x38] sm:$0xff] }
 0x583   :  { %v4119_v0 = vsub.f32 %v4012_v27, %v9537_v37  ;;  %7145 = vmatprep.mubr.f32.mxu1 %v9537_v37  ;;  %v4130_v25 = vand.u32 4294901760, %v9535_v8  ;;  %v9768_v27 = vand.u32 4294901760, %v4730_v22 }
 0x584   :  { %7146 = vmatmul.mubr.f32.vlgmr.msra.gmra.mxu1 %v9532_v54 }
 0x585   :  { %7184 = vmatpush3.msra.mxu1 %v9335_v20  ;;  %v4120_v19 = vand.u32 4294901760, %v4119_v0  ;;  %v4131_v40 = vsub.f32 %v9535_v8, %v4130_v25 }
 0x586   :  { %7185 = vmatprep.subr.mxu1 %v9337_v58 }
 0x587   :  { %7186 = vmatpush3.msra.mxu1 %v9337_v58  ;;  %7215 = vmatprep.mubr.f32.mxu1 %v4120_v19  ;;  %v4121_v14 = vsub.f32 %v4119_v0, %v4120_v19  ;;  %v4132_v44 = vand.u32 4294901760, %v4131_v40  ;;  %v4728_v40 = vld [vmem:[#allocation16 + $0x28] sm:$0xff] }
 0x588   :  { %7187 = vmatprep.subr.mxu1 %v9339_v62 }
 0x589   :  { %7188 = vmatpush3.msra.mxu1 %v9339_v62  ;;  %v4122_v61 = vand.u32 4294901760, %v4121_v14 }
 0x58a   :  { %7189 = vmatprep.subr.mxu1 %v9341_v39 }
 0x58b   :  { %7190 = vmatpush3.msra.mxu1 %v9341_v39  ;;  %7110 = vmatprep.mubr.f32.mxu0 %v4122_v61 }
 0x58c   :  { %7191 = vmatprep.subr.mxu1 %v9343_v6  ;;  %7111 = vmatmul.mubr.f32.vlgmr.msra.gmra.mxu0 %v4132_v44 }
 0x58d   :  { %7149 = vmatpush3.msra.mxu0 %v9348_v56  ;;  %7192 = vmatpush3.msra.mxu1 %v9343_v6  ;;  %v10196_v56 = vld [vmem:[#allocation28_spill] sm:$0xff] }
 0x58e   :  { %7150 = vmatprep.subr.mxu0 %v9351_v33  ;;  %7180 = vmatprep.mubr.f32.mxu0 %v4119_v0 }
 0x58f   :  { %7193 = vmatprep.subr.mxu1 %v9345_v46  ;;  %7151 = vmatpush3.msra.mxu0 %v9351_v33  ;;  %v10197_v33 = vld [vmem:[#allocation26_spill] sm:$0xff] }
 0x590   :  { %7194 = vmatpush3.msra.mxu1 %v9345_v46  ;;  %7152 = vmatprep.subr.mxu0 %v9354_v28 }
 0x591   :  { %7195 = vmatprep.subr.mxu1 %v9406_v3  ;;  %7153 = vmatpush3.msra.mxu0 %v9354_v28  ;;  %v10198_v28 = vld [vmem:[#allocation30_spill] sm:$0xff] }
 0x592   :  { %7196 = vmatpush3.msra.mxu1 %v9406_v3  ;;  %7154 = vmatprep.subr.mxu0 %v9358_v41 }
 0x593   :  { %7197 = vmatprep.subr.mxu1 %v9412_v43  ;;  %7155 = vmatpush3.msra.mxu0 %v9358_v41  ;;  %v4738_v41 = vld [vmem:[#allocation16 + $0x78] sm:$0xff] }
 0x594   :  { %7198 = vmatpush3.msra.mxu1 %v9412_v43  ;;  %7156 = vmatprep.subr.mxu0 %v9361_v36 }
 0x595   :  { %7199 = vmatprep.subr.mxu1 %v9422_v10  ;;  %7157 = vmatpush3.msra.mxu0 %v9361_v36  ;;  %v9679_v36 = vand.u32 4294901760, %v4738_v41 }
 0x596   :  { %7200 = vmatpush3.msra.mxu1 %v9422_v10  ;;  %7158 = vmatprep.subr.mxu0 %v9375_v13 }
 0x597   :  { %7201 = vmatprep.subr.mxu1 %v9434_v23  ;;  %7159 = vmatpush3.msra.mxu0 %v9375_v13 }
 0x598   :  { %7202 = vmatpush3.msra.mxu1 %v9434_v23  ;;  %7160 = vmatprep.subr.mxu0 %v9410_v15 }
 0x599   :  { %7203 = vmatprep.subr.mxu1 %v9447_v1  ;;  %7161 = vmatpush3.msra.mxu0 %v9410_v15  ;;  %v4732_v15 = vld [vmem:[#allocation16 + $0x48] sm:$0xff] }
 0x59a   :  { %7204 = vmatpush3.msra.mxu1 %v9447_v1  ;;  %7162 = vmatprep.subr.mxu0 %v9420_v38 }
 0x59b   :  { %7205 = vmatprep.subr.mxu1 %v9455_v48  ;;  %7163 = vmatpush3.msra.mxu0 %v9420_v38 }
 0x59c   :  { %7206 = vmatpush3.msra.mxu1 %v9455_v48  ;;  %7164 = vmatprep.subr.mxu0 %v9432_v21 }
 0x59d   :  { %7207 = vmatprep.subr.mxu1 %v9466_v11  ;;  %7165 = vmatpush3.msra.mxu0 %v9432_v21 }
 0x59e   :  { %7208 = vmatpush3.msra.mxu1 %v9466_v11  ;;  %7166 = vmatprep.subr.mxu0 %v9444_v59 }
 0x59f   :  { %7209 = vmatprep.subr.mxu1 %v9479_v42  ;;  %7167 = vmatpush3.msra.mxu0 %v9444_v59 }
 0x5a0   :  { %7210 = vmatpush3.msra.mxu1 %v9479_v42  ;;  %7168 = vmatprep.subr.mxu0 %v9458_v18 }
 0x5a1   :  { %7211 = vmatprep.subr.mxu1 %v9493_v60  ;;  %7169 = vmatpush3.msra.mxu0 %v9458_v18 }
 0x5a2   :  { %7212 = vmatpush3.msra.mxu1 %v9493_v60  ;;  %7170 = vmatprep.subr.mxu0 %v9464_v4 }
 0x5a3   :  { %7213 = vmatprep.subr.mxu1 %v9506_v57  ;;  %7171 = vmatpush3.msra.mxu0 %v9464_v4 }
 0x5a4   :  { %7214 = vmatpush3.msra.mxu1 %v9506_v57  ;;  %7172 = vmatprep.subr.mxu0 %v9477_v51 }
 0x5a5   :  { %7216 = vmatmul.mubr.f32.vlgmr.msra.gmra.mxu1 %v4130_v25  ;;  %7253 = vmatprep.subr.mxu1 %v9335_v20  ;;  %v9776_v25 = vsub.f32 %v4730_v22, %v9768_v27 }
 0x5a6   :  { %7173 = vmatpush3.msra.mxu0 %v9477_v51  ;;  %7254 = vmatpush3.msra.mxu1 %v9335_v20  ;;  %v10190_v20 = vld [vmem:[#allocation39_spill] sm:$0xff] }
 0x5a7   :  { %7285 = vmatprep.mubr.f32.mxu1 %v9537_v37  ;;  %7174 = vmatprep.subr.mxu0 %v9491_v35  ;;  %v9785_v61 = vand.u32 4294901760, %v9776_v25 }
 0x5a8   :  { %7255 = vmatprep.subr.mxu1 %v9337_v58  ;;  %7175 = vmatpush3.msra.mxu0 %v9491_v35 }
 0x5a9   :  { %7256 = vmatpush3.msra.mxu1 %v9337_v58  ;;  %7176 = vmatprep.subr.mxu0 %v9503_v32  ;;  %v10191_v58 = vld [vmem:[#allocation40_spill] sm:$0xff]  ;;  %10200 = vst [vmem:[#allocation33_spill] sm:$0xff] %v9785_v61 }
 0x5aa   :  { %7257 = vmatprep.subr.mxu1 %v9339_v62  ;;  %7177 = vmatpush3.msra.mxu0 %v9503_v32 }
 0x5ab   :  { %7258 = vmatpush3.msra.mxu1 %v9339_v62  ;;  %7178 = vmatprep.subr.mxu0 %v9516_v31  ;;  %v10192_v62 = vld [vmem:[#allocation27_spill] sm:$0xff] }
 0x5ac   :  { %7259 = vmatprep.subr.mxu1 %v9341_v39  ;;  %7179 = vmatpush3.msra.mxu0 %v9516_v31 }
 0x5ad   :  { %7260 = vmatpush3.msra.mxu1 %v9341_v39  ;;  %7181 = vmatmul.mubr.f32.vlgmr.msra.gmra.mxu0 %v9535_v8  ;;  %v10193_v39 = vld [vmem:[#allocation31_spill] sm:$0xff]  ;;  %v4729_v8 = vld [vmem:[#allocation16 + $0x30] sm:$0xff] }
 0x5ae   :  { %7218 = vmatprep.subr.mxu0 %v9365_v7  ;;  %7261 = vmatprep.subr.mxu1 %v9343_v6  ;;  %v9778_v19 = vand.u32 4294901760, %v4729_v8 }
 0x5af   :  { %7219 = vmatpush3.msra.mxu0 %v9365_v7  ;;  %7250 = vmatprep.mubr.f32.mxu0 %v9537_v37  ;;  %v4737_v7 = vld [vmem:[#allocation16 + $0x70] sm:$0xff] }
 0x5b0   :  { %7262 = vmatpush3.msra.mxu1 %v9343_v6  ;;  %7220 = vmatprep.subr.mxu0 %v9368_v12  ;;  %v10194_v6 = vld [vmem:[#allocation25_spill] sm:$0xff]  ;;  %v9681_v13 = vand.u32 4294901760, %v4737_v7  ;;  %v9788_v44 = vsub.f32 %v4729_v8, %v9778_v19 }
 0x5b1   :  { %7263 = vmatprep.subr.mxu1 %v9345_v46  ;;  %7221 = vmatpush3.msra.mxu0 %v9368_v12  ;;  %v4736_v12 = vld [vmem:[#allocation16 + $0x68] sm:$0xff] }
 0x5b2   :  { %7264 = vmatpush3.msra.mxu1 %v9345_v46  ;;  %7222 = vmatprep.subr.mxu0 %v9371_v52  ;;  %v10195_v46 = vld [vmem:[#allocation29_spill] sm:$0xff]  ;;  %v9698_v21 = vsub.f32 %v4737_v7, %v9681_v13 }
 0x5b3   :  { %7265 = vmatprep.subr.mxu1 %v9406_v3  ;;  %7223 = vmatpush3.msra.mxu0 %v9371_v52  ;;  %v4735_v52 = vld [vmem:[#allocation16 + $0x60] sm:$0xff] }
 0x5b4   :  { %7266 = vmatpush3.msra.mxu1 %v9406_v3  ;;  %7224 = vmatprep.subr.mxu0 %v9378_v49  ;;  %v4733_v3 = vld [vmem:[#allocation16 + $0x50] sm:$0xff]  ;;  %v9718_v4 = vand.u32 4294901760, %v9698_v21 }
 0x5b5   :  { %7267 = vmatprep.subr.mxu1 %v9412_v43  ;;  %7225 = vmatpush3.msra.mxu0 %v9378_v49  ;;  %v9683_v49 = vand.u32 4294901760, %v4736_v12  ;;  %v9693_v38 = vand.u32 4294901760, %v4733_v3 }
 0x5b6   :  { %7268 = vmatpush3.msra.mxu1 %v9412_v43  ;;  %7226 = vmatprep.subr.mxu0 %v9388_v9  ;;  %v9688_v43 = vsub.f32 %v4738_v41, %v9679_v36  ;;  %v4858_v32 = vsub.f32 %v9698_v21, %v9718_v4 }
 0x5b7   :  { %7269 = vmatprep.subr.mxu1 %v9422_v10  ;;  %7227 = vmatpush3.msra.mxu0 %v9388_v9  ;;  %v9685_v9 = vand.u32 4294901760, %v4735_v52  ;;  %v9715_v18 = vsub.f32 %v4733_v3, %v9693_v38 }
 0x5b8   :  { %7270 = vmatpush3.msra.mxu1 %v9422_v10  ;;  %7228 = vmatprep.subr.mxu0 %v9395_v26  ;;  %v9695_v10 = vand.u32 4294901760, %v4732_v15  ;;  %v4859_v45 = vand.u32 4294901760, %v4858_v32 }
 0x5b9   :  { %7271 = vmatprep.subr.mxu1 %v9434_v23  ;;  %7229 = vmatpush3.msra.mxu0 %v9395_v26  ;;  %v4734_v26 = vld [vmem:[#allocation16 + $0x58] sm:$0xff]  ;;  %v9704_v59 = vsub.f32 %v4735_v52, %v9685_v9  ;;  %v9744_v24 = vand.u32 4294901760, %v9715_v18 }
 0x5ba   :  { %7272 = vmatpush3.msra.mxu1 %v9434_v23  ;;  %7230 = vmatprep.subr.mxu0 %v9417_v29  ;;  %v9701_v23 = vsub.f32 %v4736_v12, %v9683_v49 }
 0x5bb   :  { %7273 = vmatprep.subr.mxu1 %v9447_v1  ;;  %7231 = vmatpush3.msra.mxu0 %v9417_v29  ;;  %v9691_v29 = vand.u32 4294901760, %v4734_v26  ;;  %v9724_v51 = vand.u32 4294901760, %v9704_v59  ;;  %v4886_v34 = vsub.f32 %v9715_v18, %v9744_v24 }
 0x5bc   :  { %7274 = vmatpush3.msra.mxu1 %v9447_v1  ;;  %7232 = vmatprep.subr.mxu0 %v10190_v20  ;;  %v9708_v1 = vand.u32 4294901760, %v9688_v43 }
 0x5bd   :  { %7275 = vmatprep.subr.mxu1 %v9455_v48  ;;  %7233 = vmatpush3.msra.mxu0 %v10190_v20  ;;  %v4872_v47 = vsub.f32 %v9704_v59, %v9724_v51  ;;  %v4887_v63 = vand.u32 4294901760, %v4886_v34  ;;  %v9790_v20 = vand.u32 4294901760, %v4728_v40  ;;  %v4723_v34 = vld [vmem:[#allocation16] sm:$0xff] }
 0x5be   :  { %7276 = vmatpush3.msra.mxu1 %v9455_v48  ;;  %7234 = vmatprep.subr.mxu0 %v10191_v58  ;;  %v9711_v48 = vsub.f32 %v4734_v26, %v9691_v29  ;;  %v4725_v26 = vld [vmem:[#allocation16 + $0x10] sm:$0xff]  ;;  %v9849_v22 = vand.u32 4294901760, %v4723_v34 }
 0x5bf   :  { %7277 = vmatprep.subr.mxu1 %v9466_v11  ;;  %7235 = vmatpush3.msra.mxu0 %v10191_v58  ;;  %v4873_v50 = vand.u32 4294901760, %v4872_v47  ;;  %v4727_v58 = vld [vmem:[#allocation16 + $0x20] sm:$0xff]  ;;  %v9822_v32 = vand.u32 4294901760, %v4725_v26 }
 0x5c0   :  { %7278 = vmatpush3.msra.mxu1 %v9466_v11  ;;  %7236 = vmatprep.subr.mxu0 %v10192_v62  ;;  %v9721_v11 = vand.u32 4294901760, %v9701_v23  ;;  %v9730_v35 = vand.u32 4294901760, %v9711_v48 }
 0x5c1   :  { %7279 = vmatprep.subr.mxu1 %v9479_v42  ;;  %7237 = vmatpush3.msra.mxu0 %v10192_v62 }
 0x5c2   :  { %7280 = vmatpush3.msra.mxu1 %v9479_v42  ;;  %7238 = vmatprep.subr.mxu0 %v10193_v39  ;;  %v4851_v42 = vsub.f32 %v9688_v43, %v9708_v1  ;;  %v4879_v2 = vsub.f32 %v9711_v48, %v9730_v35 }
 0x5c3   :  { %7281 = vmatprep.subr.mxu1 %v9493_v60  ;;  %7239 = vmatpush3.msra.mxu0 %v10193_v39  ;;  %v4907_v39 = vsub.f32 %v9776_v25, %v9785_v61 }
 0x5c4   :  { %7282 = vmatpush3.msra.mxu1 %v9493_v60  ;;  %7240 = vmatprep.subr.mxu0 %v10194_v6  ;;  %v9734_v60 = vsub.f32 %v4732_v15, %v9695_v10  ;;  %v4852_v31 = vand.u32 4294901760, %v4851_v42  ;;  %v4880_v16 = vand.u32 4294901760, %v4879_v2 }
 0x5c5   :  { %7283 = vmatprep.subr.mxu1 %v9506_v57  ;;  %7241 = vmatpush3.msra.mxu0 %v10194_v6  ;;  %v9797_v6 = vand.u32 4294901760, %v9788_v44 }
 0x5c6   :  { %7284 = vmatpush3.msra.mxu1 %v9506_v57  ;;  %7242 = vmatprep.subr.mxu0 %v10195_v46  ;;  %v4865_v57 = vsub.f32 %v9701_v23, %v9721_v11  ;;  %v9751_v30 = vand.u32 4294901760, %v9734_v60 }
 0x5c7   :  { %7286 = vmatmul.mubr.f32.vlgmr.msra.gmra.mxu1 %v9532_v54  ;;  %7243 = vmatpush3.msra.mxu0 %v10195_v46  ;;  %10201 = vst [vmem:[#allocation34_spill] sm:$0xff] %v9797_v6  ;;  %v9800_v46 = vsub.f32 %v4728_v40, %v9790_v20  ;;  %v4914_v41 = vsub.f32 %v9788_v44, %v9797_v6 }
 0x5c8   :  { %7244 = vmatprep.subr.mxu0 %v10196_v56  ;;  %7323 = vmatprep.subr.mxu1 %v4852_v31  ;;  %v4866_v55 = vand.u32 4294901760, %v4865_v57  ;;  %v4893_v5 = vsub.f32 %v9734_v60, %v9751_v30 }
 0x5c9   :  { %7245 = vmatpush3.msra.mxu0 %v10196_v56  ;;  %7324 = vmatpush3.msra.mxu1 %v4852_v31  ;;  %v9803_v56 = vand.u32 4294901760, %v4727_v58  ;;  %v9809_v7 = vand.u32 4294901760, %v9800_v46  ;;  %v4915_v3 = vand.u32 4294901760, %v4914_v41  ;;  %v4724_v31 = vld [vmem:[#allocation16 + $0x8] sm:$0xff] }
 0x5ca   :  { %7246 = vmatprep.subr.mxu0 %v10197_v33  ;;  %7325 = vmatprep.subr.mxu1 %v4859_v45  ;;  %v4894_v37 = vand.u32 4294901760, %v4893_v5  ;;  %v9835_v2 = vand.u32 4294901760, %v4724_v31 }
 0x5cb   :  { %7247 = vmatpush3.msra.mxu0 %v10197_v33  ;;  %7326 = vmatpush3.msra.mxu1 %v4859_v45  ;;  %v4726_v33 = vld [vmem:[#allocation16 + $0x18] sm:$0xff]  ;;  %10202 = vst [vmem:[#allocation35_spill] sm:$0xff] %v9809_v7  ;;  %v9814_v52 = vsub.f32 %v4727_v58, %v9803_v56  ;;  %v4921_v15 = vsub.f32 %v9800_v46, %v9809_v7 }
 0x5cc   :  { %7248 = vmatprep.subr.mxu0 %v10198_v28  ;;  %7327 = vmatprep.subr.mxu1 %v4866_v55  ;;  %v9811_v12 = vand.u32 4294901760, %v4726_v33  ;;  %v9847_v5 = vsub.f32 %v4724_v31, %v9835_v2 }
 0x5cd   :  { %7249 = vmatpush3.msra.mxu0 %v10198_v28  ;;  %7328 = vmatpush3.msra.mxu1 %v4866_v55  ;;  %v4908_v28 = vand.u32 4294901760, %v4907_v39  ;;  %v9826_v57 = vand.u32 4294901760, %v9814_v52  ;;  %v4922_v47 = vand.u32 4294901760, %v4921_v15  ;;  %v9833_v55 = vsub.f32 %v4725_v26, %v9822_v32 }
 0x5ce   :  { %7251 = vmatmul.mubr.f32.vlgmr.msra.gmra.mxu0 %v9532_v54  ;;  %7288 = vmatprep.subr.mxu0 %v9679_v36  ;;  %v9766_v54 = vsub.f32 %v4731_v53, %v9761_v17  ;;  %v9820_v42 = vsub.f32 %v4726_v33, %v9811_v12  ;;  %v9856_v40 = vand.u32 4294901760, %v9847_v5 }
 0x5cf   :  { %7289 = vmatpush3.msra.mxu0 %v9679_v36  ;;  %7329 = vmatprep.subr.mxu1 %v4873_v50  ;;  %10203 = vst [vmem:[#allocation36_spill] sm:$0xff] %v9826_v57 }
 0x5d0   :  { %7290 = vmatprep.subr.mxu0 %v9681_v13  ;;  %7330 = vmatpush3.msra.mxu1 %v4873_v50  ;;  %v9773_v0 = vand.u32 4294901760, %v9766_v54  ;;  %v9830_v45 = vand.u32 4294901760, %v9820_v42  ;;  %v4928_v50 = vsub.f32 %v9814_v52, %v9826_v57  ;;  %10206 = vst [vmem:[#allocation24_spill] sm:$0xff] %v9856_v40 }
 0x5d1   :  { %7291 = vmatpush3.msra.mxu0 %v9681_v13  ;;  %7331 = vmatprep.subr.mxu1 %v4880_v16 }
 0x5d2   :  { %7292 = vmatprep.subr.mxu0 %v9683_v49  ;;  %10199 = vst [vmem:[#allocation32_spill] sm:$0xff] %v9773_v0  ;;  %7332 = vmatpush3.msra.mxu1 %v4880_v16  ;;  %v4900_v14 = vsub.f32 %v9766_v54, %v9773_v0  ;;  %10204 = vst [vmem:[#allocation37_spill] sm:$0xff] %v9830_v45  ;;  %v4935_v53 = vsub.f32 %v9820_v42, %v9830_v45  ;;  %v9844_v16 = vand.u32 4294901760, %v9833_v55 }
 0x5d3   :  { %7293 = vmatpush3.msra.mxu0 %v9683_v49  ;;  %7333 = vmatprep.subr.mxu1 %v4887_v63 }
 0x5d4   :  { %7294 = vmatprep.subr.mxu0 %v9685_v9  ;;  %7334 = vmatpush3.msra.mxu1 %v4887_v63  ;;  %v4901_v62 = vand.u32 4294901760, %v4900_v14  ;;  %10205 = vst [vmem:[#allocation38_spill] sm:$0xff] %v9844_v16  ;;  %v4929_v63 = vand.u32 4294901760, %v4928_v50  ;;  %v4936_v8 = vand.u32 4294901760, %v4935_v53  ;;  %v9859_v14 = vsub.f32 %v4723_v34, %v9849_v22 }
 0x5d5   :  { %7295 = vmatpush3.msra.mxu0 %v9685_v9  ;;  %7335 = vmatprep.subr.mxu1 %v4894_v37 }
 0x5d6   :  { %7296 = vmatprep.subr.mxu0 %v9691_v29  ;;  %7336 = vmatpush3.msra.mxu1 %v4894_v37  ;;  %v4942_v37 = vsub.f32 %v9833_v55, %v9844_v16  ;;  %v9866_v39 = vand.u32 4294901760, %v9859_v14 }
 0x5d7   :  { %7297 = vmatpush3.msra.mxu0 %v9691_v29  ;;  %7337 = vmatprep.subr.mxu1 %v4901_v62 }
 0x5d8   :  { %7298 = vmatprep.subr.mxu0 %v9693_v38  ;;  %7338 = vmatpush3.msra.mxu1 %v4901_v62  ;;  %v4943_v58 = vand.u32 4294901760, %v4942_v37  ;;  %v4949_v62 = vsub.f32 %v9847_v5, %v9856_v40  ;;  %10207 = vst [vmem:[#allocation39_spill] sm:$0xff] %v9866_v39 }
 0x5d9   :  { %7299 = vmatpush3.msra.mxu0 %v9693_v38  ;;  %7339 = vmatprep.subr.mxu1 %v4908_v28 }
 0x5da   :  { %7300 = vmatprep.subr.mxu0 %v9695_v10  ;;  %7340 = vmatpush3.msra.mxu1 %v4908_v28  ;;  %v4950_v33 = vand.u32 4294901760, %v4949_v62  ;;  %v4956_v28 = vsub.f32 %v9859_v14, %v9866_v39 }
 0x5db   :  { %7301 = vmatpush3.msra.mxu0 %v9695_v10  ;;  %7341 = vmatprep.subr.mxu1 %v4915_v3 }
 0x5dc   :  { %7302 = vmatprep.subr.mxu0 %v9761_v17  ;;  %7342 = vmatpush3.msra.mxu1 %v4915_v3  ;;  %v4957_v41 = vand.u32 4294901760, %v4956_v28  ;;  %v5456_v3 = vld [vmem:[%s10043_s11] ss:$0 sm:$0xff] }
 0x5dd   :  { %7303 = vmatpush3.msra.mxu0 %v9761_v17  ;;  %7343 = vmatprep.subr.mxu1 %v4922_v47 }
 0x5de   :  { %7304 = vmatprep.subr.mxu0 %v9768_v27  ;;  %7344 = vmatpush3.msra.mxu1 %v4922_v47 }
 0x5df   :  { %7305 = vmatpush3.msra.mxu0 %v9768_v27  ;;  %7345 = vmatprep.subr.mxu1 %v4929_v63 }
 0x5e0   :  { %7306 = vmatprep.subr.mxu0 %v9778_v19  ;;  %7346 = vmatpush3.msra.mxu1 %v4929_v63 }
 0x5e1   :  { %7307 = vmatpush3.msra.mxu0 %v9778_v19  ;;  %7347 = vmatprep.subr.mxu1 %v4936_v8 }
 0x5e2   :  { %7308 = vmatprep.subr.mxu0 %v9790_v20  ;;  %7348 = vmatpush3.msra.mxu1 %v4936_v8 }
 0x5e3   :  { %7309 = vmatpush3.msra.mxu0 %v9790_v20  ;;  %7349 = vmatprep.subr.mxu1 %v4943_v58 }
 0x5e4   :  { %7310 = vmatprep.subr.mxu0 %v9803_v56  ;;  %7350 = vmatpush3.msra.mxu1 %v4943_v58 }
 0x5e5   :  { %7311 = vmatpush3.msra.mxu0 %v9803_v56  ;;  %7351 = vmatprep.subr.mxu1 %v4950_v33 }
 0x5e6   :  { %7312 = vmatprep.subr.mxu0 %v9811_v12  ;;  %7352 = vmatpush3.msra.mxu1 %v4950_v33 }
 0x5e7   :  { %7313 = vmatpush3.msra.mxu0 %v9811_v12  ;;  %7353 = vmatprep.subr.mxu1 %v4957_v41 }
 0x5e8   :  { %7314 = vmatprep.subr.mxu0 %v9822_v32  ;;  %7354 = vmatpush3.msra.mxu1 %v4957_v41 }
 0x5e9   :  { %7315 = vmatpush3.msra.mxu0 %v9822_v32  ;;  %7393 = vmatprep.subr.mxu1 %v9679_v36 }
 0x5ea   :  { %7316 = vmatprep.subr.mxu0 %v9835_v2 }
 0x5eb   :  { %7317 = vmatpush3.msra.mxu0 %v9835_v2 }
 0x5ec   :  { %7318 = vmatprep.subr.mxu0 %v9849_v22 }
 0x5ed   :  { %7319 = vmatpush3.msra.mxu0 %v9849_v22 }
 0x5ee   :  { %7358 = vmatprep.subr.mxu0 %v9688_v43 }
 0x644   :  { %v7147_v15 = vpop.f32.mrf.mxu1 }
 0x646   :  { %v4285_v53 = vpop.f32.mrf.mxu1 }
 0x64c   :  { %v7112_v26 = vpop.f32.mrf.mxu0 }
 0x64d   :  { %v4135_v47 = vadd.f32 %v7112_v26, %v5456_v3 }
 0x64e   :  { %v4124_v31 = vpop.f32.mrf.mxu0 }
 0x64f   :  { %v4125_v34 = vadd.f32 %v5456_v3, %v4124_v31  ;;  %v4292_v63 = vadd.f32 %v7147_v15, %v4135_v47 }
 0x651   :  { %v4286_v62 = vadd.f32 %v4285_v53, %v4125_v34 }
 0x665   :  { %v7217_v8 = vpop.f32.mrf.mxu1 }
 0x667   :  { %v4491_v28 = vpop.f32.mrf.mxu1 }
 0x66d   :  { %v7182_v50 = vpop.f32.mrf.mxu0 }
 0x66e   :  { %v4403_v58 = vadd.f32 %v7182_v50, %v4292_v63 }
 0x66f   :  { %v4395_v37 = vpop.f32.mrf.mxu0 }
 0x670   :  { %v4396_v33 = vadd.f32 %v4395_v37, %v4286_v62  ;;  %v4500_v41 = vadd.f32 %v7217_v8, %v4403_v58 }
 0x672   :  { %v4492_v45 = vadd.f32 %v4491_v28, %v4396_v33 }
 0x687   :  { %v7287_v39 = vpop.f32.mrf.mxu1 }
 0x689   :  { %v4711_v61 = vpop.f32.mrf.mxu1 }
 0x68e   :  { %v7252_v40 = vpop.f32.mrf.mxu0 }
 0x68f   :  { %v4625_v16 = vadd.f32 %v7252_v40, %v4500_v41 }
 0x690   :  { %v4618_v57 = vpop.f32.mrf.mxu0 }
 0x691   :  { %v4718_v7 = vadd.f32 %v7287_v39, %v4625_v16  ;;  %v4619_v6 = vadd.f32 %v4618_v57, %v4492_v45 }
 0x693   :  { %v4722_v26 = vmax.f32 %v4718_v7, 0.0  ;;  %v4712_v0 = vadd.f32 %v4711_v61, %v4619_v6 }
 0x695   :  { %v9876_v3 = vand.u32 4294901760, %v4722_v26  ;;  %v4721_v15 = vmax.f32 %v4712_v0, 0.0 }
 0x697   :  { %v9879_v31 = vsub.f32 %v4722_v26, %v9876_v3  ;;  %v9881_v47 = vand.u32 4294901760, %v4721_v15 }
 0x699   :  { %v4839_v50 = vand.u32 4294901760, %v9879_v31  ;;  %v4828_v34 = vsub.f32 %v4721_v15, %v9881_v47  ;;  %7355 = vmatprep.mubr.f32.mxu1 %v9881_v47 }
 0x69a   :  { %7356 = vmatmul.mubr.f32.vlgmr.msra.gmra.mxu1 %v9876_v3 }
 0x69b   :  { %7394 = vmatpush3.msra.mxu1 %v9679_v36  ;;  %v4829_v7 = vand.u32 4294901760, %v4828_v34  ;;  %v4840_v0 = vsub.f32 %v9879_v31, %v4839_v50 }
 0x69c   :  { %7395 = vmatprep.subr.mxu1 %v9681_v13 }
 0x69d   :  { %7396 = vmatpush3.msra.mxu1 %v9681_v13  ;;  %7425 = vmatprep.mubr.f32.mxu1 %v4829_v7  ;;  %v4830_v61 = vsub.f32 %v4828_v34, %v4829_v7  ;;  %v4841_v57 = vand.u32 4294901760, %v4840_v0 }
 0x69e   :  { %7397 = vmatprep.subr.mxu1 %v9683_v49 }
 0x69f   :  { %7398 = vmatpush3.msra.mxu1 %v9683_v49  ;;  %v4831_v6 = vand.u32 4294901760, %v4830_v61 }
 0x6a0   :  { %7399 = vmatprep.subr.mxu1 %v9685_v9 }
 0x6a1   :  { %7400 = vmatpush3.msra.mxu1 %v9685_v9  ;;  %7320 = vmatprep.mubr.f32.mxu0 %v4831_v6 }
 0x6a2   :  { %7401 = vmatprep.subr.mxu1 %v9691_v29  ;;  %7321 = vmatmul.mubr.f32.vlgmr.msra.gmra.mxu0 %v4841_v57 }
 0x6a3   :  { %7359 = vmatpush3.msra.mxu0 %v9688_v43  ;;  %7402 = vmatpush3.msra.mxu1 %v9691_v29  ;;  %v10212_v43 = vld [vmem:[#allocation36_spill] sm:$0xff] }
 0x6a4   :  { %7360 = vmatprep.subr.mxu0 %v9698_v21  ;;  %7390 = vmatprep.mubr.f32.mxu0 %v4828_v34 }
 0x6a5   :  { %7403 = vmatprep.subr.mxu1 %v9693_v38  ;;  %7361 = vmatpush3.msra.mxu0 %v9698_v21  ;;  %v10216_v21 = vld [vmem:[#allocation39_spill] sm:$0xff] }
 0x6a6   :  { %7404 = vmatpush3.msra.mxu1 %v9693_v38  ;;  %7362 = vmatprep.subr.mxu0 %v9701_v23 }
 0x6a7   :  { %7405 = vmatprep.subr.mxu1 %v9695_v10  ;;  %7363 = vmatpush3.msra.mxu0 %v9701_v23 }
 0x6a8   :  { %7406 = vmatpush3.msra.mxu1 %v9695_v10  ;;  %7364 = vmatprep.subr.mxu0 %v9704_v59 }
 0x6a9   :  { %7407 = vmatprep.subr.mxu1 %v9761_v17  ;;  %7365 = vmatpush3.msra.mxu0 %v9704_v59  ;;  %v5457_v59 = vld [vmem:[%s10045_s13] ss:$0 sm:$0xff]  ;;  %s7733_s13 = smov [#allocation17]  }
 0x6aa   :  { %7408 = vmatpush3.msra.mxu1 %v9761_v17  ;;  %7366 = vmatprep.subr.mxu0 %v9711_v48  ;;  %s5437_s25 = sshll.u32 %s7733_s13, 4  ;;  %s5438_s25 = int_to_ptr.vmem [resolvable:$true] %s5437_s25 }
 0x6ab   :  { %7409 = vmatprep.subr.mxu1 %v9768_v27  ;;  %7367 = vmatpush3.msra.mxu0 %v9711_v48  ;;  %s7690_s26 = scalar_lea.vmem %s5438_s25, 256  ;;  %p7695_p4 = scmp.lt.s32.totalorder %s5438_s25, %s5438_s25 }
 0x6ac   :  { %7410 = vmatpush3.msra.mxu1 %v9768_v27  ;;  %7368 = vmatprep.subr.mxu0 %v9715_v18  ;;  %p7691_p3 = scmp.ne.s32.totalorder %s5438_s25, %s7690_s26  ;;  %p7696_p5 = scmp.lt.s32.totalorder %s7690_s26, %s7690_s26 }
 0x6ad   :  { %7411 = vmatprep.subr.mxu1 %v9778_v19  ;;  %7369 = vmatpush3.msra.mxu0 %v9715_v18 }
 0x6ae   :  { %7412 = vmatpush3.msra.mxu1 %v9778_v19  ;;  %7370 = vmatprep.subr.mxu0 %v9734_v60  ;;  %p7697_p6 = por %p7696_p5, %p7695_p4 }
 0x6af   :  { %7413 = vmatprep.subr.mxu1 %v9790_v20  ;;  %7371 = vmatpush3.msra.mxu0 %v9734_v60 }
 0x6b0   :  { %7414 = vmatpush3.msra.mxu1 %v9790_v20  ;;  %7372 = vmatprep.subr.mxu0 %v9766_v54  ;;  %p7698_p7 = pnand %p7697_p6, %p7691_p3 }
 0x6b1   :  { %7415 = vmatprep.subr.mxu1 %v9803_v56  ;;  %7373 = vmatpush3.msra.mxu0 %v9766_v54 }
 0x6b2   :  { %7416 = vmatpush3.msra.mxu1 %v9803_v56  ;;  %7374 = vmatprep.subr.mxu0 %v9776_v25 }
 0x6b3   :  { %7417 = vmatprep.subr.mxu1 %v9811_v12  ;;  %7375 = vmatpush3.msra.mxu0 %v9776_v25 }
 0x6b4   :  { %7418 = vmatpush3.msra.mxu1 %v9811_v12  ;;  %7376 = vmatprep.subr.mxu0 %v9788_v44 }
 0x6b5   :  { %7419 = vmatprep.subr.mxu1 %v9822_v32  ;;  %7377 = vmatpush3.msra.mxu0 %v9788_v44 }
 0x6b6   :  { %7420 = vmatpush3.msra.mxu1 %v9822_v32  ;;  %7378 = vmatprep.subr.mxu0 %v9800_v46 }
 0x6b7   :  { %7421 = vmatprep.subr.mxu1 %v9835_v2  ;;  %7379 = vmatpush3.msra.mxu0 %v9800_v46 }
 0x6b8   :  { %7422 = vmatpush3.msra.mxu1 %v9835_v2  ;;  %7380 = vmatprep.subr.mxu0 %v9814_v52 }
 0x6b9   :  { %7423 = vmatprep.subr.mxu1 %v9849_v22  ;;  %7381 = vmatpush3.msra.mxu0 %v9814_v52 }
 0x6ba   :  { %7424 = vmatpush3.msra.mxu1 %v9849_v22  ;;  %7382 = vmatprep.subr.mxu0 %v9820_v42 }
 0x6bb   :  { %7426 = vmatmul.mubr.f32.vlgmr.msra.gmra.mxu1 %v4839_v50  ;;  %7463 = vmatprep.subr.mxu1 %v9679_v36 }
 0x6bc   :  { %7383 = vmatpush3.msra.mxu0 %v9820_v42  ;;  %7464 = vmatpush3.msra.mxu1 %v9679_v36  ;;  %v10208_v36 = vld [vmem:[#allocation32_spill] sm:$0xff] }
 0x6bd   :  { %7495 = vmatprep.mubr.f32.mxu1 %v9881_v47  ;;  %7384 = vmatprep.subr.mxu0 %v9833_v55 }
 0x6be   :  { %7465 = vmatprep.subr.mxu1 %v9681_v13  ;;  %7385 = vmatpush3.msra.mxu0 %v9833_v55 }
 0x6bf   :  { %7466 = vmatpush3.msra.mxu1 %v9681_v13  ;;  %7386 = vmatprep.subr.mxu0 %v9847_v5  ;;  %v10209_v13 = vld [vmem:[#allocation33_spill] sm:$0xff] }
 0x6c0   :  { %7467 = vmatprep.subr.mxu1 %v9683_v49  ;;  %7387 = vmatpush3.msra.mxu0 %v9847_v5 }
 0x6c1   :  { %7468 = vmatpush3.msra.mxu1 %v9683_v49  ;;  %7388 = vmatprep.subr.mxu0 %v9859_v14  ;;  %v10210_v49 = vld [vmem:[#allocation34_spill] sm:$0xff] }
 0x6c2   :  { %7469 = vmatprep.subr.mxu1 %v9685_v9  ;;  %7389 = vmatpush3.msra.mxu0 %v9859_v14 }
 0x6c3   :  { %7470 = vmatpush3.msra.mxu1 %v9685_v9  ;;  %7391 = vmatmul.mubr.f32.vlgmr.msra.gmra.mxu0 %v9879_v31  ;;  %v10211_v9 = vld [vmem:[#allocation35_spill] sm:$0xff] }
 0x6c4   :  { %7428 = vmatprep.subr.mxu0 %v9708_v1  ;;  %7471 = vmatprep.subr.mxu1 %v9691_v29 }
 0x6c5   :  { %7429 = vmatpush3.msra.mxu0 %v9708_v1  ;;  %7460 = vmatprep.mubr.f32.mxu0 %v9881_v47 }
 0x6c6   :  { %7472 = vmatpush3.msra.mxu1 %v9691_v29  ;;  %7430 = vmatprep.subr.mxu0 %v9718_v4  ;;  %v10213_v29 = vld [vmem:[#allocation37_spill] sm:$0xff] }
 0x6c7   :  { %7473 = vmatprep.subr.mxu1 %v9693_v38  ;;  %7431 = vmatpush3.msra.mxu0 %v9718_v4 }
 0x6c8   :  { %7474 = vmatpush3.msra.mxu1 %v9693_v38  ;;  %7432 = vmatprep.subr.mxu0 %v9721_v11  ;;  %v10214_v38 = vld [vmem:[#allocation38_spill] sm:$0xff] }
 0x6c9   :  { %7475 = vmatprep.subr.mxu1 %v9695_v10  ;;  %7433 = vmatpush3.msra.mxu0 %v9721_v11 }
 0x6ca   :  { %7476 = vmatpush3.msra.mxu1 %v9695_v10  ;;  %7434 = vmatprep.subr.mxu0 %v9724_v51  ;;  %v10215_v10 = vld [vmem:[#allocation24_spill] sm:$0xff] }
 0x6cb   :  { %7477 = vmatprep.subr.mxu1 %v9761_v17  ;;  %7435 = vmatpush3.msra.mxu0 %v9724_v51 }
 0x6cc   :  { %7478 = vmatpush3.msra.mxu1 %v9761_v17  ;;  %7436 = vmatprep.subr.mxu0 %v9730_v35 }
 0x6cd   :  { %7479 = vmatprep.subr.mxu1 %v9768_v27  ;;  %7437 = vmatpush3.msra.mxu0 %v9730_v35 }
 0x6ce   :  { %7480 = vmatpush3.msra.mxu1 %v9768_v27  ;;  %7438 = vmatprep.subr.mxu0 %v9744_v24 }
 0x6cf   :  { %7481 = vmatprep.subr.mxu1 %v9778_v19  ;;  %7439 = vmatpush3.msra.mxu0 %v9744_v24 }
 0x6d0   :  { %7482 = vmatpush3.msra.mxu1 %v9778_v19  ;;  %7440 = vmatprep.subr.mxu0 %v9751_v30 }
 0x6d1   :  { %7483 = vmatprep.subr.mxu1 %v9790_v20  ;;  %7441 = vmatpush3.msra.mxu0 %v9751_v30 }
 0x6d2   :  { %7484 = vmatpush3.msra.mxu1 %v9790_v20  ;;  %7442 = vmatprep.subr.mxu0 %v10208_v36 }
 0x6d3   :  { %7485 = vmatprep.subr.mxu1 %v9803_v56  ;;  %7443 = vmatpush3.msra.mxu0 %v10208_v36 }
 0x6d4   :  { %7486 = vmatpush3.msra.mxu1 %v9803_v56  ;;  %7444 = vmatprep.subr.mxu0 %v10209_v13 }
 0x6d5   :  { %7487 = vmatprep.subr.mxu1 %v9811_v12  ;;  %7445 = vmatpush3.msra.mxu0 %v10209_v13 }
 0x6d6   :  { %7488 = vmatpush3.msra.mxu1 %v9811_v12  ;;  %7446 = vmatprep.subr.mxu0 %v10210_v49 }
 0x6d7   :  { %7489 = vmatprep.subr.mxu1 %v9822_v32  ;;  %7447 = vmatpush3.msra.mxu0 %v10210_v49 }
 0x6d8   :  { %7490 = vmatpush3.msra.mxu1 %v9822_v32  ;;  %7448 = vmatprep.subr.mxu0 %v10211_v9 }
 0x6d9   :  { %7491 = vmatprep.subr.mxu1 %v9835_v2  ;;  %7449 = vmatpush3.msra.mxu0 %v10211_v9 }
 0x6da   :  { %7492 = vmatpush3.msra.mxu1 %v9835_v2  ;;  %7450 = vmatprep.subr.mxu0 %v10212_v43 }
 0x6db   :  { %7493 = vmatprep.subr.mxu1 %v9849_v22  ;;  %7451 = vmatpush3.msra.mxu0 %v10212_v43 }
 0x6dc   :  { %7494 = vmatpush3.msra.mxu1 %v9849_v22  ;;  %7452 = vmatprep.subr.mxu0 %v10213_v29 }
 0x6dd   :  { %7496 = vmatmul.mubr.f32.vlgmr.msra.gmra.mxu1 %v9876_v3  ;;  %7453 = vmatpush3.msra.mxu0 %v10213_v29 }
 0x6de   :  { %7454 = vmatprep.subr.mxu0 %v10214_v38 }
 0x6df   :  { %7455 = vmatpush3.msra.mxu0 %v10214_v38 }
 0x6e0   :  { %7456 = vmatprep.subr.mxu0 %v10215_v10 }
 0x6e1   :  { %7457 = vmatpush3.msra.mxu0 %v10215_v10 }
 0x6e2   :  { %7458 = vmatprep.subr.mxu0 %v10216_v21 }
 0x6e3   :  { %7459 = vmatpush3.msra.mxu0 %v10216_v21 }
 0x6e4   :  { %7461 = vmatmul.mubr.f32.vlgmr.msra.gmra.mxu0 %v9876_v3 }
 0x75a   :  { %v7357_v1 = vpop.f32.mrf.mxu1 }
 0x75c   :  { %v4994_v51 = vpop.f32.mrf.mxu1 }
 0x762   :  { %v7322_v23 = vpop.f32.mrf.mxu0 }
 0x763   :  { %v4844_v18 = vadd.f32 %v7322_v23, %v5457_v59 }
 0x764   :  { %v4833_v48 = vpop.f32.mrf.mxu0 }
 0x765   :  { %v4834_v11 = vadd.f32 %v5457_v59, %v4833_v48  ;;  %v5001_v35 = vadd.f32 %v7357_v1, %v4844_v18 }
 0x767   :  { %v4995_v17 = vadd.f32 %v4994_v51, %v4834_v11 }
 0x77b   :  { %v7427_v60 = vpop.f32.mrf.mxu1 }
 0x77d   :  { %v5200_v27 = vpop.f32.mrf.mxu1 }
 0x783   :  { %v7392_v4 = vpop.f32.mrf.mxu0 }
 0x784   :  { %v5112_v30 = vadd.f32 %v7392_v4, %v5001_v35 }
 0x785   :  { %v5104_v24 = vpop.f32.mrf.mxu0 }
 0x786   :  { %v5105_v54 = vadd.f32 %v5104_v24, %v4995_v17  ;;  %v5209_v25 = vadd.f32 %v7427_v60, %v5112_v30 }
 0x788   :  { %v5201_v46 = vadd.f32 %v5200_v27, %v5105_v54 }
 0x79d   :  { %v7497_v19 = vpop.f32.mrf.mxu1 }
 0x79f   :  { %v5420_v42 = vpop.f32.mrf.mxu1 }
 0x7a4   :  { %v7462_v44 = vpop.f32.mrf.mxu0 }
 0x7a5   :  { %v5334_v20 = vadd.f32 %v7462_v44, %v5209_v25 }
 0x7a6   :  { %v5327_v56 = vpop.f32.mrf.mxu0 }
 0x7a7   :  { %v5427_v12 = vadd.f32 %v7497_v19, %v5334_v20  ;;  %v5328_v52 = vadd.f32 %v5327_v56, %v5201_v46 }
 0x7a9   :  { %5431 = vst [vmem:[#allocation17 + $0x8] sm:$0xff] %v5427_v12  ;;  %v5421_v32 = vadd.f32 %v5420_v42, %v5328_v52 }
 0x7ab   :  { %5430 = vst [vmem:[#allocation17] sm:$0xff] %v5421_v32 }
 0x7ac   :  { %7701 = shalt.err (!%p7698_p7)
}
 0x7ad   :  { %5443 = dma.vmem_to_hbm [thread:$0]  %s5438_s25, 256, %s10046_s14, [#allocation4], %s7724_s18, %s7724_s18, %s7725_s19  }
 0x7ae   :  { %7720 = dma.done.wait [#allocation4], 256  }
 0x7af   :  { %7721 = vsyncadd [#allocation4], 4294967040 }
 0x7b0   :  { %5447 = vsyncpa [#allocation3], 1 }
 0x7b1   :  { %5448 = vsyncpa [#allocation6], 1 }
 0x7b2   :  { %5449 = vsyncpa [#allocation9], 1 }
 0x7b3   :  { %5450 = vsyncpa [#allocation12], 1 }
 0x7b4   :  { %5451 = vsyncpa [#allocation15], 1 }
 0x7b5   :  { %5452 = vsyncpa [#allocation4], 1 }

</bundles_post_ra>
